<compile_context>
chip_gen: v7x
topology: tpu7x:2x2x1
jax: 0.10.0
libtpu: 0.0.40
codegen_flags: <defaults>
</compile_context>

<pallas_src>
import functools

import jax
import jax.numpy as jnp
from jax.experimental import pallas as pl
from jax.experimental.pallas import tpu as pltpu

BN_EPS = 1e-5
_INV_SQRT2 = 0.7071067811865476
CPAD = 8                 # channel padding: one (8,128) sublane tile
KK = 9 * CPAD            # unified patch K (3x3 footprint, padded channels)


def _gelu(x):
    # exact (erf-based) GELU, matching torch.nn.GELU default
    return 0.5 * x * (1.0 + jax.lax.erf(x * _INV_SQRT2))


# ---------------------------------------------------------------------------
# Fused whole-network kernel (one grid step == one batch element)
# ---------------------------------------------------------------------------
def resnet_kernel(x_ref, w_ref, b_ref, m_ref, fcw_ref, fcb_ref, o_ref,
                  buf_a, buf_b, *, n_blocks, n_classes, L, Lc, WP, rshift,
                  inv_pool):
    # flat-canvas shifts of the 3x3 window (row-major (di, dj))
    shifts = tuple(di * WP + dj for di in range(3) for dj in range(3))
    zeros_tail = jnp.zeros((CPAD, L - Lc), jnp.float32)

    def conv_layer(src_ref, li, residual=None):
        # in-VMEM im2col: 9 lane-shifted slices of the padded canvas buffer
        patches = jnp.concatenate(
            [src_ref[:, s:s + Lc] for s in shifts], axis=0)        # (KK, Lc)
        y = jnp.dot(w_ref[li], patches,
                    preferred_element_type=jnp.float32)            # (CPAD, Lc)
        y = y + b_ref[li]                                          # folded BN bias
        if residual is not None:
            y = y + residual
        # mask: zeroes wrap-around garbage and re-creates the zero padding /
        # zero canvas invariant needed by the next conv and by the avg pool.
        return _gelu(y) * m_ref[li]

    # stage the input canvas; make sure both scratch tails are zero so the
    # shifted reads past the compute slab never see uninitialized memory.
    buf_a[...] = x_ref[0]
    buf_b[:, Lc:L] = zeros_tail

    li = 0
    # input conv (k=2, pad=1) + BN + GELU
    buf_b[:, :Lc] = conv_layer(buf_a, li)
    li += 1

    # residual blocks: GELU(BN2(conv2(GELU(BN1(conv1(x))))) + x)
    for _ in range(n_blocks - 1):
        buf_a[:, :Lc] = conv_layer(buf_b, li)
        li += 1
        # skip connection, realigned to the output's canvas origin (shifted
        # by one row+col per conv => 2*(WP+1) flat positions for the 2 convs)
        res = buf_b[:, rshift:rshift + Lc]
        buf_b[:, :Lc] = conv_layer(buf_a, li, residual=res)
        li += 1

    # output conv (k=2, pad=1) + BN + GELU -- kept as a value, pooled directly
    y = conv_layer(buf_b, li)                                      # (CPAD, Lc)

    # fused adaptive_avg_pool2d(1) + flatten + Dropout(0)=identity + Linear:
    # logits[n] = sum_c fc_w[n,c]/HW * sum_t y[c,t] + fc_b[n]
    z = jnp.dot(fcw_ref[...] * inv_pool, y,
                preferred_element_type=jnp.float32)                # (n_classes, Lc)
    logits = jnp.sum(z, axis=1, keepdims=True) + fcb_ref[...]      # (n_classes, 1)
    o_ref[...] = logits.reshape(1, n_classes, 1)


# ---------------------------------------------------------------------------
# Geometry of the flattened zero-padded canvas
# ---------------------------------------------------------------------------
def make_geometry(H, W, n_blocks):
    n_conv = 2 + 2 * (n_blocks - 1)
    r0 = n_conv                       # canvas origin of the network input
    WP = 32
    while WP < r0 + W + 2:            # no column wrap for any valid window read
        WP *= 2
    # one past the largest valid flat index over all layers
    max_valid = (r0 + H - 1) * WP + (r0 + W - 1) + 1
    Lc = ((max_valid + 127) // 128) * 128        # lane-aligned compute slab
    max_shift = 2 * WP + 2                       # largest window / residual shift
    L = Lc + ((max_shift + 127) // 128) * 128
    HP = -(-L // WP)
    L = HP * WP                                  # canvas is (HP, WP) flattened
    assert HP >= r0 + H and WP >= r0 + W + 2
    assert Lc + max_shift <= L and Lc > max_valid
    return dict(n_conv=n_conv, r0=r0, HP=HP, WP=WP, L=L, Lc=Lc,
                rshift=max_shift)


def make_masks(geo, H, W):
    n_conv, r0, WP, Lc = geo["n_conv"], geo["r0"], geo["WP"], geo["Lc"]
    idx = jnp.arange(Lc, dtype=jnp.int32)
    rows, cols = idx // WP, idx % WP
    masks = []
    for layer in range(n_conv):
        o = r0 - 1 - layer
        hh = H + (2 if layer == n_conv - 1 else 1)
        ww = W + (2 if layer == n_conv - 1 else 1)
        m = ((rows >= o) & (rows < o + hh) & (cols >= o) & (cols < o + ww))
        masks.append(m.astype(jnp.float32).reshape(1, Lc))
    return jnp.stack(masks, axis=0)              # (n_conv, 1, Lc)


# ---------------------------------------------------------------------------
# Parameter init (torch layout) + BN folding + packing into kernel operands
# ---------------------------------------------------------------------------
def fold_bn(gamma, beta, mean, var):
    scale = gamma / jnp.sqrt(var + BN_EPS)
    bias = beta - mean * scale
    return scale.astype(jnp.float32), bias.astype(jnp.float32)


def pack_conv(w_oihw, scale, bias):
    """torch conv weight (O,I,kh,kw) + folded BN -> (CPAD, 9*CPAD) matmul weight
    (BN scale folded in) and (CPAD, 1) bias, embedded in the 3x3 footprint."""
    O, I, kh, kw = w_oihw.shape
    wk = jnp.transpose(w_oihw, (0, 2, 3, 1)) * scale[:, None, None, None]
    w_full = jnp.zeros((CPAD, 3, 3, CPAD), jnp.float32)
    w_full = w_full.at[:O, :kh, :kw, :I].set(wk)
    b_full = jnp.zeros((CPAD, 1), jnp.float32).at[:O, 0].set(bias)
    return w_full.reshape(CPAD, KK), b_full


def init_conv(key, out_c, in_c, k):
    fan_in = in_c * k * k
    return (jax.random.normal(key, (out_c, in_c, k, k), jnp.float32)
            / jnp.sqrt(jnp.float32(fan_in)))


def init_bn(key, c):
    k1, k2, k3, k4 = jax.random.split(key, 4)
    gamma = 1.0 + 0.1 * jax.random.normal(k1, (c,), jnp.float32)
    beta = 0.1 * jax.random.normal(k2, (c,), jnp.float32)
    mean = 0.1 * jax.random.normal(k3, (c,), jnp.float32)
    var = jax.random.uniform(k4, (c,), jnp.float32, minval=0.5, maxval=1.5)
    return gamma, beta, mean, var


def init_packed_params(key, in_channels, channels, out_channels, n_blocks,
                       n_classes, geo, H, W):
    assert max(in_channels, channels, out_channels) <= CPAD
    n_conv = geo["n_conv"]
    keys = jax.random.split(key, 2 * n_conv + 1)
    specs = ([(channels, in_channels, 2)]
             + [(channels, channels, 3)] * (2 * (n_blocks - 1))
             + [(out_channels, channels, 2)])
    conv_ws, conv_bs = [], []
    for i, (oc, ic, k) in enumerate(specs):
        w = init_conv(keys[2 * i], oc, ic, k)
        s, b = fold_bn(*init_bn(keys[2 * i + 1], oc))
        wm, bm = pack_conv(w, s, b)
        conv_ws.append(wm)
        conv_bs.append(bm)
    kf1, kf2 = jax.random.split(keys[-1])
    # torch Linear: weight (n_classes, out_channels), bias (n_classes,)
    fc_w = jax.random.normal(kf1, (n_classes, out_channels), jnp.float32) / jnp.sqrt(
        jnp.float32(out_channels))
    fc_b = 0.1 * jax.random.normal(kf2, (n_classes,), jnp.float32)
    fc_w_pad = jnp.zeros((n_classes, CPAD), jnp.float32).at[:, :out_channels].set(fc_w)
    return {
        "conv_w": jnp.stack(conv_ws, axis=0),       # (n_conv, CPAD, KK)
        "conv_b": jnp.stack(conv_bs, axis=0),       # (n_conv, CPAD, 1)
        "masks": make_masks(geo, H, W),             # (n_conv, 1, Lc)
        "fc_w": fc_w_pad,                           # (n_classes, CPAD)
        "fc_b": fc_b.reshape(n_classes, 1),         # (n_classes, 1)
    }


# ---------------------------------------------------------------------------
# Forward pass
# ---------------------------------------------------------------------------
def resnet_forward(cfg, params, x_nchw):
    geo = cfg["geo"]
    n_blocks, n_classes = cfg["n_blocks"], cfg["n_classes"]
    n_conv = geo["n_conv"]
    L, Lc, WP, HP, r0 = geo["L"], geo["Lc"], geo["WP"], geo["HP"], geo["r0"]
    B, Ci, H, W = x_nchw.shape

    # place the NCHW input on the zero canvas once (channels -> sublanes,
    # flattened padded spatial -> lanes); this replaces all per-layer im2col.
    canvas = jnp.zeros((B, CPAD, HP, WP), jnp.float32)
    canvas = canvas.at[:, :Ci, r0:r0 + H, r0:r0 + W].set(x_nchw.astype(jnp.float32))
    x_canvas = canvas.reshape(B, CPAD, L)

    kernel = functools.partial(
        resnet_kernel, n_blocks=n_blocks, n_classes=n_classes, L=L, Lc=Lc,
        WP=WP, rshift=geo["rshift"],
        inv_pool=1.0 / float((H + 2) * (W + 2)))

    out = pl.pallas_call(
        kernel,
        out_shape=jax.ShapeDtypeStruct((B, n_classes, 1), jnp.float32),
        grid=(B,),
        in_specs=[
            pl.BlockSpec((1, CPAD, L), lambda b: (b, 0, 0)),       # input canvas
            pl.BlockSpec((n_conv, CPAD, KK), lambda b: (0, 0, 0)),  # conv weights
            pl.BlockSpec((n_conv, CPAD, 1), lambda b: (0, 0, 0)),   # folded BN bias
            pl.BlockSpec((n_conv, 1, Lc), lambda b: (0, 0, 0)),     # validity masks
            pl.BlockSpec((n_classes, CPAD), lambda b: (0, 0)),      # fc weight
            pl.BlockSpec((n_classes, 1), lambda b: (0, 0)),         # fc bias
        ],
        out_specs=pl.BlockSpec((1, n_classes, 1), lambda b: (b, 0, 0)),
        scratch_shapes=[pltpu.VMEM((CPAD, L), jnp.float32),
                        pltpu.VMEM((CPAD, L), jnp.float32)],
        compiler_params=pltpu.CompilerParams(
            dimension_semantics=("parallel",)),
    )(x_canvas, params["conv_w"], params["conv_b"], params["masks"],
      params["fc_w"], params["fc_b"])
    return out[:, :, 0]


if __name__ == "__main__":
    # small config consistent with the module's constructor
    B, IN_C, CH, OUT_C = 2, 4, 8, 8
    H = W = 16
    N_BLOCKS = 4          # -> 3 residual blocks
    N_CLASSES = 2

    key = jax.random.PRNGKey(0)
    kx, kp = jax.random.split(key)
    x = jax.random.normal(kx, (B, IN_C, H, W), jnp.float32)     # NCHW input

    geo = make_geometry(H, W, N_BLOCKS)
    cfg = {"geo": geo, "n_blocks": N_BLOCKS, "n_classes": N_CLASSES}
    params = init_packed_params(kp, IN_C, CH, OUT_C, N_BLOCKS, N_CLASSES,
                                geo, H, W)

    fwd = jax.jit(functools.partial(resnet_forward, cfg))
    out = jax.block_until_ready(fwd(params, x))
    assert out.shape == (B, N_CLASSES), out.shape
    assert bool(jnp.all(jnp.isfinite(out)))
    print("KERNEL_OK")
</pallas_src>

<mosaic_0001>
module attributes {stable_mosaic.version = 11 : i64} {
  func.func @resnet_kernel(%arg0: i32, %arg1: memref<1x8x896xf32, #tpu.memory_space<vmem>>, %arg2: memref<8x8x72xf32, #tpu.memory_space<vmem>>, %arg3: memref<8x8x1xf32, #tpu.memory_space<vmem>>, %arg4: memref<8x1x768xf32, #tpu.memory_space<vmem>>, %arg5: memref<2x8xf32, #tpu.memory_space<vmem>>, %arg6: memref<2x1xf32, #tpu.memory_space<vmem>>, %arg7: memref<1x2x1xf32, #tpu.memory_space<vmem>>, %arg8: memref<8x896xf32, #tpu.memory_space<vmem>>, %arg9: memref<8x896xf32, #tpu.memory_space<vmem>>) attributes {dimension_semantics = [#tpu.dimension_semantics<parallel>], iteration_bounds = array<i64: 2>, scalar_prefetch = 0 : i64, scratch_operands = 2 : i64, tpu.core_type = #tpu.core_type<tc>, window_params = [{transform_indices = @transform_0, window_bounds = array<i64: 1, 8, 896>}, {pipeline_mode = #tpu.pipeline_mode<synchronous>, transform_indices = @transform_1, window_bounds = array<i64: 8, 8, 72>}, {pipeline_mode = #tpu.pipeline_mode<synchronous>, transform_indices = @transform_2, window_bounds = array<i64: 8, 8, 1>}, {pipeline_mode = #tpu.pipeline_mode<synchronous>, transform_indices = @transform_3, window_bounds = array<i64: 8, 1, 768>}, {pipeline_mode = #tpu.pipeline_mode<synchronous>, transform_indices = @transform_4, window_bounds = array<i64: 2, 8>}, {pipeline_mode = #tpu.pipeline_mode<synchronous>, transform_indices = @transform_5, window_bounds = array<i64: 2, 1>}, {transform_indices = @transform_6, window_bounds = array<i64: 1, 2, 1>}]} {
    %cst = arith.constant 0.000000e+00 : f32
    %0 = vector.broadcast %cst : f32 to vector<8x128xf32>
    %c0 = arith.constant 0 : index
    %c0_0 = arith.constant 0 : index
    %c0_1 = arith.constant 0 : index
    %1 = vector.load %arg1[%c0, %c0_0, %c0_1] : memref<1x8x896xf32, #tpu.memory_space<vmem>>, vector<1x8x896xf32>
    %2 = vector.shape_cast %1 : vector<1x8x896xf32> to vector<8x896xf32>
    %c0_2 = arith.constant 0 : index
    %c0_3 = arith.constant 0 : index
    %3 = vector.load %arg8[%c0_2, %c0_3] : memref<8x896xf32, #tpu.memory_space<vmem>>, vector<8x896xf32>
    tpu.vector_store %arg8[%c0_2, %c0_3], %2 {strides = array<i32>} : memref<8x896xf32, #tpu.memory_space<vmem>>, vector<8x896xf32>,
    %c0_4 = arith.constant 0 : index
    %c768 = arith.constant 768 : index
    %4 = vector.load %arg9[%c0_4, %c768] : memref<8x896xf32, #tpu.memory_space<vmem>>, vector<8x128xf32>
    tpu.vector_store %arg9[%c0_4, %c768], %0 {strides = array<i32>} : memref<8x896xf32, #tpu.memory_space<vmem>>, vector<8x128xf32>,
    %c0_5 = arith.constant 0 : index
    %c0_6 = arith.constant 0 : index
    %5 = vector.load %arg8[%c0_5, %c0_6] : memref<8x896xf32, #tpu.memory_space<vmem>>, vector<8x768xf32>
    %c0_7 = arith.constant 0 : index
    %c1 = arith.constant 1 : index
    %6 = vector.load %arg8[%c0_7, %c1] : memref<8x896xf32, #tpu.memory_space<vmem>>, vector<8x768xf32>
    %c0_8 = arith.constant 0 : index
    %c2 = arith.constant 2 : index
    %7 = vector.load %arg8[%c0_8, %c2] : memref<8x896xf32, #tpu.memory_space<vmem>>, vector<8x768xf32>
    %c0_9 = arith.constant 0 : index
    %c32 = arith.constant 32 : index
    %8 = vector.load %arg8[%c0_9, %c32] : memref<8x896xf32, #tpu.memory_space<vmem>>, vector<8x768xf32>
    %c0_10 = arith.constant 0 : index
    %c33 = arith.constant 33 : index
    %9 = vector.load %arg8[%c0_10, %c33] : memref<8x896xf32, #tpu.memory_space<vmem>>, vector<8x768xf32>
    %c0_11 = arith.constant 0 : index
    %c34 = arith.constant 34 : index
    %10 = vector.load %arg8[%c0_11, %c34] : memref<8x896xf32, #tpu.memory_space<vmem>>, vector<8x768xf32>
    %c0_12 = arith.constant 0 : index
    %c64 = arith.constant 64 : index
    %11 = vector.load %arg8[%c0_12, %c64] : memref<8x896xf32, #tpu.memory_space<vmem>>, vector<8x768xf32>
    %c0_13 = arith.constant 0 : index
    %c65 = arith.constant 65 : index
    %12 = vector.load %arg8[%c0_13, %c65] : memref<8x896xf32, #tpu.memory_space<vmem>>, vector<8x768xf32>
    %c0_14 = arith.constant 0 : index
    %c66 = arith.constant 66 : index
    %13 = vector.load %arg8[%c0_14, %c66] : memref<8x896xf32, #tpu.memory_space<vmem>>, vector<8x768xf32>
    %14 = tpu.concatenate %5, %6, %7, %8, %9, %10, %11, %12, %13 in 0 : vector<8x768xf32>, vector<8x768xf32>, vector<8x768xf32>, vector<8x768xf32>, vector<8x768xf32>, vector<8x768xf32>, vector<8x768xf32>, vector<8x768xf32>, vector<8x768xf32> -> vector<72x768xf32>
    %c0_15 = arith.constant 0 : index
    %c0_16 = arith.constant 0 : index
    %c0_17 = arith.constant 0 : index
    %15 = vector.load %arg2[%c0_15, %c0_16, %c0_17] : memref<8x8x72xf32, #tpu.memory_space<vmem>>, vector<1x8x72xf32>
    %16 = vector.shape_cast %15 : vector<1x8x72xf32> to vector<8x72xf32>
    %cst_18 = arith.constant dense<0.000000e+00> : vector<8x768xf32>
    %17 = tpu.matmul %16, %14, %cst_18 {dimension_numbers = #tpu.dot_dimension_numbers<[1], [0], [0], [1], [0, 0, 1, 1], [], []>} : vector<8x72xf32>, vector<72x768xf32>, vector<8x768xf32> -> vector<8x768xf32>
    %c0_19 = arith.constant 0 : index
    %c0_20 = arith.constant 0 : index
    %c0_21 = arith.constant 0 : index
    %18 = vector.load %arg3[%c0_19, %c0_20, %c0_21] : memref<8x8x1xf32, #tpu.memory_space<vmem>>, vector<1x8x1xf32>
    %19 = vector.shape_cast %18 : vector<1x8x1xf32> to vector<8x1xf32>
    %20 = vector.broadcast %19 : vector<8x1xf32> to vector<8x768xf32>
    %21 = arith.addf %17, %20 : vector<8x768xf32>
    %cst_22 = arith.constant 5.000000e-01 : f32
    %22 = vector.broadcast %cst_22 : f32 to vector<8x768xf32>
    %23 = arith.mulf %22, %21 : vector<8x768xf32>
    %cst_23 = arith.constant 0.707106769 : f32
    %24 = vector.broadcast %cst_23 : f32 to vector<8x768xf32>
    %25 = arith.mulf %21, %24 : vector<8x768xf32>
    %26 = math.erf %25 : vector<8x768xf32>
    %cst_24 = arith.constant 1.000000e+00 : f32
    %27 = vector.broadcast %cst_24 : f32 to vector<8x768xf32>
    %28 = arith.addf %27, %26 : vector<8x768xf32>
    %29 = arith.mulf %23, %28 : vector<8x768xf32>
    %c0_25 = arith.constant 0 : index
    %c0_26 = arith.constant 0 : index
    %c0_27 = arith.constant 0 : index
    %30 = vector.load %arg4[%c0_25, %c0_26, %c0_27] : memref<8x1x768xf32, #tpu.memory_space<vmem>>, vector<1x1x768xf32>
    %31 = vector.shape_cast %30 : vector<1x1x768xf32> to vector<1x768xf32>
    %32 = vector.broadcast %31 : vector<1x768xf32> to vector<8x768xf32>
    %33 = arith.mulf %29, %32 : vector<8x768xf32>
    %c0_28 = arith.constant 0 : index
    %c0_29 = arith.constant 0 : index
    %34 = vector.load %arg9[%c0_28, %c0_29] : memref<8x896xf32, #tpu.memory_space<vmem>>, vector<8x768xf32>
    tpu.vector_store %arg9[%c0_28, %c0_29], %33 {strides = array<i32>} : memref<8x896xf32, #tpu.memory_space<vmem>>, vector<8x768xf32>,
    %c0_30 = arith.constant 0 : index
    %c0_31 = arith.constant 0 : index
    %35 = vector.load %arg9[%c0_30, %c0_31] : memref<8x896xf32, #tpu.memory_space<vmem>>, vector<8x768xf32>
    %c0_32 = arith.constant 0 : index
    %c1_33 = arith.constant 1 : index
    %36 = vector.load %arg9[%c0_32, %c1_33] : memref<8x896xf32, #tpu.memory_space<vmem>>, vector<8x768xf32>
    %c0_34 = arith.constant 0 : index
    %c2_35 = arith.constant 2 : index
    %37 = vector.load %arg9[%c0_34, %c2_35] : memref<8x896xf32, #tpu.memory_space<vmem>>, vector<8x768xf32>
    %c0_36 = arith.constant 0 : index
    %c32_37 = arith.constant 32 : index
    %38 = vector.load %arg9[%c0_36, %c32_37] : memref<8x896xf32, #tpu.memory_space<vmem>>, vector<8x768xf32>
    %c0_38 = arith.constant 0 : index
    %c33_39 = arith.constant 33 : index
    %39 = vector.load %arg9[%c0_38, %c33_39] : memref<8x896xf32, #tpu.memory_space<vmem>>, vector<8x768xf32>
    %c0_40 = arith.constant 0 : index
    %c34_41 = arith.constant 34 : index
    %40 = vector.load %arg9[%c0_40, %c34_41] : memref<8x896xf32, #tpu.memory_space<vmem>>, vector<8x768xf32>
    %c0_42 = arith.constant 0 : index
    %c64_43 = arith.constant 64 : index
    %41 = vector.load %arg9[%c0_42, %c64_43] : memref<8x896xf32, #tpu.memory_space<vmem>>, vector<8x768xf32>
    %c0_44 = arith.constant 0 : index
    %c65_45 = arith.constant 65 : index
    %42 = vector.load %arg9[%c0_44, %c65_45] : memref<8x896xf32, #tpu.memory_space<vmem>>, vector<8x768xf32>
    %c0_46 = arith.constant 0 : index
    %c66_47 = arith.constant 66 : index
    %43 = vector.load %arg9[%c0_46, %c66_47] : memref<8x896xf32, #tpu.memory_space<vmem>>, vector<8x768xf32>
    %44 = tpu.concatenate %35, %36, %37, %38, %39, %40, %41, %42, %43 in 0 : vector<8x768xf32>, vector<8x768xf32>, vector<8x768xf32>, vector<8x768xf32>, vector<8x768xf32>, vector<8x768xf32>, vector<8x768xf32>, vector<8x768xf32>, vector<8x768xf32> -> vector<72x768xf32>
    %c1_48 = arith.constant 1 : index
    %c0_49 = arith.constant 0 : index
    %c0_50 = arith.constant 0 : index
    %45 = vector.load %arg2[%c1_48, %c0_49, %c0_50] : memref<8x8x72xf32, #tpu.memory_space<vmem>>, vector<1x8x72xf32>
    %46 = vector.shape_cast %45 : vector<1x8x72xf32> to vector<8x72xf32>
    %cst_51 = arith.constant dense<0.000000e+00> : vector<8x768xf32>
    %47 = tpu.matmul %46, %44, %cst_51 {dimension_numbers = #tpu.dot_dimension_numbers<[1], [0], [0], [1], [0, 0, 1, 1], [], []>} : vector<8x72xf32>, vector<72x768xf32>, vector<8x768xf32> -> vector<8x768xf32>
    %c1_52 = arith.constant 1 : index
    %c0_53 = arith.constant 0 : index
    %c0_54 = arith.constant 0 : index
    %48 = vector.load %arg3[%c1_52, %c0_53, %c0_54] : memref<8x8x1xf32, #tpu.memory_space<vmem>>, vector<1x8x1xf32>
    %49 = vector.shape_cast %48 : vector<1x8x1xf32> to vector<8x1xf32>
    %50 = vector.broadcast %49 : vector<8x1xf32> to vector<8x768xf32>
    %51 = arith.addf %47, %50 : vector<8x768xf32>
    %cst_55 = arith.constant 5.000000e-01 : f32
    %52 = vector.broadcast %cst_55 : f32 to vector<8x768xf32>
    %53 = arith.mulf %52, %51 : vector<8x768xf32>
    %cst_56 = arith.constant 0.707106769 : f32
    %54 = vector.broadcast %cst_56 : f32 to vector<8x768xf32>
    %55 = arith.mulf %51, %54 : vector<8x768xf32>
    %56 = math.erf %55 : vector<8x768xf32>
    %cst_57 = arith.constant 1.000000e+00 : f32
    %57 = vector.broadcast %cst_57 : f32 to vector<8x768xf32>
    %58 = arith.addf %57, %56 : vector<8x768xf32>
    %59 = arith.mulf %53, %58 : vector<8x768xf32>
    %c1_58 = arith.constant 1 : index
    %c0_59 = arith.constant 0 : index
    %c0_60 = arith.constant 0 : index
    %60 = vector.load %arg4[%c1_58, %c0_59, %c0_60] : memref<8x1x768xf32, #tpu.memory_space<vmem>>, vector<1x1x768xf32>
    %61 = vector.shape_cast %60 : vector<1x1x768xf32> to vector<1x768xf32>
    %62 = vector.broadcast %61 : vector<1x768xf32> to vector<8x768xf32>
    %63 = arith.mulf %59, %62 : vector<8x768xf32>
    %c0_61 = arith.constant 0 : index
    %c0_62 = arith.constant 0 : index
    %64 = vector.load %arg8[%c0_61, %c0_62] : memref<8x896xf32, #tpu.memory_space<vmem>>, vector<8x768xf32>
    tpu.vector_store %arg8[%c0_61, %c0_62], %63 {strides = array<i32>} : memref<8x896xf32, #tpu.memory_space<vmem>>, vector<8x768xf32>,
    %c0_63 = arith.constant 0 : index
    %c66_64 = arith.constant 66 : index
    %65 = vector.load %arg9[%c0_63, %c66_64] : memref<8x896xf32, #tpu.memory_space<vmem>>, vector<8x768xf32>
    %c0_65 = arith.constant 0 : index
    %c0_66 = arith.constant 0 : index
    %66 = vector.load %arg8[%c0_65, %c0_66] : memref<8x896xf32, #tpu.memory_space<vmem>>, vector<8x768xf32>
    %c0_67 = arith.constant 0 : index
    %c1_68 = arith.constant 1 : index
    %67 = vector.load %arg8[%c0_67, %c1_68] : memref<8x896xf32, #tpu.memory_space<vmem>>, vector<8x768xf32>
    %c0_69 = arith.constant 0 : index
    %c2_70 = arith.constant 2 : index
    %68 = vector.load %arg8[%c0_69, %c2_70] : memref<8x896xf32, #tpu.memory_space<vmem>>, vector<8x768xf32>
    %c0_71 = arith.constant 0 : index
    %c32_72 = arith.constant 32 : index
    %69 = vector.load %arg8[%c0_71, %c32_72] : memref<8x896xf32, #tpu.memory_space<vmem>>, vector<8x768xf32>
    %c0_73 = arith.constant 0 : index
    %c33_74 = arith.constant 33 : index
    %70 = vector.load %arg8[%c0_73, %c33_74] : memref<8x896xf32, #tpu.memory_space<vmem>>, vector<8x768xf32>
    %c0_75 = arith.constant 0 : index
    %c34_76 = arith.constant 34 : index
    %71 = vector.load %arg8[%c0_75, %c34_76] : memref<8x896xf32, #tpu.memory_space<vmem>>, vector<8x768xf32>
    %c0_77 = arith.constant 0 : index
    %c64_78 = arith.constant 64 : index
    %72 = vector.load %arg8[%c0_77, %c64_78] : memref<8x896xf32, #tpu.memory_space<vmem>>, vector<8x768xf32>
    %c0_79 = arith.constant 0 : index
    %c65_80 = arith.constant 65 : index
    %73 = vector.load %arg8[%c0_79, %c65_80] : memref<8x896xf32, #tpu.memory_space<vmem>>, vector<8x768xf32>
    %c0_81 = arith.constant 0 : index
    %c66_82 = arith.constant 66 : index
    %74 = vector.load %arg8[%c0_81, %c66_82] : memref<8x896xf32, #tpu.memory_space<vmem>>, vector<8x768xf32>
    %75 = tpu.concatenate %66, %67, %68, %69, %70, %71, %72, %73, %74 in 0 : vector<8x768xf32>, vector<8x768xf32>, vector<8x768xf32>, vector<8x768xf32>, vector<8x768xf32>, vector<8x768xf32>, vector<8x768xf32>, vector<8x768xf32>, vector<8x768xf32> -> vector<72x768xf32>
    %c2_83 = arith.constant 2 : index
    %c0_84 = arith.constant 0 : index
    %c0_85 = arith.constant 0 : index
    %76 = vector.load %arg2[%c2_83, %c0_84, %c0_85] : memref<8x8x72xf32, #tpu.memory_space<vmem>>, vector<1x8x72xf32>
    %77 = vector.shape_cast %76 : vector<1x8x72xf32> to vector<8x72xf32>
    %cst_86 = arith.constant dense<0.000000e+00> : vector<8x768xf32>
    %78 = tpu.matmul %77, %75, %cst_86 {dimension_numbers = #tpu.dot_dimension_numbers<[1], [0], [0], [1], [0, 0, 1, 1], [], []>} : vector<8x72xf32>, vector<72x768xf32>, vector<8x768xf32> -> vector<8x768xf32>
    %c2_87 = arith.constant 2 : index
    %c0_88 = arith.constant 0 : index
    %c0_89 = arith.constant 0 : index
    %79 = vector.load %arg3[%c2_87, %c0_88, %c0_89] : memref<8x8x1xf32, #tpu.memory_space<vmem>>, vector<1x8x1xf32>
    %80 = vector.shape_cast %79 : vector<1x8x1xf32> to vector<8x1xf32>
    %81 = vector.broadcast %80 : vector<8x1xf32> to vector<8x768xf32>
    %82 = arith.addf %78, %81 : vector<8x768xf32>
    %83 = arith.addf %82, %65 : vector<8x768xf32>
    %cst_90 = arith.constant 5.000000e-01 : f32
    %84 = vector.broadcast %cst_90 : f32 to vector<8x768xf32>
    %85 = arith.mulf %84, %83 : vector<8x768xf32>
    %cst_91 = arith.constant 0.707106769 : f32
    %86 = vector.broadcast %cst_91 : f32 to vector<8x768xf32>
    %87 = arith.mulf %83, %86 : vector<8x768xf32>
    %88 = math.erf %87 : vector<8x768xf32>
    %cst_92 = arith.constant 1.000000e+00 : f32
    %89 = vector.broadcast %cst_92 : f32 to vector<8x768xf32>
    %90 = arith.addf %89, %88 : vector<8x768xf32>
    %91 = arith.mulf %85, %90 : vector<8x768xf32>
    %c2_93 = arith.constant 2 : index
    %c0_94 = arith.constant 0 : index
    %c0_95 = arith.constant 0 : index
    %92 = vector.load %arg4[%c2_93, %c0_94, %c0_95] : memref<8x1x768xf32, #tpu.memory_space<vmem>>, vector<1x1x768xf32>
    %93 = vector.shape_cast %92 : vector<1x1x768xf32> to vector<1x768xf32>
    %94 = vector.broadcast %93 : vector<1x768xf32> to vector<8x768xf32>
    %95 = arith.mulf %91, %94 : vector<8x768xf32>
    %c0_96 = arith.constant 0 : index
    %c0_97 = arith.constant 0 : index
    %96 = vector.load %arg9[%c0_96, %c0_97] : memref<8x896xf32, #tpu.memory_space<vmem>>, vector<8x768xf32>
    tpu.vector_store %arg9[%c0_96, %c0_97], %95 {strides = array<i32>} : memref<8x896xf32, #tpu.memory_space<vmem>>, vector<8x768xf32>,
    %c0_98 = arith.constant 0 : index
    %c0_99 = arith.constant 0 : index
    %97 = vector.load %arg9[%c0_98, %c0_99] : memref<8x896xf32, #tpu.memory_space<vmem>>, vector<8x768xf32>
    %c0_100 = arith.constant 0 : index
    %c1_101 = arith.constant 1 : index
    %98 = vector.load %arg9[%c0_100, %c1_101] : memref<8x896xf32, #tpu.memory_space<vmem>>, vector<8x768xf32>
    %c0_102 = arith.constant 0 : index
    %c2_103 = arith.constant 2 : index
    %99 = vector.load %arg9[%c0_102, %c2_103] : memref<8x896xf32, #tpu.memory_space<vmem>>, vector<8x768xf32>
    %c0_104 = arith.constant 0 : index
    %c32_105 = arith.constant 32 : index
    %100 = vector.load %arg9[%c0_104, %c32_105] : memref<8x896xf32, #tpu.memory_space<vmem>>, vector<8x768xf32>
    %c0_106 = arith.constant 0 : index
    %c33_107 = arith.constant 33 : index
    %101 = vector.load %arg9[%c0_106, %c33_107] : memref<8x896xf32, #tpu.memory_space<vmem>>, vector<8x768xf32>
    %c0_108 = arith.constant 0 : index
    %c34_109 = arith.constant 34 : index
    %102 = vector.load %arg9[%c0_108, %c34_109] : memref<8x896xf32, #tpu.memory_space<vmem>>, vector<8x768xf32>
    %c0_110 = arith.constant 0 : index
    %c64_111 = arith.constant 64 : index
    %103 = vector.load %arg9[%c0_110, %c64_111] : memref<8x896xf32, #tpu.memory_space<vmem>>, vector<8x768xf32>
    %c0_112 = arith.constant 0 : index
    %c65_113 = arith.constant 65 : index
    %104 = vector.load %arg9[%c0_112, %c65_113] : memref<8x896xf32, #tpu.memory_space<vmem>>, vector<8x768xf32>
    %c0_114 = arith.constant 0 : index
    %c66_115 = arith.constant 66 : index
    %105 = vector.load %arg9[%c0_114, %c66_115] : memref<8x896xf32, #tpu.memory_space<vmem>>, vector<8x768xf32>
    %106 = tpu.concatenate %97, %98, %99, %100, %101, %102, %103, %104, %105 in 0 : vector<8x768xf32>, vector<8x768xf32>, vector<8x768xf32>, vector<8x768xf32>, vector<8x768xf32>, vector<8x768xf32>, vector<8x768xf32>, vector<8x768xf32>, vector<8x768xf32> -> vector<72x768xf32>
    %c3 = arith.constant 3 : index
    %c0_116 = arith.constant 0 : index
    %c0_117 = arith.constant 0 : index
    %107 = vector.load %arg2[%c3, %c0_116, %c0_117] : memref<8x8x72xf32, #tpu.memory_space<vmem>>, vector<1x8x72xf32>
    %108 = vector.shape_cast %107 : vector<1x8x72xf32> to vector<8x72xf32>
    %cst_118 = arith.constant dense<0.000000e+00> : vector<8x768xf32>
    %109 = tpu.matmul %108, %106, %cst_118 {dimension_numbers = #tpu.dot_dimension_numbers<[1], [0], [0], [1], [0, 0, 1, 1], [], []>} : vector<8x72xf32>, vector<72x768xf32>, vector<8x768xf32> -> vector<8x768xf32>
    %c3_119 = arith.constant 3 : index
    %c0_120 = arith.constant 0 : index
    %c0_121 = arith.constant 0 : index
    %110 = vector.load %arg3[%c3_119, %c0_120, %c0_121] : memref<8x8x1xf32, #tpu.memory_space<vmem>>, vector<1x8x1xf32>
    %111 = vector.shape_cast %110 : vector<1x8x1xf32> to vector<8x1xf32>
    %112 = vector.broadcast %111 : vector<8x1xf32> to vector<8x768xf32>
    %113 = arith.addf %109, %112 : vector<8x768xf32>
    %cst_122 = arith.constant 5.000000e-01 : f32
    %114 = vector.broadcast %cst_122 : f32 to vector<8x768xf32>
    %115 = arith.mulf %114, %113 : vector<8x768xf32>
    %cst_123 = arith.constant 0.707106769 : f32
    %116 = vector.broadcast %cst_123 : f32 to vector<8x768xf32>
    %117 = arith.mulf %113, %116 : vector<8x768xf32>
    %118 = math.erf %117 : vector<8x768xf32>
    %cst_124 = arith.constant 1.000000e+00 : f32
    %119 = vector.broadcast %cst_124 : f32 to vector<8x768xf32>
    %120 = arith.addf %119, %118 : vector<8x768xf32>
    %121 = arith.mulf %115, %120 : vector<8x768xf32>
    %c3_125 = arith.constant 3 : index
    %c0_126 = arith.constant 0 : index
    %c0_127 = arith.constant 0 : index
    %122 = vector.load %arg4[%c3_125, %c0_126, %c0_127] : memref<8x1x768xf32, #tpu.memory_space<vmem>>, vector<1x1x768xf32>
    %123 = vector.shape_cast %122 : vector<1x1x768xf32> to vector<1x768xf32>
    %124 = vector.broadcast %123 : vector<1x768xf32> to vector<8x768xf32>
    %125 = arith.mulf %121, %124 : vector<8x768xf32>
    %c0_128 = arith.constant 0 : index
    %c0_129 = arith.constant 0 : index
    %126 = vector.load %arg8[%c0_128, %c0_129] : memref<8x896xf32, #tpu.memory_space<vmem>>, vector<8x768xf32>
    tpu.vector_store %arg8[%c0_128, %c0_129], %125 {strides = array<i32>} : memref<8x896xf32, #tpu.memory_space<vmem>>, vector<8x768xf32>,
    %c0_130 = arith.constant 0 : index
    %c66_131 = arith.constant 66 : index
    %127 = vector.load %arg9[%c0_130, %c66_131] : memref<8x896xf32, #tpu.memory_space<vmem>>, vector<8x768xf32>
    %c0_132 = arith.constant 0 : index
    %c0_133 = arith.constant 0 : index
    %128 = vector.load %arg8[%c0_132, %c0_133] : memref<8x896xf32, #tpu.memory_space<vmem>>, vector<8x768xf32>
    %c0_134 = arith.constant 0 : index
    %c1_135 = arith.constant 1 : index
    %129 = vector.load %arg8[%c0_134, %c1_135] : memref<8x896xf32, #tpu.memory_space<vmem>>, vector<8x768xf32>
    %c0_136 = arith.constant 0 : index
    %c2_137 = arith.constant 2 : index
    %130 = vector.load %arg8[%c0_136, %c2_137] : memref<8x896xf32, #tpu.memory_space<vmem>>, vector<8x768xf32>
    %c0_138 = arith.constant 0 : index
    %c32_139 = arith.constant 32 : index
    %131 = vector.load %arg8[%c0_138, %c32_139] : memref<8x896xf32, #tpu.memory_space<vmem>>, vector<8x768xf32>
    %c0_140 = arith.constant 0 : index
    %c33_141 = arith.constant 33 : index
    %132 = vector.load %arg8[%c0_140, %c33_141] : memref<8x896xf32, #tpu.memory_space<vmem>>, vector<8x768xf32>
    %c0_142 = arith.constant 0 : index
    %c34_143 = arith.constant 34 : index
    %133 = vector.load %arg8[%c0_142, %c34_143] : memref<8x896xf32, #tpu.memory_space<vmem>>, vector<8x768xf32>
    %c0_144 = arith.constant 0 : index
    %c64_145 = arith.constant 64 : index
    %134 = vector.load %arg8[%c0_144, %c64_145] : memref<8x896xf32, #tpu.memory_space<vmem>>, vector<8x768xf32>
    %c0_146 = arith.constant 0 : index
    %c65_147 = arith.constant 65 : index
    %135 = vector.load %arg8[%c0_146, %c65_147] : memref<8x896xf32, #tpu.memory_space<vmem>>, vector<8x768xf32>
    %c0_148 = arith.constant 0 : index
    %c66_149 = arith.constant 66 : index
    %136 = vector.load %arg8[%c0_148, %c66_149] : memref<8x896xf32, #tpu.memory_space<vmem>>, vector<8x768xf32>
    %137 = tpu.concatenate %128, %129, %130, %131, %132, %133, %134, %135, %136 in 0 : vector<8x768xf32>, vector<8x768xf32>, vector<8x768xf32>, vector<8x768xf32>, vector<8x768xf32>, vector<8x768xf32>, vector<8x768xf32>, vector<8x768xf32>, vector<8x768xf32> -> vector<72x768xf32>
    %c4 = arith.constant 4 : index
    %c0_150 = arith.constant 0 : index
    %c0_151 = arith.constant 0 : index
    %138 = vector.load %arg2[%c4, %c0_150, %c0_151] : memref<8x8x72xf32, #tpu.memory_space<vmem>>, vector<1x8x72xf32>
    %139 = vector.shape_cast %138 : vector<1x8x72xf32> to vector<8x72xf32>
    %cst_152 = arith.constant dense<0.000000e+00> : vector<8x768xf32>
    %140 = tpu.matmul %139, %137, %cst_152 {dimension_numbers = #tpu.dot_dimension_numbers<[1], [0], [0], [1], [0, 0, 1, 1], [], []>} : vector<8x72xf32>, vector<72x768xf32>, vector<8x768xf32> -> vector<8x768xf32>
    %c4_153 = arith.constant 4 : index
    %c0_154 = arith.constant 0 : index
    %c0_155 = arith.constant 0 : index
    %141 = vector.load %arg3[%c4_153, %c0_154, %c0_155] : memref<8x8x1xf32, #tpu.memory_space<vmem>>, vector<1x8x1xf32>
    %142 = vector.shape_cast %141 : vector<1x8x1xf32> to vector<8x1xf32>
    %143 = vector.broadcast %142 : vector<8x1xf32> to vector<8x768xf32>
    %144 = arith.addf %140, %143 : vector<8x768xf32>
    %145 = arith.addf %144, %127 : vector<8x768xf32>
    %cst_156 = arith.constant 5.000000e-01 : f32
    %146 = vector.broadcast %cst_156 : f32 to vector<8x768xf32>
    %147 = arith.mulf %146, %145 : vector<8x768xf32>
    %cst_157 = arith.constant 0.707106769 : f32
    %148 = vector.broadcast %cst_157 : f32 to vector<8x768xf32>
    %149 = arith.mulf %145, %148 : vector<8x768xf32>
    %150 = math.erf %149 : vector<8x768xf32>
    %cst_158 = arith.constant 1.000000e+00 : f32
    %151 = vector.broadcast %cst_158 : f32 to vector<8x768xf32>
    %152 = arith.addf %151, %150 : vector<8x768xf32>
    %153 = arith.mulf %147, %152 : vector<8x768xf32>
    %c4_159 = arith.constant 4 : index
    %c0_160 = arith.constant 0 : index
    %c0_161 = arith.constant 0 : index
    %154 = vector.load %arg4[%c4_159, %c0_160, %c0_161] : memref<8x1x768xf32, #tpu.memory_space<vmem>>, vector<1x1x768xf32>
    %155 = vector.shape_cast %154 : vector<1x1x768xf32> to vector<1x768xf32>
    %156 = vector.broadcast %155 : vector<1x768xf32> to vector<8x768xf32>
    %157 = arith.mulf %153, %156 : vector<8x768xf32>
    %c0_162 = arith.constant 0 : index
    %c0_163 = arith.constant 0 : index
    %158 = vector.load %arg9[%c0_162, %c0_163] : memref<8x896xf32, #tpu.memory_space<vmem>>, vector<8x768xf32>
    tpu.vector_store %arg9[%c0_162, %c0_163], %157 {strides = array<i32>} : memref<8x896xf32, #tpu.memory_space<vmem>>, vector<8x768xf32>,
    %c0_164 = arith.constant 0 : index
    %c0_165 = arith.constant 0 : index
    %159 = vector.load %arg9[%c0_164, %c0_165] : memref<8x896xf32, #tpu.memory_space<vmem>>, vector<8x768xf32>
    %c0_166 = arith.constant 0 : index
    %c1_167 = arith.constant 1 : index
    %160 = vector.load %arg9[%c0_166, %c1_167] : memref<8x896xf32, #tpu.memory_space<vmem>>, vector<8x768xf32>
    %c0_168 = arith.constant 0 : index
    %c2_169 = arith.constant 2 : index
    %161 = vector.load %arg9[%c0_168, %c2_169] : memref<8x896xf32, #tpu.memory_space<vmem>>, vector<8x768xf32>
    %c0_170 = arith.constant 0 : index
    %c32_171 = arith.constant 32 : index
    %162 = vector.load %arg9[%c0_170, %c32_171] : memref<8x896xf32, #tpu.memory_space<vmem>>, vector<8x768xf32>
    %c0_172 = arith.constant 0 : index
    %c33_173 = arith.constant 33 : index
    %163 = vector.load %arg9[%c0_172, %c33_173] : memref<8x896xf32, #tpu.memory_space<vmem>>, vector<8x768xf32>
    %c0_174 = arith.constant 0 : index
    %c34_175 = arith.constant 34 : index
    %164 = vector.load %arg9[%c0_174, %c34_175] : memref<8x896xf32, #tpu.memory_space<vmem>>, vector<8x768xf32>
    %c0_176 = arith.constant 0 : index
    %c64_177 = arith.constant 64 : index
    %165 = vector.load %arg9[%c0_176, %c64_177] : memref<8x896xf32, #tpu.memory_space<vmem>>, vector<8x768xf32>
    %c0_178 = arith.constant 0 : index
    %c65_179 = arith.constant 65 : index
    %166 = vector.load %arg9[%c0_178, %c65_179] : memref<8x896xf32, #tpu.memory_space<vmem>>, vector<8x768xf32>
    %c0_180 = arith.constant 0 : index
    %c66_181 = arith.constant 66 : index
    %167 = vector.load %arg9[%c0_180, %c66_181] : memref<8x896xf32, #tpu.memory_space<vmem>>, vector<8x768xf32>
    %168 = tpu.concatenate %159, %160, %161, %162, %163, %164, %165, %166, %167 in 0 : vector<8x768xf32>, vector<8x768xf32>, vector<8x768xf32>, vector<8x768xf32>, vector<8x768xf32>, vector<8x768xf32>, vector<8x768xf32>, vector<8x768xf32>, vector<8x768xf32> -> vector<72x768xf32>
    %c5 = arith.constant 5 : index
    %c0_182 = arith.constant 0 : index
    %c0_183 = arith.constant 0 : index
    %169 = vector.load %arg2[%c5, %c0_182, %c0_183] : memref<8x8x72xf32, #tpu.memory_space<vmem>>, vector<1x8x72xf32>
    %170 = vector.shape_cast %169 : vector<1x8x72xf32> to vector<8x72xf32>
    %cst_184 = arith.constant dense<0.000000e+00> : vector<8x768xf32>
    %171 = tpu.matmul %170, %168, %cst_184 {dimension_numbers = #tpu.dot_dimension_numbers<[1], [0], [0], [1], [0, 0, 1, 1], [], []>} : vector<8x72xf32>, vector<72x768xf32>, vector<8x768xf32> -> vector<8x768xf32>
    %c5_185 = arith.constant 5 : index
    %c0_186 = arith.constant 0 : index
    %c0_187 = arith.constant 0 : index
    %172 = vector.load %arg3[%c5_185, %c0_186, %c0_187] : memref<8x8x1xf32, #tpu.memory_space<vmem>>, vector<1x8x1xf32>
    %173 = vector.shape_cast %172 : vector<1x8x1xf32> to vector<8x1xf32>
    %174 = vector.broadcast %173 : vector<8x1xf32> to vector<8x768xf32>
    %175 = arith.addf %171, %174 : vector<8x768xf32>
    %cst_188 = arith.constant 5.000000e-01 : f32
    %176 = vector.broadcast %cst_188 : f32 to vector<8x768xf32>
    %177 = arith.mulf %176, %175 : vector<8x768xf32>
    %cst_189 = arith.constant 0.707106769 : f32
    %178 = vector.broadcast %cst_189 : f32 to vector<8x768xf32>
    %179 = arith.mulf %175, %178 : vector<8x768xf32>
    %180 = math.erf %179 : vector<8x768xf32>
    %cst_190 = arith.constant 1.000000e+00 : f32
    %181 = vector.broadcast %cst_190 : f32 to vector<8x768xf32>
    %182 = arith.addf %181, %180 : vector<8x768xf32>
    %183 = arith.mulf %177, %182 : vector<8x768xf32>
    %c5_191 = arith.constant 5 : index
    %c0_192 = arith.constant 0 : index
    %c0_193 = arith.constant 0 : index
    %184 = vector.load %arg4[%c5_191, %c0_192, %c0_193] : memref<8x1x768xf32, #tpu.memory_space<vmem>>, vector<1x1x768xf32>
    %185 = vector.shape_cast %184 : vector<1x1x768xf32> to vector<1x768xf32>
    %186 = vector.broadcast %185 : vector<1x768xf32> to vector<8x768xf32>
    %187 = arith.mulf %183, %186 : vector<8x768xf32>
    %c0_194 = arith.constant 0 : index
    %c0_195 = arith.constant 0 : index
    %188 = vector.load %arg8[%c0_194, %c0_195] : memref<8x896xf32, #tpu.memory_space<vmem>>, vector<8x768xf32>
    tpu.vector_store %arg8[%c0_194, %c0_195], %187 {strides = array<i32>} : memref<8x896xf32, #tpu.memory_space<vmem>>, vector<8x768xf32>,
    %c0_196 = arith.constant 0 : index
    %c66_197 = arith.constant 66 : index
    %189 = vector.load %arg9[%c0_196, %c66_197] : memref<8x896xf32, #tpu.memory_space<vmem>>, vector<8x768xf32>
    %c0_198 = arith.constant 0 : index
    %c0_199 = arith.constant 0 : index
    %190 = vector.load %arg8[%c0_198, %c0_199] : memref<8x896xf32, #tpu.memory_space<vmem>>, vector<8x768xf32>
    %c0_200 = arith.constant 0 : index
    %c1_201 = arith.constant 1 : index
    %191 = vector.load %arg8[%c0_200, %c1_201] : memref<8x896xf32, #tpu.memory_space<vmem>>, vector<8x768xf32>
    %c0_202 = arith.constant 0 : index
    %c2_203 = arith.constant 2 : index
    %192 = vector.load %arg8[%c0_202, %c2_203] : memref<8x896xf32, #tpu.memory_space<vmem>>, vector<8x768xf32>
    %c0_204 = arith.constant 0 : index
    %c32_205 = arith.constant 32 : index
    %193 = vector.load %arg8[%c0_204, %c32_205] : memref<8x896xf32, #tpu.memory_space<vmem>>, vector<8x768xf32>
    %c0_206 = arith.constant 0 : index
    %c33_207 = arith.constant 33 : index
    %194 = vector.load %arg8[%c0_206, %c33_207] : memref<8x896xf32, #tpu.memory_space<vmem>>, vector<8x768xf32>
    %c0_208 = arith.constant 0 : index
    %c34_209 = arith.constant 34 : index
    %195 = vector.load %arg8[%c0_208, %c34_209] : memref<8x896xf32, #tpu.memory_space<vmem>>, vector<8x768xf32>
    %c0_210 = arith.constant 0 : index
    %c64_211 = arith.constant 64 : index
    %196 = vector.load %arg8[%c0_210, %c64_211] : memref<8x896xf32, #tpu.memory_space<vmem>>, vector<8x768xf32>
    %c0_212 = arith.constant 0 : index
    %c65_213 = arith.constant 65 : index
    %197 = vector.load %arg8[%c0_212, %c65_213] : memref<8x896xf32, #tpu.memory_space<vmem>>, vector<8x768xf32>
    %c0_214 = arith.constant 0 : index
    %c66_215 = arith.constant 66 : index
    %198 = vector.load %arg8[%c0_214, %c66_215] : memref<8x896xf32, #tpu.memory_space<vmem>>, vector<8x768xf32>
    %199 = tpu.concatenate %190, %191, %192, %193, %194, %195, %196, %197, %198 in 0 : vector<8x768xf32>, vector<8x768xf32>, vector<8x768xf32>, vector<8x768xf32>, vector<8x768xf32>, vector<8x768xf32>, vector<8x768xf32>, vector<8x768xf32>, vector<8x768xf32> -> vector<72x768xf32>
    %c6 = arith.constant 6 : index
    %c0_216 = arith.constant 0 : index
    %c0_217 = arith.constant 0 : index
    %200 = vector.load %arg2[%c6, %c0_216, %c0_217] : memref<8x8x72xf32, #tpu.memory_space<vmem>>, vector<1x8x72xf32>
    %201 = vector.shape_cast %200 : vector<1x8x72xf32> to vector<8x72xf32>
    %cst_218 = arith.constant dense<0.000000e+00> : vector<8x768xf32>
    %202 = tpu.matmul %201, %199, %cst_218 {dimension_numbers = #tpu.dot_dimension_numbers<[1], [0], [0], [1], [0, 0, 1, 1], [], []>} : vector<8x72xf32>, vector<72x768xf32>, vector<8x768xf32> -> vector<8x768xf32>
    %c6_219 = arith.constant 6 : index
    %c0_220 = arith.constant 0 : index
    %c0_221 = arith.constant 0 : index
    %203 = vector.load %arg3[%c6_219, %c0_220, %c0_221] : memref<8x8x1xf32, #tpu.memory_space<vmem>>, vector<1x8x1xf32>
    %204 = vector.shape_cast %203 : vector<1x8x1xf32> to vector<8x1xf32>
    %205 = vector.broadcast %204 : vector<8x1xf32> to vector<8x768xf32>
    %206 = arith.addf %202, %205 : vector<8x768xf32>
    %207 = arith.addf %206, %189 : vector<8x768xf32>
    %cst_222 = arith.constant 5.000000e-01 : f32
    %208 = vector.broadcast %cst_222 : f32 to vector<8x768xf32>
    %209 = arith.mulf %208, %207 : vector<8x768xf32>
    %cst_223 = arith.constant 0.707106769 : f32
    %210 = vector.broadcast %cst_223 : f32 to vector<8x768xf32>
    %211 = arith.mulf %207, %210 : vector<8x768xf32>
    %212 = math.erf %211 : vector<8x768xf32>
    %cst_224 = arith.constant 1.000000e+00 : f32
    %213 = vector.broadcast %cst_224 : f32 to vector<8x768xf32>
    %214 = arith.addf %213, %212 : vector<8x768xf32>
    %215 = arith.mulf %209, %214 : vector<8x768xf32>
    %c6_225 = arith.constant 6 : index
    %c0_226 = arith.constant 0 : index
    %c0_227 = arith.constant 0 : index
    %216 = vector.load %arg4[%c6_225, %c0_226, %c0_227] : memref<8x1x768xf32, #tpu.memory_space<vmem>>, vector<1x1x768xf32>
    %217 = vector.shape_cast %216 : vector<1x1x768xf32> to vector<1x768xf32>
    %218 = vector.broadcast %217 : vector<1x768xf32> to vector<8x768xf32>
    %219 = arith.mulf %215, %218 : vector<8x768xf32>
    %c0_228 = arith.constant 0 : index
    %c0_229 = arith.constant 0 : index
    %220 = vector.load %arg9[%c0_228, %c0_229] : memref<8x896xf32, #tpu.memory_space<vmem>>, vector<8x768xf32>
    tpu.vector_store %arg9[%c0_228, %c0_229], %219 {strides = array<i32>} : memref<8x896xf32, #tpu.memory_space<vmem>>, vector<8x768xf32>,
    %c0_230 = arith.constant 0 : index
    %c0_231 = arith.constant 0 : index
    %221 = vector.load %arg9[%c0_230, %c0_231] : memref<8x896xf32, #tpu.memory_space<vmem>>, vector<8x768xf32>
    %c0_232 = arith.constant 0 : index
    %c1_233 = arith.constant 1 : index
    %222 = vector.load %arg9[%c0_232, %c1_233] : memref<8x896xf32, #tpu.memory_space<vmem>>, vector<8x768xf32>
    %c0_234 = arith.constant 0 : index
    %c2_235 = arith.constant 2 : index
    %223 = vector.load %arg9[%c0_234, %c2_235] : memref<8x896xf32, #tpu.memory_space<vmem>>, vector<8x768xf32>
    %c0_236 = arith.constant 0 : index
    %c32_237 = arith.constant 32 : index
    %224 = vector.load %arg9[%c0_236, %c32_237] : memref<8x896xf32, #tpu.memory_space<vmem>>, vector<8x768xf32>
    %c0_238 = arith.constant 0 : index
    %c33_239 = arith.constant 33 : index
    %225 = vector.load %arg9[%c0_238, %c33_239] : memref<8x896xf32, #tpu.memory_space<vmem>>, vector<8x768xf32>
    %c0_240 = arith.constant 0 : index
    %c34_241 = arith.constant 34 : index
    %226 = vector.load %arg9[%c0_240, %c34_241] : memref<8x896xf32, #tpu.memory_space<vmem>>, vector<8x768xf32>
    %c0_242 = arith.constant 0 : index
    %c64_243 = arith.constant 64 : index
    %227 = vector.load %arg9[%c0_242, %c64_243] : memref<8x896xf32, #tpu.memory_space<vmem>>, vector<8x768xf32>
    %c0_244 = arith.constant 0 : index
    %c65_245 = arith.constant 65 : index
    %228 = vector.load %arg9[%c0_244, %c65_245] : memref<8x896xf32, #tpu.memory_space<vmem>>, vector<8x768xf32>
    %c0_246 = arith.constant 0 : index
    %c66_247 = arith.constant 66 : index
    %229 = vector.load %arg9[%c0_246, %c66_247] : memref<8x896xf32, #tpu.memory_space<vmem>>, vector<8x768xf32>
    %230 = tpu.concatenate %221, %222, %223, %224, %225, %226, %227, %228, %229 in 0 : vector<8x768xf32>, vector<8x768xf32>, vector<8x768xf32>, vector<8x768xf32>, vector<8x768xf32>, vector<8x768xf32>, vector<8x768xf32>, vector<8x768xf32>, vector<8x768xf32> -> vector<72x768xf32>
    %c7 = arith.constant 7 : index
    %c0_248 = arith.constant 0 : index
    %c0_249 = arith.constant 0 : index
    %231 = vector.load %arg2[%c7, %c0_248, %c0_249] : memref<8x8x72xf32, #tpu.memory_space<vmem>>, vector<1x8x72xf32>
    %232 = vector.shape_cast %231 : vector<1x8x72xf32> to vector<8x72xf32>
    %cst_250 = arith.constant dense<0.000000e+00> : vector<8x768xf32>
    %233 = tpu.matmul %232, %230, %cst_250 {dimension_numbers = #tpu.dot_dimension_numbers<[1], [0], [0], [1], [0, 0, 1, 1], [], []>} : vector<8x72xf32>, vector<72x768xf32>, vector<8x768xf32> -> vector<8x768xf32>
    %c7_251 = arith.constant 7 : index
    %c0_252 = arith.constant 0 : index
    %c0_253 = arith.constant 0 : index
    %234 = vector.load %arg3[%c7_251, %c0_252, %c0_253] : memref<8x8x1xf32, #tpu.memory_space<vmem>>, vector<1x8x1xf32>
    %235 = vector.shape_cast %234 : vector<1x8x1xf32> to vector<8x1xf32>
    %236 = vector.broadcast %235 : vector<8x1xf32> to vector<8x768xf32>
    %237 = arith.addf %233, %236 : vector<8x768xf32>
    %cst_254 = arith.constant 5.000000e-01 : f32
    %238 = vector.broadcast %cst_254 : f32 to vector<8x768xf32>
    %239 = arith.mulf %238, %237 : vector<8x768xf32>
    %cst_255 = arith.constant 0.707106769 : f32
    %240 = vector.broadcast %cst_255 : f32 to vector<8x768xf32>
    %241 = arith.mulf %237, %240 : vector<8x768xf32>
    %242 = math.erf %241 : vector<8x768xf32>
    %cst_256 = arith.constant 1.000000e+00 : f32
    %243 = vector.broadcast %cst_256 : f32 to vector<8x768xf32>
    %244 = arith.addf %243, %242 : vector<8x768xf32>
    %245 = arith.mulf %239, %244 : vector<8x768xf32>
    %c7_257 = arith.constant 7 : index
    %c0_258 = arith.constant 0 : index
    %c0_259 = arith.constant 0 : index
    %246 = vector.load %arg4[%c7_257, %c0_258, %c0_259] : memref<8x1x768xf32, #tpu.memory_space<vmem>>, vector<1x1x768xf32>
    %247 = vector.shape_cast %246 : vector<1x1x768xf32> to vector<1x768xf32>
    %248 = vector.broadcast %247 : vector<1x768xf32> to vector<8x768xf32>
    %249 = arith.mulf %245, %248 : vector<8x768xf32>
    %c0_260 = arith.constant 0 : index
    %c0_261 = arith.constant 0 : index
    %250 = vector.load %arg5[%c0_260, %c0_261] : memref<2x8xf32, #tpu.memory_space<vmem>>, vector<2x8xf32>
    %cst_262 = arith.constant 0.00308641978 : f32
    %251 = vector.broadcast %cst_262 : f32 to vector<2x8xf32>
    %252 = arith.mulf %250, %251 : vector<2x8xf32>
    %cst_263 = arith.constant dense<0.000000e+00> : vector<2x768xf32>
    %253 = tpu.matmul %252, %249, %cst_263 {dimension_numbers = #tpu.dot_dimension_numbers<[1], [0], [0], [1], [0, 0, 1, 1], [], []>} : vector<2x8xf32>, vector<8x768xf32>, vector<2x768xf32> -> vector<2x768xf32>
    %cst_264 = arith.constant dense<0.000000e+00> : vector<2xf32>
    %254 = vector.multi_reduction <add>, %253, %cst_264 [1] : vector<2x768xf32> to vector<2xf32>
    %255 = vector.shape_cast %254 : vector<2xf32> to vector<2x1xf32>
    %c0_265 = arith.constant 0 : index
    %c0_266 = arith.constant 0 : index
    %256 = vector.load %arg6[%c0_265, %c0_266] : memref<2x1xf32, #tpu.memory_space<vmem>>, vector<2x1xf32>
    %257 = arith.addf %255, %256 : vector<2x1xf32>
    %258 = vector.shape_cast %257 : vector<2x1xf32> to vector<1x2x1xf32>
    %c0_267 = arith.constant 0 : index
    %c0_268 = arith.constant 0 : index
    %c0_269 = arith.constant 0 : index
    %259 = vector.load %arg7[%c0_267, %c0_268, %c0_269] : memref<1x2x1xf32, #tpu.memory_space<vmem>>, vector<1x2x1xf32>
    tpu.vector_store %arg7[%c0_267, %c0_268, %c0_269], %258 {strides = array<i32>} : memref<1x2x1xf32, #tpu.memory_space<vmem>>, vector<1x2x1xf32>,
    return
  }
  func.func @transform_0(%arg0: i32) -> (i32, i32, i32) {
    %c0_i32 = arith.constant 0 : i32
    %c0_i32_0 = arith.constant 0 : i32
    %c0_i32_1 = arith.constant 0 : i32
    return %arg0, %c0_i32, %c0_i32_0 : i32, i32, i32
  }
  func.func @transform_1(%arg0: i32) -> (i32, i32, i32) {
    %c0_i32 = arith.constant 0 : i32
    %c0_i32_0 = arith.constant 0 : i32
    %c0_i32_1 = arith.constant 0 : i32
    %c0_i32_2 = arith.constant 0 : i32
    return %c0_i32, %c0_i32_0, %c0_i32_1 : i32, i32, i32
  }
  func.func @transform_2(%arg0: i32) -> (i32, i32, i32) {
    %c0_i32 = arith.constant 0 : i32
    %c0_i32_0 = arith.constant 0 : i32
    %c0_i32_1 = arith.constant 0 : i32
    %c0_i32_2 = arith.constant 0 : i32
    return %c0_i32, %c0_i32_0, %c0_i32_1 : i32, i32, i32
  }
  func.func @transform_3(%arg0: i32) -> (i32, i32, i32) {
    %c0_i32 = arith.constant 0 : i32
    %c0_i32_0 = arith.constant 0 : i32
    %c0_i32_1 = arith.constant 0 : i32
    %c0_i32_2 = arith.constant 0 : i32
    return %c0_i32, %c0_i32_0, %c0_i32_1 : i32, i32, i32
  }
  func.func @transform_4(%arg0: i32) -> (i32, i32) {
    %c0_i32 = arith.constant 0 : i32
    %c0_i32_0 = arith.constant 0 : i32
    %c0_i32_1 = arith.constant 0 : i32
    return %c0_i32, %c0_i32_0 : i32, i32
  }
  func.func @transform_5(%arg0: i32) -> (i32, i32) {
    %c0_i32 = arith.constant 0 : i32
    %c0_i32_0 = arith.constant 0 : i32
    %c0_i32_1 = arith.constant 0 : i32
    return %c0_i32, %c0_i32_0 : i32, i32
  }
  func.func @transform_6(%arg0: i32) -> (i32, i32, i32) {
    %c0_i32 = arith.constant 0 : i32
    %c0_i32_0 = arith.constant 0 : i32
    %c0_i32_1 = arith.constant 0 : i32
    return %arg0, %c0_i32, %c0_i32_0 : i32, i32, i32
  }
}

</mosaic_0001>

<bundles_post_ra>
// kernel: resnet_forward.1
= control target key start
LH: loop header
LB: loop body
LE: loop exit
PB: predicated region body
PF: predicated region fallthrough
CT: control target
= control target key end

     0   :  { %s6371_s21 = smov 0   ;;  %s8469_s0 = inlined_call_operand.vmem [shape: f32[2,8,896], index: 0, kind: input, shape index: {}]   ;;  %s8470_s1 = inlined_call_operand.vmem [shape: f32[8,8,72], index: 1, kind: input, shape index: {}]   ;;  %s8471_s2 = inlined_call_operand.vmem [shape: f32[8,8,1], index: 2, kind: input, shape index: {}]   ;;  %s8472_s3 = inlined_call_operand.vmem [shape: f32[8,1,768], index: 3, kind: input, shape index: {}]   ;;  %s8473_s4 = inlined_call_operand.vmem [shape: f32[2,8], index: 4, kind: input, shape index: {}]   ;;  %s8474_s5 = inlined_call_operand.vmem [shape: f32[2,1], index: 5, kind: input, shape index: {}]   ;;  %s8475_s6 = inlined_call_operand.vmem [shape: f32[2,2,1], index: 6, kind: output, shape index: {}]  }
   0x1 LB: > { %s4917_s22 = sadd.s32 4294967295, %s6324_s21   ;;  %p4921_p0 = scmp.ge.s32.totalorder %s6324_s21, 1  ;;  %s6324_s21 = sphi %s6371_s21, %s16_s21  }
   0x2   : > { %p212_p1 = scmp.lt.s32.totalorder %s6324_s21, 3 }
   0x4   : > { %p213_p2 = pnand %p4921_p0, %p212_p1 }
   0x5   : > { %p241_p3 = scmp.lt.s32.totalorder (!%p213_p2), %s4917_s22, 1  ;;  %s6326_s27 = smov (!%p213_p2), 127   ;;  %v6333_v10 = vmov (!%p213_p2), 0.0   ;;  %v6335_v12 = vmov (!%p213_p2), 0   ;;  %v502_v13 = vld [vmem:[%s8471_s2] sm:$0xff] (!%p213_p2)  ;;  %vm299_vm0 = vcmask (!%p213_p2), 1039360  }
   0x6   : > { %216 = sbr.rel (%p213_p2) target bundleno = 3662 (0xe4e), region = 44  ;;  %s6327_s28 = smov (!%p213_p2), 126   ;;  %576 = vmatprep.mubr.f32.mxu0 (!%p213_p2), %v6333_v10  ;;  %647 = vmatprep.mubr.f32.mxu1 (!%p213_p2), %v6333_v10  ;;  %vm326_vm1 = vcmask (!%p213_p2), 1031168   ;;  %vm353_vm2 = vcmask (!%p213_p2), 785408   ;;  %vm380_vm3 = vcmask (!%p213_p2), 777216   ;;  %vm407_vm4 = vcmask (!%p213_p2), 769024  }
   0x7   : > { %s6328_s29 = smov (!%p213_p2), 96   ;;  %s6329_s30 = smov (!%p213_p2), 95   ;;  %5798 = vset.pattern.permute.xlu0 (!%p213_p2), %v6335_v12  ;;  %5482 = vset.pattern.permute.xlu1 (!%p213_p2), %v6335_v12  ;;  %vm434_vm5 = vcmask (!%p213_p2), 523264   ;;  %vm461_vm6 = vcmask (!%p213_p2), 515072   ;;  %vm488_vm7 = vcmask (!%p213_p2), 506880   ;;  %vm508_vm8 = vcmask (!%p213_p2), 588800  }
   0x8   : > { %s6330_s7 = smov (!%p213_p2), 94   ;;  %s6331_s8 = smov (!%p213_p2), 64   ;;  %vm4629_vm9 = vcmask (!%p213_p2), 64512   ;;  %vm4846_vm10 = vcmask (!%p213_p2), 1041408   ;;  %vm4862_vm11 = vcmask (!%p213_p2), 1024  }
   0x9   : > { %s6332_s9 = smov (!%p213_p2), 63   ;;  %s6334_s10 = smov (!%p213_p2), 62  }
   0xd   : > { %s8477_s22 = smov (!%p241_p3, %s4917_s22), 1 }
   0xe   : > { %s5358_s23 = smul.u32 56, %s8477_s22  ;;  %s4923_s13 = sshll.u32 %s8477_s22, 1 }
   0xf   : > { %s249_s18 = scalar_lea.vmem %s8475_s6, %s4923_s13 }
  0x10   : > { %s6385_s26 = scalar_lea.vmem %s8469_s0, %s5358_s23 }
  0x11   : > { %v6388_v0 = vld [vmem:[%s6385_s26 + $0x20] sm:$0xff]  ;;  %v6391_v1 = vld [vmem:[%s6385_s26 + $0x28] sm:$0xff]  ;;  %v6399_v4 = vld [vmem:[%s6385_s26 + $0x10] sm:$0xff] }
  0x12   : > { %v5387_v2 = vpack.i.bf16 %v6391_v1, %v6388_v0  ;;  %v6396_v3 = vld [vmem:[%s6385_s26 + $0x8] sm:$0xff]  ;;  %v6402_v5 = vld [vmem:[%s6385_s26] sm:$0xff]  ;;  %v6407_v7 = vld [vmem:[%s6385_s26 + $0x18] sm:$0xff] }
  0x13   : > { %v5377_v6 = vpack.i.bf16 %v6399_v4, %v6396_v3  ;;  %v5382_v8 = vpack.i.bf16 %v6407_v7, %v6402_v5  ;;  %v256_v9 = vld [vmem:[%s6385_s26 + $0x30] sm:$0xff] }
  0x14   : > { %5388 = vrot.lane.b32.xlu1 %v5387_v2, %s6326_s27  ;;  %v5462_v11 = vpack.i.bf16 %v256_v9, %v6391_v1 }
  0x15   : > { %5378 = vrot.lane.b32.xlu0 %v5377_v6, %s6326_s27 }
  0x18   : > { %5393 = vrot.lane.b32.xlu1 %v5377_v6, %s6327_s28 }
  0x19   : > { %5383 = vrot.lane.b32.xlu0 %v5382_v8, %s6326_s27 }
  0x1c   : > { %5403 = vrot.lane.b32.xlu1 %v5382_v8, %s6327_s28 }
  0x1d   : > { %5398 = vrot.lane.b32.xlu0 %v5377_v6, %s6328_s29 }
  0x20   : > { %5413 = vrot.lane.b32.xlu1 %v5387_v2, %s6327_s28 }
  0x21   : > { %5408 = vrot.lane.b32.xlu0 %v5382_v8, %s6328_s29 }
  0x24   : > { %5423 = vrot.lane.b32.xlu1 %v5377_v6, %s6329_s30 }
  0x25   : > { %5418 = vrot.lane.b32.xlu0 %v5387_v2, %s6328_s29 }
  0x28   : > { %5433 = vrot.lane.b32.xlu1 %v5382_v8, %s6329_s30 }
  0x29   : > { %5428 = vrot.lane.b32.xlu0 %v5377_v6, %s6330_s7 }
  0x2c   : > { %374 = vrot.lane.b32.xlu1 %v6388_v0, %s6329_s30 }
  0x2d   : > { %5438 = vrot.lane.b32.xlu0 %v5382_v8, %s6330_s7 }
  0x30   : > { %5443 = vrot.lane.b32.xlu1 %v5377_v6, %s6331_s8 }
  0x31   : > { %401 = vrot.lane.b32.xlu0 %v6388_v0, %s6330_s7 }
  0x34   : > { %5453 = vrot.lane.b32.xlu1 %v5382_v8, %s6331_s8 }
  0x35   : > { %5448 = vrot.lane.b32.xlu0 %v5377_v6, %s6332_s9 }
  0x38   : > { %428 = vrot.lane.b32.xlu1 %v6388_v0, %s6331_s8 }
  0x39   : > { %5458 = vrot.lane.b32.xlu0 %v5382_v8, %s6332_s9 }
  0x3c   : > { %297 = vrot.lane.b32.xlu1 %v256_v9, %s6326_s27 }
  0x3d   : > { %455 = vrot.lane.b32.xlu0 %v6388_v0, %s6332_s9 }
  0x40   : > { %478 = vrot.lane.b32.xlu1 %v6399_v4, %s6334_s10 }
  0x41   : > { %476 = vrot.lane.b32.xlu0 %v6396_v3, %s6334_s10 }
  0x44   : > { %324 = vrot.lane.b32.xlu1 %v256_v9, %s6327_s28 }
  0x45   : > { %474 = vrot.lane.b32.xlu0 %v6402_v5, %s6334_s10 }
  0x48   : > { %480 = vrot.lane.b32.xlu1 %v6407_v7, %s6334_s10 }
  0x49   : > { %351 = vrot.lane.b32.xlu0 %v256_v9, %s6328_s29 }
  0x4c   : > { %5463 = vrot.lane.b32.xlu1 %v5462_v11, %s6329_s30 }
  0x4d   : > { %482 = vrot.lane.b32.xlu0 %v6388_v0, %s6334_s10 }
  0x50   : > { %5473 = vrot.lane.b32.xlu1 %v5462_v11, %s6331_s8 }
  0x51   : > { %5468 = vrot.lane.b32.xlu0 %v5462_v11, %s6330_s7 }
  0x54   : > { %484 = vrot.lane.b32.xlu1 %v6391_v1, %s6334_s10 }
  0x55   : > { %5478 = vrot.lane.b32.xlu0 %v5462_v11, %s6332_s9 }
  0x58   : > { %505 = vperm.xlu1 %5482, %v502_v13  }
  0x59   : > { %486 = vrot.lane.b32.xlu0 %v256_v9, %s6334_s10 }
  0x5c   : > { %831 = vrot.lane.b32.xlu1 %v6333_v10, %s6326_s27 }
  0x5d   : > { %883 = vrot.lane.b32.xlu0 %v6333_v10, %s6328_s29 }
  0x60   : > { %857 = vrot.lane.b32.xlu1 %v6333_v10, %s6327_s28 }
  0x61   : > { %935 = vrot.lane.b32.xlu0 %v6333_v10, %s6330_s7 }
  0x64   : > { %909 = vrot.lane.b32.xlu1 %v6333_v10, %s6329_s30 }
  0x86   : > { %v6473_v14 = vpop.permute.xlu1 %5388 }
  0x87   : > { %v5379_v15 = vpop.permute.xlu0 %5378  ;;  %v5390_v18 = vunpack.i.l.bf16 %v6473_v14 }
  0x88   : > { %v5381_v16 = vunpack.i.h.bf16 %v5379_v15  ;;  %v5380_v17 = vunpack.i.l.bf16 %v5379_v15 }
  0x8a   : > { %v5394_v19 = vpop.permute.xlu1 %5393  ;;  %v301_v20 = vsel %vm299_vm0, %v5380_v17, %v5381_v16 }
  0x8b   : > { %v5384_v21 = vpop.permute.xlu0 %5383  ;;  %v4974_v22 = vpack.c.bf16 %v301_v20, %v6396_v3  ;;  %v5396_v23 = vunpack.i.h.bf16 %v5394_v19  ;;  %v5395_v24 = vunpack.i.l.bf16 %v5394_v19 }
  0x8c   : > { %v5386_v25 = vunpack.i.h.bf16 %v5384_v21  ;;  %v5385_v26 = vunpack.i.l.bf16 %v5384_v21 }
  0x8d   : > { %4975 = vmatprep.subr.bf16.mxu0 %v4974_v22  ;;  %v328_v37 = vsel %vm326_vm1, %v5395_v24, %v5396_v23 }
  0x8e   : > { %v5404_v27 = vpop.permute.xlu1 %5403  ;;  %v300_v28 = vsel %vm299_vm0, %v5385_v26, %v5380_v17  ;;  %v303_v29 = vsel %vm299_vm0, %v5386_v25, %v5390_v18  ;;  %v302_v30 = vsel %vm299_vm0, %v5381_v16, %v5386_v25 }
  0x8f   : > { %v5399_v31 = vpop.permute.xlu0 %5398  ;;  %v4976_v32 = vpack.c.bf16 %v300_v28, %v6402_v5  ;;  %v4990_v33 = vpack.c.bf16 %v303_v29, %v6407_v7  ;;  %v4992_v36 = vpack.c.bf16 %v302_v30, %v6399_v4  ;;  %v5405_v38 = vunpack.i.l.bf16 %v5404_v27 }
  0x90   : > { %v5401_v34 = vunpack.i.h.bf16 %v5399_v31  ;;  %v5400_v35 = vunpack.i.l.bf16 %v5399_v31  ;;  %v5406_v49 = vunpack.i.h.bf16 %v5404_v27 }
  0x91   : > { %4977 = vmatpush1.bf16.msra.mxu0 %v4976_v32  ;;  %4991 = vmatprep.subr.bf16.mxu1 %v4990_v33  ;;  %v327_v47 = vsel %vm326_vm1, %v5405_v38, %v5395_v24 }
  0x92   : > { %4993 = vmatpush1.bf16.msra.mxu1 %v4992_v36  ;;  %v6487_v39 = vpop.permute.xlu1 %5413  ;;  %v355_v40 = vsel %vm353_vm2, %v5400_v35, %v5401_v34  ;;  %v329_v61 = vsel %vm326_vm1, %v5396_v23, %v5406_v49 }
  0x93   : > { %v5409_v41 = vpop.permute.xlu0 %5408  ;;  %v4978_v42 = vpack.c.bf16 %v355_v40, %v328_v37  ;;  %v5415_v45 = vunpack.i.l.bf16 %v6487_v39 }
  0x94   : > { %v5410_v43 = vunpack.i.l.bf16 %v5409_v41  ;;  %v5411_v44 = vunpack.i.h.bf16 %v5409_v41 }
  0x95   : > { %4979 = vmatprep.subr.bf16.mxu0 %v4978_v42  ;;  %v330_v57 = vsel %vm326_vm1, %v5406_v49, %v5415_v45 }
  0x96   : > { %v5424_v46 = vpop.permute.xlu1 %5423  ;;  %v354_v48 = vsel %vm353_vm2, %v5410_v43, %v5400_v35  ;;  %v356_v55 = vsel %vm353_vm2, %v5401_v34, %v5411_v44 }
  0x97   : > { %v6493_v50 = vpop.permute.xlu0 %5418  ;;  %v4980_v51 = vpack.c.bf16 %v354_v48, %v327_v47  ;;  %v5426_v52 = vunpack.i.h.bf16 %v5424_v46  ;;  %v5425_v53 = vunpack.i.l.bf16 %v5424_v46  ;;  %v4996_v2 = vpack.c.bf16 %v356_v55, %v329_v61 }
  0x98   : > { %v5420_v54 = vunpack.i.l.bf16 %v6493_v50  ;;  %v5391_v55 = vunpack.i.h.bf16 %v6473_v14 }
  0x99   : > { %4981 = vmatpush1.bf16.msra.mxu0 %v4980_v51  ;;  %v382_v3 = vsel %vm380_vm3, %v5425_v53, %v5426_v52 }
  0x9a   : > { %v5434_v56 = vpop.permute.xlu1 %5433  ;;  %v357_v58 = vsel %vm353_vm2, %v5411_v44, %v5420_v54  ;;  %v304_v61 = vsel %vm299_vm0, %v5390_v18, %v5391_v55 }
  0x9b   : > { %v5429_v59 = vpop.permute.xlu0 %5428  ;;  %v4994_v60 = vpack.c.bf16 %v357_v58, %v330_v57  ;;  %v5435_v4 = vunpack.i.l.bf16 %v5434_v56  ;;  %v5436_v12 = vunpack.i.h.bf16 %v5434_v56  ;;  %v5008_v14 = vpack.c.bf16 %v304_v61, %v6388_v0  ;;  %v6581_v61 = vld [vmem:[%s8472_s3] sm:$0x3f] }
  0x9c   : > { %v5431_v62 = vunpack.i.h.bf16 %v5429_v59  ;;  %v5430_v63 = vunpack.i.l.bf16 %v5429_v59 }
  0x9d   : > { %4995 = vmatprep.subr.bf16.mxu1 %v4994_v60  ;;  %v381_v15 = vsel %vm380_vm3, %v5435_v4, %v5425_v53  ;;  %v383_v26 = vsel %vm380_vm3, %v5426_v52, %v5436_v12  ;;  %v501_v4 = vld [vmem:[%s8470_s1] sm:$0xff] }
  0x9e   : > { %4997 = vmatpush1.bf16.msra.mxu1 %v4996_v2  ;;  %v6505_v5 = vpop.permute.xlu1 %374  ;;  %v409_v6 = vsel %vm407_vm4, %v5430_v63, %v5431_v62  ;;  %v5421_v2 = vunpack.i.h.bf16 %v6493_v50 }
  0x9f   : > { %v5439_v7 = vpop.permute.xlu0 %5438  ;;  %v4982_v8 = vpack.c.bf16 %v409_v6, %v382_v3  ;;  %v384_v21 = vsel %vm380_vm3, %v5436_v12, %v6505_v5 }
  0xa0   : > { %v5441_v9 = vunpack.i.h.bf16 %v5439_v7  ;;  %v5440_v11 = vunpack.i.l.bf16 %v5439_v7 }
  0xa1   : > { %4983 = vmatprep.subr.bf16.mxu0 %v4982_v8 }
  0xa2   : > { %v5444_v13 = vpop.permute.xlu1 %5443  ;;  %v408_v16 = vsel %vm407_vm4, %v5440_v11, %v5430_v63  ;;  %v410_v20 = vsel %vm407_vm4, %v5431_v62, %v5441_v9  ;;  %v5416_v63 = vunpack.i.h.bf16 %v6487_v39 }
  0xa3   : > { %v6510_v17 = vpop.permute.xlu0 %401  ;;  %v4984_v19 = vpack.c.bf16 %v408_v16, %v381_v15  ;;  %v5446_v22 = vunpack.i.h.bf16 %v5444_v13  ;;  %v5445_v23 = vunpack.i.l.bf16 %v5444_v13  ;;  %v5000_v28 = vpack.c.bf16 %v410_v20, %v383_v26 }
  0xa4   : > { %v411_v24 = vsel %vm407_vm4, %v5441_v9, %v6510_v17  ;;  %v331_v8 = vsel %vm326_vm1, %v5415_v45, %v5416_v63  ;;  %v358_v9 = vsel %vm353_vm2, %v5420_v54, %v5421_v2 }
  0xa5   : > { %4985 = vmatpush1.bf16.msra.mxu0 %v4984_v19  ;;  %v4998_v25 = vpack.c.bf16 %v411_v24, %v384_v21  ;;  %v436_v32 = vsel %vm434_vm5, %v5445_v23, %v5446_v22  ;;  %v5012_v15 = vpack.c.bf16 %v358_v9, %v331_v8 }
  0xa6   : > { %v5454_v27 = vpop.permute.xlu1 %5453 }
  0xa7   : > { %v5449_v29 = vpop.permute.xlu0 %5448  ;;  %4999 = vmatprep.subr.bf16.mxu1 %v4998_v25  ;;  %v5455_v33 = vunpack.i.l.bf16 %v5454_v27  ;;  %v5456_v41 = vunpack.i.h.bf16 %v5454_v27 }
  0xa8   : > { %v5451_v30 = vunpack.i.h.bf16 %v5449_v29  ;;  %v5450_v31 = vunpack.i.l.bf16 %v5449_v29  ;;  %5001 = vmatpush1.bf16.msra.mxu1 %v5000_v28 }
  0xa9   : > { %v435_v43 = vsel %vm434_vm5, %v5455_v33, %v5445_v23  ;;  %v437_v53 = vsel %vm434_vm5, %v5446_v22, %v5456_v41 }
  0xaa   : > { %v6519_v34 = vpop.permute.xlu1 %428  ;;  %v463_v35 = vsel %vm461_vm6, %v5450_v31, %v5451_v30 }
  0xab   : > { %v5459_v36 = vpop.permute.xlu0 %5458  ;;  %v4986_v37 = vpack.c.bf16 %v463_v35, %v436_v32  ;;  %v438_v49 = vsel %vm434_vm5, %v5456_v41, %v6519_v34 }
  0xac   : > { %v5461_v38 = vunpack.i.h.bf16 %v5459_v36  ;;  %v5460_v40 = vunpack.i.l.bf16 %v5459_v36 }
  0xad   : > { %4987 = vmatprep.subr.bf16.mxu0 %v4986_v37 }
  0xae   : > { %v298_v42 = vpop.permute.xlu1 %297  ;;  %v462_v44 = vsel %vm461_vm6, %v5460_v40, %v5450_v31  ;;  %v464_v48 = vsel %vm461_vm6, %v5451_v30, %v5461_v38 }
  0xaf   : > { %v6524_v46 = vpop.permute.xlu0 %455  ;;  %v4988_v47 = vpack.c.bf16 %v462_v44, %v435_v43  ;;  %v5004_v57 = vpack.c.bf16 %v464_v48, %v437_v53  ;;  %v305_v60 = vsel %vm299_vm0, %v5391_v55, %v298_v42 }
  0xb0   : > { %v465_v51 = vsel %vm461_vm6, %v5461_v38, %v6524_v46  ;;  %v5006_v6 = vpack.c.bf16 %v305_v60, %v6391_v1 }
  0xb1   : > { %4989 = vmatpush1.bf16.msra.mxu0 %v4988_v47  ;;  %v5002_v52 = vpack.c.bf16 %v465_v51, %v438_v49  ;;  %v757_v51 = vlaneseq }
  0xb2   : > { %v479_v56 = vpop.permute.xlu1 %478 }
  0xb3   : > { %v477_v58 = vpop.permute.xlu0 %476  ;;  %5003 = vmatprep.subr.bf16.mxu1 %v5002_v52  ;;  %v758_v53 = vshrl.u32 %v757_v51, 7  ;;  %v4928_v51 = vld [vmem:[%s8471_s2 + $0x8] sm:$0xff] }
  0xb4   : > { %5005 = vmatpush1.bf16.msra.mxu1 %v5004_v57  ;;  %v490_v59 = vsel %vm488_vm7, %v477_v58, %v479_v56 }
  0xb5   : > { %528 = vmatprep.subr.mxu0 %v490_v59  ;;  %v6576_v59 = vsub.s32 0, %v758_v53  ;;  %v6589_v9 = vsub.s32 2, %v758_v53 }
  0xb6   : > { %v325_v62 = vpop.permute.xlu1 %324 }
  0xb7   : > { %v475_v3 = vpop.permute.xlu0 %474  ;;  %v332_v1 = vsel %vm326_vm1, %v5416_v63, %v325_v62 }
  0xb8   : > { %v489_v7 = vsel %vm488_vm7, %v475_v3, %v477_v58 }
  0xb9   : > { %529 = vmatpush1.msra.mxu0 %v489_v7 }
  0xba   : > { %4924 = vmatmul.mubr.msk.f32.vlgmr.msra.gmra.mrb[0].mxu0 %vm508_vm8, %v501_v4  ;;  %5007 = vmatprep.subr.bf16.mxu0 %v5006_v6  ;;  %v481_v18 = vpop.permute.xlu1 %480 }
  0xbb   : > { %v352_v11 = vpop.permute.xlu0 %351  ;;  %5009 = vmatpush1.bf16.msra.mxu0 %v5008_v14  ;;  %718 = vmatprep.mubr.f32.mxu0 %v6333_v10  ;;  %v491_v50 = vsel %vm488_vm7, %v479_v56, %v481_v18 }
  0xbc   : > { %v359_v0 = vsel %vm353_vm2, %v5421_v2, %v352_v11  ;;  %v6591_v11 = vsub.s32 3, %v758_v53 }
  0xbd   : > { %v5010_v12 = vpack.c.bf16 %v359_v0, %v332_v1 }
  0xbe   : > { %v5464_v13 = vpop.permute.xlu1 %5463 }
  0xbf   : > { %v483_v16 = vpop.permute.xlu0 %482  ;;  %5011 = vmatprep.subr.bf16.mxu0 %v5010_v12  ;;  %v5466_v39 = vunpack.i.h.bf16 %v5464_v13  ;;  %v5465_v54 = vunpack.i.l.bf16 %v5464_v13 }
  0xc0   : > { %5013 = vmatpush1.bf16.msra.mxu0 %v5012_v15  ;;  %v492_v45 = vsel %vm488_vm7, %v481_v18, %v483_v16  ;;  %v6587_v18 = vsub.s32 1, %v758_v53 }
  0xc1   : > { %599 = vmatprep.subr.mxu1 %v492_v45  ;;  %v386_v24 = vsel %vm380_vm3, %v5465_v54, %v5466_v39  ;;  %v385_v25 = vsel %vm380_vm3, %v6505_v5, %v5465_v54  ;;  %v768_v45 = vrot.slane %v6581_v61, %v6589_v9 }
  0xc2   : > { %600 = vmatpush1.msra.mxu1 %v491_v50  ;;  %v5474_v19 = vpop.permute.xlu1 %5473  ;;  %v764_v12 = vrot.slane %v6581_v61, %v6587_v18 }
  0xc3   : > { %v5469_v20 = vpop.permute.xlu0 %5468  ;;  %4925 = vmatmul.mubr.msk.f32.vlgmr.msra.gmra.mrb[0].mxu1 %vm508_vm8, %v501_v4  ;;  %v5476_v21 = vunpack.i.h.bf16 %v5474_v19  ;;  %v5475_v26 = vunpack.i.l.bf16 %v5474_v19 }
  0xc4   : > { %v5471_v22 = vunpack.i.h.bf16 %v5469_v20  ;;  %v5470_v23 = vunpack.i.l.bf16 %v5469_v20  ;;  %1103 = vmatprep.mubr.f32.mxu1 %v6333_v10  ;;  %v772_v20 = vrot.slane %v6581_v61, %v6591_v11 }
  0xc5   : > { %v440_v35 = vsel %vm434_vm5, %v5475_v26, %v5476_v21  ;;  %v439_v36 = vsel %vm434_vm5, %v6519_v34, %v5475_v26 }
  0xc6   : > { %v412_v27 = vsel %vm407_vm4, %v6510_v17, %v5470_v23  ;;  %v413_v28 = vsel %vm407_vm4, %v5470_v23, %v5471_v22  ;;  %v485_v17 = vpop.permute.xlu1 %484 }
  0xc7   : > { %v5479_v29 = vpop.permute.xlu0 %5478  ;;  %v5014_v30 = vpack.c.bf16 %v413_v28, %v386_v24  ;;  %v5016_v31 = vpack.c.bf16 %v412_v27, %v385_v25  ;;  %v493_v43 = vsel %vm488_vm7, %v483_v16, %v485_v17 }
  0xc8   : > { %v5481_v32 = vunpack.i.h.bf16 %v5479_v29  ;;  %v5480_v33 = vunpack.i.l.bf16 %v5479_v29 }
  0xc9   : > { %5015 = vmatprep.subr.bf16.mxu0 %v5014_v30 }
  0xca   : > { %v466_v5 = vsel %vm461_vm6, %v6524_v46, %v5480_v33  ;;  %5017 = vmatpush1.bf16.msra.mxu0 %v5016_v31  ;;  %v467_v37 = vsel %vm461_vm6, %v5480_v33, %v5481_v32 }
  0xcb   : > { %v5018_v38 = vpack.c.bf16 %v467_v37, %v440_v35  ;;  %v5020_v40 = vpack.c.bf16 %v466_v5, %v439_v36  ;;  %v487_v41 = vpop.permute.xlu0 %486  ;;  %v6621_v36 = vsub.s32 4, %v758_v53 }
  0xcc   : > { %v494_v42 = vsel %vm488_vm7, %v485_v17, %v487_v41  ;;  %v6623_v17 = vsub.s32 5, %v758_v53 }
  0xcd   : > { %5019 = vmatprep.subr.bf16.mxu0 %v5018_v38  ;;  %v776_v41 = vrot.slane %v6581_v61, %v6621_v36 }
  0xce   : > { %5021 = vmatpush1.bf16.msra.mxu0 %v5020_v40 }
  0xcf   : > { %670 = vmatprep.subr.mxu0 %v494_v42 }
  0xd2   : > { %671 = vmatpush1.msra.mxu0 %v493_v43 }
  0xd3   : > { %4926 = vmatmul.mubr.msk.f32.vlgmr.msra.gmra.mrb[2].mxu0 %vm508_vm8, %v501_v4  ;;  %v760_v4 = vrot.slane %v6581_v61, %v6576_v59 }
  0xd4   : > { %1174 = vmatprep.mubr.f32.mxu0 %v6333_v10 }
  0xd7   : > { %v506_v34 = vpop.permute.xlu1 %505 }
 0x18d   : > { %v578_v44 = vpop.f32.mrb[0].mxu0 }
 0x18e   : > { %v579_v46 = vadd.f32 %v578_v44, %v506_v34  ;;  %v580_v47 = vpop.f32.mrb[1].mxu0 }
 0x18f   : > { %v581_v48 = vadd.f32 %v580_v47, %v506_v34 }
 0x190   : > { %v731_v49 = vmul.f32 0.70710677, %v579_v46  ;;  %v725_v2 = vmul.f32 0.5, %v579_v46 }
 0x191   : > { %v732_v52 = vmul.f32 0.70710677, %v581_v48  ;;  %v726_v1 = vmul.f32 0.5, %v581_v48 }
 0x192   : > { %6219 = verf.f32 %v731_v49 }
 0x193   : > { %6221 = verf.f32 %v732_v52  ;;  %v6669_v52 = vpop.permute.xlu1 %831 }
 0x196   : > { %v649_v55 = vpop.f32.mrb[0].mxu1 }
 0x197   : > { %v650_v56 = vadd.f32 %v649_v55, %v506_v34  ;;  %v651_v57 = vpop.f32.mrb[1].mxu1  ;;  %v6671_v53 = vpop.permute.xlu1 %857 }
 0x198   : > { %v652_v58 = vadd.f32 %v651_v57, %v506_v34  ;;  %v6673_v55 = vpop.permute.xlu0 %883 }
 0x199   : > { %v733_v60 = vmul.f32 0.70710677, %v650_v56  ;;  %v727_v16 = vmul.f32 0.5, %v650_v56 }
 0x19a   : > { %v734_v62 = vmul.f32 0.70710677, %v652_v58  ;;  %v728_v54 = vmul.f32 0.5, %v652_v58 }
 0x19b   : > { %6223 = verf.f32 %v733_v60  ;;  %v6675_v56 = vpop.permute.xlu1 %909 }
 0x19c   : > { %v6220_v63 = vpop.eup %6219  ;;  %6225 = verf.f32 %v734_v62  ;;  %v6677_v57 = vpop.permute.xlu0 %935 }
 0x19d   : > { %v743_v3 = vadd.f32 1.0, %v6220_v63  ;;  %v6222_v6 = vpop.eup %6221 }
 0x19e   : > { %v744_v8 = vadd.f32 1.0, %v6222_v6 }
 0x19f   : > { %v749_v7 = vmul.f32 %v743_v3, %v725_v2 }
 0x1a0   : > { %v750_v15 = vmul.f32 %v744_v8, %v726_v1 }
 0x1a1   : > { %v6585_v14 = vmul.f32 %v760_v4, %v749_v7 }
 0x1a2   : > { %v6603_v27 = vmul.f32 %v764_v12, %v750_v15 }
 0x1a3   : > { %1001 = vrot.lane.b32.xlu0 %v6585_v14, %s6334_s10  ;;  %975 = vrot.lane.b32.xlu1 %v6585_v14, %s6332_s9 }
 0x1a5   : > { %v6224_v0 = vpop.eup %6223 }
 0x1a6   : > { %v6226_v13 = vpop.eup %6225  ;;  %v745_v39 = vadd.f32 1.0, %v6224_v0  ;;  %v720_v50 = vpop.f32.mrb[2].mxu0 }
 0x1a7   : > { %v746_v19 = vadd.f32 1.0, %v6226_v13  ;;  %v721_v21 = vadd.f32 %v720_v50, %v506_v34  ;;  %v722_v22 = vpop.f32.mrb[3].mxu0 }
 0x1a8   : > { %v751_v23 = vmul.f32 %v745_v39, %v727_v16  ;;  %v723_v24 = vadd.f32 %v722_v22, %v506_v34  ;;  %v780_v34 = vrot.slane %v6581_v61, %v6623_v17 }
 0x1a9   : > { %v752_v25 = vmul.f32 %v746_v19, %v728_v54  ;;  %v735_v26 = vmul.f32 0.70710677, %v721_v21  ;;  %v729_v38 = vmul.f32 0.5, %v721_v21 }
 0x1aa   : > { %v6605_v28 = vmul.f32 %v768_v45, %v751_v23  ;;  %v736_v29 = vmul.f32 0.70710677, %v723_v24  ;;  %v730_v40 = vmul.f32 0.5, %v723_v24 }
 0x1ab   : > { %v6607_v30 = vmul.f32 %v772_v20, %v752_v25  ;;  %6227 = verf.f32 %v735_v26 }
 0x1ac   : > { %1005 = vrot.lane.b32.xlu1 %v6605_v28, %s6334_s10  ;;  %v5483_v31 = vpack.i.bf16 %v6605_v28, %v6603_v27  ;;  %6229 = verf.f32 %v736_v29 }
 0x1ad   : > { %v5488_v32 = vpack.i.bf16 %v6607_v30, %v6585_v14 }
 0x1ae   : > { %5484 = vrot.lane.b32.xlu0 %v5483_v31, %s6326_s27 }
 0x1b0   : > { %5489 = vrot.lane.b32.xlu1 %v5488_v32, %s6326_s27 }
 0x1b2   : > { %5494 = vrot.lane.b32.xlu0 %v5483_v31, %s6327_s28 }
 0x1b4   : > { %5499 = vrot.lane.b32.xlu1 %v5483_v31, %s6328_s29 }
 0x1b5   : > { %v6228_v33 = vpop.eup %6227 }
 0x1b6   : > { %5504 = vrot.lane.b32.xlu0 %v5488_v32, %s6327_s28  ;;  %v6230_v35 = vpop.eup %6229  ;;  %v747_v5 = vadd.f32 1.0, %v6228_v33 }
 0x1b7   : > { %v748_v37 = vadd.f32 1.0, %v6230_v35 }
 0x1b8   : > { %5509 = vrot.lane.b32.xlu1 %v5488_v32, %s6328_s29  ;;  %v753_v42 = vmul.f32 %v747_v5, %v729_v38 }
 0x1b9   : > { %v754_v43 = vmul.f32 %v748_v37, %v730_v40 }
 0x1ba   : > { %5514 = vrot.lane.b32.xlu0 %v5483_v31, %s6329_s30  ;;  %v6633_v44 = vmul.f32 %v776_v41, %v753_v42 }
 0x1bb   : > { %v6635_v46 = vmul.f32 %v780_v34, %v754_v43 }
 0x1bc   : > { %5519 = vrot.lane.b32.xlu1 %v5483_v31, %s6330_s7  ;;  %v5573_v48 = vpack.i.bf16 %v6633_v44, %v6607_v30 }
 0x1bd   : > { %v5558_v47 = vpack.i.bf16 %v6635_v46, %v6633_v44  ;;  %v5583_v49 = vpack.i.bf16 %v6333_v10, %v6635_v46 }
 0x1be   : > { %5524 = vrot.lane.b32.xlu0 %v5488_v32, %s6329_s30 }
 0x1c0   : > { %5529 = vrot.lane.b32.xlu1 %v5488_v32, %s6330_s7 }
 0x1c2   : > { %5534 = vrot.lane.b32.xlu0 %v5483_v31, %s6331_s8 }
 0x1c4   : > { %5539 = vrot.lane.b32.xlu1 %v5483_v31, %s6332_s9 }
 0x1c6   : > { %5544 = vrot.lane.b32.xlu0 %v5488_v32, %s6331_s8 }
 0x1c8   : > { %5559 = vrot.lane.b32.xlu1 %v5558_v47, %s6328_s29 }
 0x1ca   : > { %1003 = vrot.lane.b32.xlu0 %v6603_v27, %s6334_s10 }
 0x1cc   : > { %5564 = vrot.lane.b32.xlu1 %v5558_v47, %s6329_s30 }
 0x1ce   : > { %5549 = vrot.lane.b32.xlu0 %v5558_v47, %s6326_s27 }
 0x1d0   : > { %5579 = vrot.lane.b32.xlu1 %v5558_v47, %s6331_s8 }
 0x1d2   : > { %5554 = vrot.lane.b32.xlu0 %v5558_v47, %s6327_s28 }
 0x1d4   : > { %961 = vrot.lane.b32.xlu1 %v6333_v10, %s6331_s8 }
 0x1d6   : > { %5569 = vrot.lane.b32.xlu0 %v5558_v47, %s6330_s7 }
 0x1d8   : > { %1007 = vrot.lane.b32.xlu1 %v6607_v30, %s6334_s10 }
 0x1da   : > { %5574 = vrot.lane.b32.xlu0 %v5573_v48, %s6332_s9 }
 0x1dc   : > { %1011 = vrot.lane.b32.xlu1 %v6635_v46, %s6334_s10 }
 0x1de   : > { %5584 = vrot.lane.b32.xlu0 %v5583_v49, %s6332_s9 }
 0x1e0   : > { %1033 = vperm.xlu1 %5482, %v4928_v51  }
 0x1e2   : > { %1009 = vrot.lane.b32.xlu0 %v6633_v44, %s6334_s10 }
 0x1e6   : > { %1013 = vrot.lane.b32.xlu0 %v6333_v10, %s6334_s10 }
 0x215   : > { %v6679_v58 = vpop.permute.xlu1 %975  ;;  %v6681_v60 = vpop.permute.xlu0 %1001 }
 0x21e   : > { %v6683_v61 = vpop.permute.xlu1 %1005 }
 0x220   : > { %v6685_v62 = vpop.permute.xlu0 %5484 }
 0x221   : > { %v5487_v63 = vunpack.i.h.bf16 %v6685_v62  ;;  %v5486_v2 = vunpack.i.l.bf16 %v6685_v62 }
 0x222   : > { %v6689_v3 = vpop.permute.xlu1 %5489 }
 0x223   : > { %v5491_v4 = vunpack.i.l.bf16 %v6689_v3  ;;  %v834_v6 = vsel %vm299_vm0, %v5486_v2, %v5487_v63 }
 0x224   : > { %v6695_v7 = vpop.permute.xlu0 %5494  ;;  %v5022_v8 = vpack.c.bf16 %v834_v6, %v6603_v27 }
 0x225   : > { %v833_v1 = vsel %vm299_vm0, %v5491_v4, %v5486_v2  ;;  %v5497_v0 = vunpack.i.h.bf16 %v6695_v7  ;;  %v5496_v12 = vunpack.i.l.bf16 %v6695_v7 }
 0x226   : > { %5023 = vmatprep.subr.bf16.mxu1 %v5022_v8  ;;  %v6701_v13 = vpop.permute.xlu1 %5499  ;;  %v5024_v15 = vpack.c.bf16 %v833_v1, %v6585_v14 }
 0x227   : > { %v5502_v16 = vunpack.i.h.bf16 %v6701_v13  ;;  %v5501_v39 = vunpack.i.l.bf16 %v6701_v13  ;;  %v860_v54 = vsel %vm326_vm1, %v5496_v12, %v5497_v0 }
 0x228   : > { %v6706_v45 = vpop.permute.xlu0 %5504  ;;  %5025 = vmatpush1.bf16.msra.mxu1 %v5024_v15 }
 0x229   : > { %v5506_v50 = vunpack.i.l.bf16 %v6706_v45  ;;  %v886_v19 = vsel %vm353_vm2, %v5501_v39, %v5502_v16 }
 0x22a   : > { %v6715_v20 = vpop.permute.xlu1 %5509  ;;  %v5026_v21 = vpack.c.bf16 %v886_v19, %v860_v54 }
 0x22b   : > { %v5511_v22 = vunpack.i.l.bf16 %v6715_v20  ;;  %v859_v24 = vsel %vm326_vm1, %v5506_v50, %v5496_v12 }
 0x22c   : > { %v6718_v23 = vpop.permute.xlu0 %5514  ;;  %5027 = vmatprep.subr.bf16.mxu1 %v5026_v21 }
 0x22d   : > { %v885_v25 = vsel %vm353_vm2, %v5511_v22, %v5501_v39  ;;  %v5517_v26 = vunpack.i.h.bf16 %v6718_v23  ;;  %v5516_v29 = vunpack.i.l.bf16 %v6718_v23  ;;  %v5492_v22 = vunpack.i.h.bf16 %v6689_v3  ;;  %v6773_v3 = vld [vmem:[%s8470_s1 + $0x8] sm:$0xff] }
 0x22e   : > { %v6724_v31 = vpop.permute.xlu1 %5519  ;;  %v5028_v32 = vpack.c.bf16 %v885_v25, %v859_v24 }
 0x22f   : > { %v5522_v33 = vunpack.i.h.bf16 %v6724_v31  ;;  %v5521_v35 = vunpack.i.l.bf16 %v6724_v31  ;;  %v912_v38 = vsel %vm380_vm3, %v5516_v29, %v5517_v26 }
 0x230   : > { %v6728_v5 = vpop.permute.xlu0 %5524  ;;  %5029 = vmatpush1.bf16.msra.mxu1 %v5028_v32  ;;  %v5512_v32 = vunpack.i.h.bf16 %v6715_v20 }
 0x231   : > { %v5526_v37 = vunpack.i.l.bf16 %v6728_v5  ;;  %v938_v40 = vsel %vm407_vm4, %v5521_v35, %v5522_v33 }
 0x232   : > { %v6737_v41 = vpop.permute.xlu1 %5529  ;;  %v5030_v42 = vpack.c.bf16 %v938_v40, %v912_v38  ;;  %v887_v62 = vsel %vm353_vm2, %v5502_v16, %v5512_v32 }
 0x233   : > { %v5531_v43 = vunpack.i.l.bf16 %v6737_v41  ;;  %v911_v47 = vsel %vm380_vm3, %v5526_v37, %v5516_v29 }
 0x234   : > { %v6740_v34 = vpop.permute.xlu0 %5534  ;;  %5031 = vmatprep.subr.bf16.mxu1 %v5030_v42 }
 0x235   : > { %v937_v48 = vsel %vm407_vm4, %v5531_v43, %v5521_v35  ;;  %v5537_v49 = vunpack.i.h.bf16 %v6740_v34  ;;  %v5536_v51 = vunpack.i.l.bf16 %v6740_v34  ;;  %v835_v35 = vsel %vm299_vm0, %v5487_v63, %v5492_v22 }
 0x236   : > { %v6746_v2 = vpop.permute.xlu1 %5539  ;;  %v5032_v4 = vpack.c.bf16 %v937_v48, %v911_v47  ;;  %v5040_v48 = vpack.c.bf16 %v835_v35, %v6605_v28 }
 0x237   : > { %v5542_v6 = vunpack.i.h.bf16 %v6746_v2  ;;  %v5541_v8 = vunpack.i.l.bf16 %v6746_v2  ;;  %v964_v15 = vsel %vm434_vm5, %v5536_v51, %v5537_v49 }
 0x238   : > { %v6750_v1 = vpop.permute.xlu0 %5544  ;;  %5033 = vmatpush1.bf16.msra.mxu1 %v5032_v4 }
 0x239   : > { %v5546_v12 = vunpack.i.l.bf16 %v6750_v1  ;;  %v990_v39 = vsel %vm461_vm6, %v5541_v8, %v5542_v6  ;;  %v989_v19 = vsel %vm461_vm6, %v6679_v58, %v5541_v8  ;;  %v5507_v58 = vunpack.i.h.bf16 %v6706_v45 }
 0x23a   : > { %v5560_v50 = vpop.permute.xlu1 %5559  ;;  %v5034_v54 = vpack.c.bf16 %v990_v39, %v964_v15  ;;  %v5532_v8 = vunpack.i.h.bf16 %v6737_v41 }
 0x23b   : > { %v963_v21 = vsel %vm434_vm5, %v5546_v12, %v5536_v51  ;;  %v5562_v20 = vunpack.i.h.bf16 %v5560_v50  ;;  %v5561_v47 = vunpack.i.l.bf16 %v5560_v50 }
 0x23c   : > { %v1004_v24 = vpop.permute.xlu0 %1003  ;;  %5035 = vmatprep.subr.bf16.mxu1 %v5034_v54  ;;  %v5036_v25 = vpack.c.bf16 %v989_v19, %v963_v21  ;;  %v5527_v21 = vunpack.i.h.bf16 %v6728_v5  ;;  %v939_v5 = vsel %vm407_vm4, %v5522_v33, %v5532_v8 }
 0x23d   : > { %v1016_v29 = vsel %vm488_vm7, %v1004_v24, %v6683_v61  ;;  %v1015_v43 = vsel %vm488_vm7, %v6681_v60, %v1004_v24  ;;  %v861_v60 = vsel %vm326_vm1, %v5497_v0, %v5507_v58  ;;  %v889_v7 = vsel %vm353_vm2, %v5561_v47, %v5562_v20 }
 0x23e   : > { %5037 = vmatpush1.bf16.msra.mxu1 %v5036_v25  ;;  %v5565_v37 = vpop.permute.xlu1 %5564  ;;  %v5044_v19 = vpack.c.bf16 %v887_v62, %v861_v60  ;;  %v888_v41 = vsel %vm353_vm2, %v5512_v32, %v5561_v47  ;;  %v890_v35 = vsel %vm353_vm2, %v5562_v20, %v6673_v55 }
 0x23f   : > { %1055 = vmatprep.subr.mxu1 %v1016_v29  ;;  %v5567_v50 = vunpack.i.h.bf16 %v5565_v37  ;;  %v5566_v0 = vunpack.i.l.bf16 %v5565_v37 }
 0x240   : > { %v5550_v38 = vpop.permute.xlu0 %5549 }
 0x241   : > { %v5552_v40 = vunpack.i.h.bf16 %v5550_v38  ;;  %v5551_v42 = vunpack.i.l.bf16 %v5550_v38  ;;  %v915_v32 = vsel %vm380_vm3, %v5566_v0, %v5567_v50 }
 0x242   : > { %1056 = vmatpush1.msra.mxu1 %v1015_v43  ;;  %v5580_v54 = vpop.permute.xlu1 %5579  ;;  %v914_v43 = vsel %vm380_vm3, %v5527_v21, %v5566_v0 }
 0x243   : > { %v837_v63 = vsel %vm299_vm0, %v5551_v42, %v5552_v40  ;;  %4929 = vmatmul.mubr.msk.f32.vlgmr.msra.gmra.mrb[2].mxu1 %vm508_vm8, %v6773_v3  ;;  %v836_v45 = vsel %vm299_vm0, %v5492_v22, %v5551_v42  ;;  %v838_v13 = vsel %vm299_vm0, %v5552_v40, %v6669_v52  ;;  %v5581_v47 = vunpack.i.l.bf16 %v5580_v54 }
 0x244   : > { %v5555_v51 = vpop.permute.xlu0 %5554  ;;  %v5038_v4 = vpack.c.bf16 %v836_v45, %v6607_v30  ;;  %v5056_v16 = vpack.c.bf16 %v837_v63, %v6633_v44  ;;  %1245 = vmatprep.mubr.f32.mxu1 %v6333_v10  ;;  %v5054_v39 = vpack.c.bf16 %v838_v13, %v6635_v46 }
 0x245   : > { %v5557_v12 = vunpack.i.h.bf16 %v5555_v51  ;;  %v5556_v15 = vunpack.i.l.bf16 %v5555_v51 }
 0x246   : > { %5039 = vmatprep.subr.bf16.mxu0 %v5038_v4  ;;  %5055 = vmatprep.subr.bf16.mxu1 %v5054_v39  ;;  %v962_v20 = vpop.permute.xlu1 %961 }
 0x247   : > { %v863_v52 = vsel %vm326_vm1, %v5556_v15, %v5557_v12  ;;  %5041 = vmatpush1.bf16.msra.mxu0 %v5040_v48  ;;  %v862_v22 = vsel %vm326_vm1, %v5507_v58, %v5556_v15  ;;  %5057 = vmatpush1.bf16.msra.mxu1 %v5056_v16  ;;  %v864_v29 = vsel %vm326_vm1, %v5557_v12, %v6671_v53  ;;  %v5547_v58 = vunpack.i.h.bf16 %v6750_v1 }
 0x248   : > { %v5570_v24 = vpop.permute.xlu0 %5569  ;;  %v5042_v25 = vpack.c.bf16 %v888_v41, %v862_v22  ;;  %v5060_v37 = vpack.c.bf16 %v889_v7, %v863_v52  ;;  %v5058_v42 = vpack.c.bf16 %v890_v35, %v864_v29  ;;  %v916_v53 = vsel %vm380_vm3, %v5567_v50, %v6675_v56 }
 0x249   : > { %v5572_v38 = vunpack.i.h.bf16 %v5570_v24  ;;  %v5571_v40 = vunpack.i.l.bf16 %v5570_v24  ;;  %v913_v1 = vsel %vm380_vm3, %v5517_v26, %v5527_v21  ;;  %v965_v4 = vsel %vm434_vm5, %v5537_v49, %v5547_v58 }
 0x24a   : > { %5043 = vmatprep.subr.bf16.mxu0 %v5042_v25  ;;  %5059 = vmatprep.subr.bf16.mxu1 %v5058_v42  ;;  %v5048_v51 = vpack.c.bf16 %v939_v5, %v913_v1  ;;  %v966_v26 = vsel %vm434_vm5, %v5547_v58, %v5581_v47  ;;  %v1008_v39 = vpop.permute.xlu1 %1007 }
 0x24b   : > { %v941_v55 = vsel %vm407_vm4, %v5571_v40, %v5572_v38  ;;  %5045 = vmatpush1.bf16.msra.mxu0 %v5044_v19  ;;  %v940_v31 = vsel %vm407_vm4, %v5532_v8, %v5571_v40  ;;  %v942_v33 = vsel %vm407_vm4, %v5572_v38, %v6677_v57  ;;  %5061 = vmatpush1.bf16.msra.mxu1 %v5060_v37  ;;  %v5582_v57 = vunpack.i.h.bf16 %v5580_v54 }
 0x24c   : > { %v5575_v62 = vpop.permute.xlu0 %5574  ;;  %v5046_v63 = vpack.c.bf16 %v940_v31, %v914_v43  ;;  %v5062_v45 = vpack.c.bf16 %v942_v33, %v916_v53  ;;  %v5064_v56 = vpack.c.bf16 %v941_v55, %v915_v32  ;;  %v1017_v21 = vsel %vm488_vm7, %v6683_v61, %v1008_v39  ;;  %v4932_v31 = vld [vmem:[%s8472_s3 + $0x6] sm:$0x3f] }
 0x24d   : > { %v5577_v48 = vunpack.i.h.bf16 %v5575_v62  ;;  %v5576_v60 = vunpack.i.l.bf16 %v5575_v62  ;;  %v967_v49 = vsel %vm434_vm5, %v5581_v47, %v5582_v57  ;;  %v968_v7 = vsel %vm434_vm5, %v5582_v57, %v962_v20 }
 0x24e   : > { %5047 = vmatprep.subr.bf16.mxu0 %v5046_v63  ;;  %5063 = vmatprep.subr.bf16.mxu1 %v5062_v45  ;;  %v1012_v52 = vpop.permute.xlu1 %1011  ;;  %v1292_v62 = vrot.slane %v4932_v31, %v6587_v18 }
 0x24f   : > { %v991_v23 = vsel %vm461_vm6, %v5542_v6, %v5576_v60  ;;  %5049 = vmatpush1.bf16.msra.mxu0 %v5048_v51  ;;  %v992_v13 = vsel %vm461_vm6, %v5576_v60, %v5577_v48  ;;  %5065 = vmatpush1.bf16.msra.mxu1 %v5064_v56 }
 0x250   : > { %v5585_v16 = vpop.permute.xlu0 %5584  ;;  %v5050_v8 = vpack.c.bf16 %v992_v13, %v966_v26  ;;  %v5052_v12 = vpack.c.bf16 %v991_v23, %v965_v4 }
 0x251   : > { %v5587_v15 = vunpack.i.h.bf16 %v5585_v16  ;;  %v5586_v34 = vunpack.i.l.bf16 %v5585_v16 }
 0x252   : > { %5051 = vmatprep.subr.bf16.mxu0 %v5050_v8 }
 0x253   : > { %v993_v2 = vsel %vm461_vm6, %v5577_v48, %v5586_v34  ;;  %5053 = vmatpush1.bf16.msra.mxu0 %v5052_v12  ;;  %v994_v6 = vsel %vm461_vm6, %v5586_v34, %v5587_v15  ;;  %v1296_v48 = vrot.slane %v4932_v31, %v6589_v9  ;;  %v1300_v34 = vrot.slane %v4932_v31, %v6591_v11 }
 0x254   : > { %v1010_v50 = vpop.permute.xlu0 %1009  ;;  %v5066_v0 = vpack.c.bf16 %v994_v6, %v968_v7  ;;  %v5068_v54 = vpack.c.bf16 %v993_v2, %v967_v49  ;;  %v1288_v6 = vrot.slane %v4932_v31, %v6576_v59 }
 0x255   : > { %v1018_v19 = vsel %vm488_vm7, %v1008_v39, %v1010_v50  ;;  %v1019_v24 = vsel %vm488_vm7, %v1010_v50, %v1012_v52 }
 0x256   : > { %1126 = vmatprep.subr.mxu0 %v1018_v19  ;;  %5067 = vmatprep.subr.bf16.mxu1 %v5066_v0 }
 0x257   : > { %1127 = vmatpush1.msra.mxu0 %v1017_v21  ;;  %5069 = vmatpush1.bf16.msra.mxu1 %v5068_v54 }
 0x258   : > { %v1014_v22 = vpop.permute.xlu0 %1013  ;;  %4930 = vmatmul.mubr.msk.f32.vlgmr.msra.gmra.mrb[4].mxu0 %vm508_vm8, %v6773_v3 }
 0x259   : > { %v1020_v41 = vsel %vm488_vm7, %v1012_v52, %v1014_v22  ;;  %1638 = vmatprep.mubr.f32.mxu0 %v6333_v10 }
 0x25a   : > { %1197 = vmatprep.subr.mxu1 %v1020_v41 }
 0x25b   : > { %1198 = vmatpush1.msra.mxu1 %v1019_v24  ;;  %v1304_v24 = vrot.slane %v4932_v31, %v6621_v36 }
 0x25c   : > { %4931 = vmatmul.mubr.msk.f32.vlgmr.msra.gmra.mrb[4].mxu1 %vm508_vm8, %v6773_v3 }
 0x25d   : > { %1709 = vmatprep.mubr.f32.mxu1 %v6333_v10 }
 0x25f   : > { %v1034_v29 = vpop.permute.xlu1 %1033 }
 0x316   : > { %v1105_v61 = vpop.f32.mrb[2].mxu1 }
 0x317   : > { %v1107_v25 = vpop.f32.mrb[3].mxu1  ;;  %v1106_v58 = vadd.f32 %v1105_v61, %v1034_v29 }
 0x318   : > { %v1108_v35 = vadd.f32 %v1107_v25, %v1034_v29 }
 0x319   : > { %v1258_v55 = vmul.f32 0.70710677, %v1106_v58  ;;  %v1252_v49 = vmul.f32 0.5, %v1106_v58 }
 0x31a   : > { %v1259_v37 = vmul.f32 0.70710677, %v1108_v35  ;;  %v1253_v1 = vmul.f32 0.5, %v1108_v35 }
 0x31c   : > { %6231 = verf.f32 %v1259_v37 }
 0x326   : > { %v6232_v3 = vpop.eup %6231 }
 0x327   : > { %v1271_v33 = vadd.f32 1.0, %v6232_v3 }
 0x329   : > { %v1277_v63 = vmul.f32 %v1271_v33, %v1253_v1 }
 0x32b   : > { %v1176_v5 = vpop.f32.mrb[4].mxu0  ;;  %v6847_v57 = vmul.f32 %v1292_v62, %v1277_v63 }
 0x32c   : > { %v1177_v38 = vadd.f32 %v1176_v5, %v1034_v29  ;;  %v1178_v40 = vpop.f32.mrb[5].mxu0  ;;  %v1308_v5 = vrot.slane %v4932_v31, %v6623_v17 }
 0x32d   : > { %v1179_v42 = vadd.f32 %v1178_v40, %v1034_v29 }
 0x32e   : > { %v1260_v32 = vmul.f32 0.70710677, %v1177_v38  ;;  %v1254_v45 = vmul.f32 0.5, %v1177_v38 }
 0x32f   : > { %v1247_v43 = vpop.f32.mrb[4].mxu1  ;;  %v1261_v53 = vmul.f32 0.70710677, %v1179_v42  ;;  %v1255_v15 = vmul.f32 0.5, %v1179_v42  ;;  %v6315_v42 = vld [vmem:[%s6385_s26 + $0x30] sm:$0xff] }
 0x330   : > { %6233 = verf.f32 %v1260_v32  ;;  %v1249_v47 = vpop.f32.mrb[5].mxu1  ;;  %v1248_v60 = vadd.f32 %v1247_v43, %v1034_v29  ;;  %v4934_v32 = vld [vmem:[%s8471_s2 + $0x10] sm:$0xff] }
 0x331   : > { %6235 = verf.f32 %v1261_v53  ;;  %v1250_v39 = vadd.f32 %v1249_v47, %v1034_v29 }
 0x332   : > { %6237 = verf.f32 %v1258_v55  ;;  %v1262_v13 = vmul.f32 0.70710677, %v1248_v60  ;;  %v1256_v22 = vmul.f32 0.5, %v1248_v60 }
 0x333   : > { %v1263_v50 = vmul.f32 0.70710677, %v1250_v39  ;;  %v1257_v35 = vmul.f32 0.5, %v1250_v39 }
 0x334   : > { %6239 = verf.f32 %v1262_v13 }
 0x335   : > { %6241 = verf.f32 %v1263_v50 }
 0x33a   : > { %v6234_v20 = vpop.eup %6233 }
 0x33b   : > { %v1272_v56 = vadd.f32 1.0, %v6234_v20  ;;  %v6236_v4 = vpop.eup %6235 }
 0x33c   : > { %v6238_v26 = vpop.eup %6237  ;;  %v1273_v16 = vadd.f32 1.0, %v6236_v4 }
 0x33d   : > { %v1278_v51 = vmul.f32 %v1272_v56, %v1254_v45  ;;  %v1270_v12 = vadd.f32 1.0, %v6238_v26 }
 0x33e   : > { %v1279_v7 = vmul.f32 %v1273_v16, %v1255_v15  ;;  %v6240_v21 = vpop.eup %6239 }
 0x33f   : > { %v6849_v23 = vmul.f32 %v1296_v48, %v1278_v51  ;;  %v1276_v2 = vmul.f32 %v1270_v12, %v1252_v49  ;;  %v1274_v52 = vadd.f32 1.0, %v6240_v21  ;;  %v6242_v61 = vpop.eup %6241 }
 0x340   : > { %v6859_v0 = vmul.f32 %v1300_v34, %v1279_v7  ;;  %v1275_v29 = vadd.f32 1.0, %v6242_v61 }
 0x341   : > { %v5593_v8 = vpack.i.bf16 %v6849_v23, %v6847_v57  ;;  %v6861_v54 = vmul.f32 %v1288_v6, %v1276_v2  ;;  %v1280_v41 = vmul.f32 %v1274_v52, %v1256_v22 }
 0x342   : > { %v1281_v37 = vmul.f32 %v1275_v29, %v1257_v35 }
 0x343   : > { %5594 = vrot.lane.b32.xlu1 %v5593_v8, %s6327_s28  ;;  %5589 = vrot.lane.b32.xlu0 %v5593_v8, %s6326_s27  ;;  %v5623_v19 = vpack.i.bf16 %v6859_v0, %v6861_v54  ;;  %v6874_v25 = vmul.f32 %v1304_v24, %v1280_v41 }
 0x344   : > { %v6883_v38 = vmul.f32 %v1308_v5, %v1281_v37 }
 0x346   : > { %v5658_v40 = vpack.i.bf16 %v6883_v38, %v6874_v25  ;;  %v5673_v58 = vpack.i.bf16 %v6315_v42, %v6883_v38 }
 0x347   : > { %5604 = vrot.lane.b32.xlu1 %v5593_v8, %s6329_s30  ;;  %5599 = vrot.lane.b32.xlu0 %v5593_v8, %s6328_s29 }
 0x34b   : > { %5614 = vrot.lane.b32.xlu1 %v5593_v8, %s6331_s8  ;;  %5609 = vrot.lane.b32.xlu0 %v5593_v8, %s6330_s7 }
 0x34f   : > { %5619 = vrot.lane.b32.xlu0 %v5593_v8, %s6332_s9  ;;  %5624 = vrot.lane.b32.xlu1 %v5623_v19, %s6326_s27 }
 0x353   : > { %5634 = vrot.lane.b32.xlu0 %v5623_v19, %s6328_s29  ;;  %5629 = vrot.lane.b32.xlu1 %v5623_v19, %s6327_s28 }
 0x357   : > { %5644 = vrot.lane.b32.xlu0 %v5623_v19, %s6330_s7  ;;  %5639 = vrot.lane.b32.xlu1 %v5623_v19, %s6329_s30 }
 0x35b   : > { %1466 = vrot.lane.b32.xlu0 %v6874_v25, %s6330_s7  ;;  %1440 = vrot.lane.b32.xlu1 %v6874_v25, %s6329_s30 }
 0x35f   : > { %5654 = vrot.lane.b32.xlu0 %v5623_v19, %s6332_s9  ;;  %5649 = vrot.lane.b32.xlu1 %v5623_v19, %s6331_s8 }
 0x363   : > { %1518 = vrot.lane.b32.xlu0 %v6874_v25, %s6332_s9  ;;  %1492 = vrot.lane.b32.xlu1 %v6874_v25, %s6331_s8 }
 0x367   : > { %5659 = vrot.lane.b32.xlu0 %v5658_v40, %s6326_s27  ;;  %5664 = vrot.lane.b32.xlu1 %v5658_v40, %s6327_s28 }
 0x36b   : > { %5669 = vrot.lane.b32.xlu0 %v5658_v40, %s6328_s29  ;;  %1366 = vrot.lane.b32.xlu1 %v6315_v42, %s6326_s27 }
 0x36f   : > { %1538 = vrot.lane.b32.xlu0 %v6847_v57, %s6334_s10  ;;  %1540 = vrot.lane.b32.xlu1 %v6849_v23, %s6334_s10 }
 0x373   : > { %1536 = vrot.lane.b32.xlu0 %v6861_v54, %s6334_s10  ;;  %1392 = vrot.lane.b32.xlu1 %v6315_v42, %s6327_s28 }
 0x377   : > { %1418 = vrot.lane.b32.xlu0 %v6315_v42, %s6328_s29  ;;  %1542 = vrot.lane.b32.xlu1 %v6859_v0, %s6334_s10 }
 0x37b   : > { %1544 = vrot.lane.b32.xlu0 %v6874_v25, %s6334_s10  ;;  %5674 = vrot.lane.b32.xlu1 %v5673_v58, %s6329_s30 }
 0x37f   : > { %5679 = vrot.lane.b32.xlu0 %v5673_v58, %s6330_s7  ;;  %5684 = vrot.lane.b32.xlu1 %v5673_v58, %s6331_s8 }
 0x383   : > { %5689 = vrot.lane.b32.xlu0 %v5673_v58, %s6332_s9  ;;  %1546 = vrot.lane.b32.xlu1 %v6883_v38, %s6334_s10 }
 0x387   : > { %1548 = vrot.lane.b32.xlu0 %v6315_v42, %s6334_s10  ;;  %1568 = vperm.xlu1 %5482, %v4934_v32  }
 0x38b   : > { %1796 = vrot.lane.b32.xlu0 %v6603_v27, %s6334_s10  ;;  %1798 = vrot.lane.b32.xlu1 %v6605_v28, %s6334_s10 }
 0x38f   : > { %1800 = vrot.lane.b32.xlu0 %v6607_v30, %s6334_s10  ;;  %1794 = vrot.lane.b32.xlu1 %v6585_v14, %s6334_s10 }
 0x393   : > { %1802 = vrot.lane.b32.xlu0 %v6633_v44, %s6334_s10  ;;  %1804 = vrot.lane.b32.xlu1 %v6635_v46, %s6334_s10 }
 0x397   : > { %1806 = vrot.lane.b32.xlu0 %v6333_v10, %s6334_s10  ;;  %1985 = vrot.lane.b32.xlu1 %v6333_v10, %s6328_s29 }
 0x39b   : > { %1933 = vrot.lane.b32.xlu0 %v6333_v10, %s6326_s27 }
 0x39f   : > { %1959 = vrot.lane.b32.xlu0 %v6333_v10, %s6327_s28 }
 0x3b5   : > { %v6939_v27 = vpop.permute.xlu1 %5594  ;;  %v6941_v14 = vpop.permute.xlu0 %5589 }
 0x3b6   : > { %v5592_v28 = vunpack.i.h.bf16 %v6941_v14  ;;  %v5591_v30 = vunpack.i.l.bf16 %v6941_v14  ;;  %v5597_v33 = vunpack.i.h.bf16 %v6939_v27  ;;  %v5596_v1 = vunpack.i.l.bf16 %v6939_v27 }
 0x3b8   : > { %v1369_v44 = vsel %vm299_vm0, %v5591_v30, %v5592_v28  ;;  %v1395_v16 = vsel %vm326_vm1, %v5596_v1, %v5597_v33 }
 0x3b9   : > { %v6948_v46 = vpop.permute.xlu1 %5604  ;;  %v6950_v43 = vpop.permute.xlu0 %5599  ;;  %v5070_v53 = vpack.c.bf16 %v1369_v44, %v6847_v57 }
 0x3ba   : > { %v5602_v3 = vunpack.i.h.bf16 %v6950_v43  ;;  %v5601_v31 = vunpack.i.l.bf16 %v6950_v43  ;;  %v5607_v51 = vunpack.i.h.bf16 %v6948_v46  ;;  %v5606_v4 = vunpack.i.l.bf16 %v6948_v46  ;;  %v7062_v46 = vld [vmem:[%s8470_s1 + $0x10] sm:$0xff] }
 0x3bb   : > { %5071 = vmatprep.subr.bf16.mxu0 %v5070_v53 }
 0x3bc   : > { %v1421_v48 = vsel %vm353_vm2, %v5601_v31, %v5602_v3  ;;  %v1447_v52 = vsel %vm380_vm3, %v5606_v4, %v5607_v51 }
 0x3bd   : > { %v6953_v47 = vpop.permute.xlu1 %5614  ;;  %v6955_v55 = vpop.permute.xlu0 %5609  ;;  %v5074_v15 = vpack.c.bf16 %v1421_v48, %v1395_v16 }
 0x3be   : > { %v5612_v45 = vunpack.i.h.bf16 %v6955_v55  ;;  %v5611_v56 = vunpack.i.l.bf16 %v6955_v55  ;;  %v5617_v6 = vunpack.i.h.bf16 %v6953_v47  ;;  %v5616_v50 = vunpack.i.l.bf16 %v6953_v47 }
 0x3c0   : > { %v1473_v49 = vsel %vm407_vm4, %v5611_v56, %v5612_v45  ;;  %v1499_v42 = vsel %vm434_vm5, %v5616_v50, %v5617_v6 }
 0x3c1   : > { %v6961_v20 = vpop.permute.xlu0 %5619  ;;  %v6963_v62 = vpop.permute.xlu1 %5624  ;;  %v5078_v24 = vpack.c.bf16 %v1473_v49, %v1447_v52 }
 0x3c2   : > { %v5626_v63 = vunpack.i.l.bf16 %v6963_v62  ;;  %v5622_v34 = vunpack.i.h.bf16 %v6961_v20  ;;  %v5621_v39 = vunpack.i.l.bf16 %v6961_v20 }
 0x3c4   : > { %v1368_v60 = vsel %vm299_vm0, %v5626_v63, %v5591_v30  ;;  %v1525_v61 = vsel %vm461_vm6, %v5621_v39, %v5622_v34 }
 0x3c5   : > { %v6974_v57 = vpop.permute.xlu0 %5634  ;;  %v6976_v26 = vpop.permute.xlu1 %5629  ;;  %v5072_v13 = vpack.c.bf16 %v1368_v60, %v6861_v54  ;;  %v5082_v58 = vpack.c.bf16 %v1525_v61, %v1499_v42  ;;  %v5627_v60 = vunpack.i.h.bf16 %v6963_v62 }
 0x3c6   : > { %v5636_v8 = vunpack.i.l.bf16 %v6974_v57  ;;  %v5631_v12 = vunpack.i.l.bf16 %v6976_v26 }
 0x3c7   : > { %5073 = vmatpush1.bf16.msra.mxu0 %v5072_v13 }
 0x3c8   : > { %v1420_v7 = vsel %vm353_vm2, %v5636_v8, %v5601_v31  ;;  %v1394_v2 = vsel %vm326_vm1, %v5631_v12, %v5596_v1  ;;  %5075 = vmatprep.subr.bf16.mxu0 %v5074_v15  ;;  %v1370_v8 = vsel %vm299_vm0, %v5592_v28, %v5627_v60  ;;  %v5637_v12 = vunpack.i.h.bf16 %v6974_v57 }
 0x3c9   : > { %v6993_v54 = vpop.permute.xlu0 %5644  ;;  %v6995_v19 = vpop.permute.xlu1 %5639  ;;  %v5076_v21 = vpack.c.bf16 %v1420_v7, %v1394_v2  ;;  %v5632_v15 = vunpack.i.h.bf16 %v6976_v26  ;;  %v5088_v14 = vpack.c.bf16 %v1370_v8, %v6849_v23 }
 0x3ca   : > { %v5646_v22 = vunpack.i.l.bf16 %v6993_v54  ;;  %v5641_v41 = vunpack.i.l.bf16 %v6995_v19  ;;  %v1422_v28 = vsel %vm353_vm2, %v5602_v3, %v5637_v12 }
 0x3cb   : > { %5077 = vmatpush1.bf16.msra.mxu0 %v5076_v21  ;;  %v5642_v21 = vunpack.i.h.bf16 %v6995_v19  ;;  %v1396_v57 = vsel %vm326_vm1, %v5597_v33, %v5632_v15 }
 0x3cc   : > { %v1472_v29 = vsel %vm407_vm4, %v5646_v22, %v5611_v56  ;;  %v1446_v35 = vsel %vm380_vm3, %v5641_v41, %v5606_v4  ;;  %5079 = vmatprep.subr.bf16.mxu0 %v5078_v24  ;;  %v5092_v24 = vpack.c.bf16 %v1422_v28, %v1396_v57 }
 0x3cd   : > { %v7007_v37 = vpop.permute.xlu0 %1466  ;;  %v7009_v5 = vpop.permute.xlu1 %1440  ;;  %v5080_v40 = vpack.c.bf16 %v1472_v29, %v1446_v35  ;;  %v1448_v29 = vsel %vm380_vm3, %v5607_v51, %v5642_v21 }
 0x3cf   : > { %5081 = vmatpush1.bf16.msra.mxu0 %v5080_v40 }
 0x3d0   : > { %5083 = vmatprep.subr.bf16.mxu0 %v5082_v58 }
 0x3d1   : > { %v5655_v32 = vpop.permute.xlu0 %5654  ;;  %v5650_v30 = vpop.permute.xlu1 %5649 }
 0x3d2   : > { %v5656_v44 = vunpack.i.l.bf16 %v5655_v32  ;;  %v5651_v53 = vunpack.i.l.bf16 %v5650_v30  ;;  %v5657_v41 = vunpack.i.h.bf16 %v5655_v32  ;;  %v5652_v27 = vunpack.i.h.bf16 %v5650_v30 }
 0x3d4   : > { %v1524_v31 = vsel %vm461_vm6, %v5656_v44, %v5621_v39  ;;  %v1498_v1 = vsel %vm434_vm5, %v5651_v53, %v5616_v50  ;;  %v5647_v50 = vunpack.i.h.bf16 %v6993_v54  ;;  %v1526_v51 = vsel %vm461_vm6, %v5622_v34, %v5657_v41 }
 0x3d5   : > { %v7016_v63 = vpop.permute.xlu0 %1518  ;;  %v7018_v56 = vpop.permute.xlu1 %1492  ;;  %v5084_v48 = vpack.c.bf16 %v1524_v31, %v1498_v1  ;;  %v1500_v31 = vsel %vm434_vm5, %v5617_v6, %v5652_v27 }
 0x3d6   : > { %v1475_v26 = vsel %vm407_vm4, %v5647_v50, %v7007_v37  ;;  %v1474_v61 = vsel %vm407_vm4, %v5612_v45, %v5647_v50  ;;  %v1527_v40 = vsel %vm461_vm6, %v5657_v41, %v7016_v63  ;;  %v1501_v42 = vsel %vm434_vm5, %v5652_v27, %v7018_v56 }
 0x3d7   : > { %5085 = vmatpush1.bf16.msra.mxu0 %v5084_v48  ;;  %v5096_v53 = vpack.c.bf16 %v1474_v61, %v1448_v29 }
 0x3d9   : > { %v5660_v4 = vpop.permute.xlu0 %5659  ;;  %v7021_v13 = vpop.permute.xlu1 %5664 }
 0x3da   : > { %v5661_v16 = vunpack.i.l.bf16 %v5660_v4  ;;  %v5666_v39 = vunpack.i.l.bf16 %v7021_v13  ;;  %v5662_v19 = vunpack.i.h.bf16 %v5660_v4  ;;  %v5667_v1 = vunpack.i.h.bf16 %v7021_v13 }
 0x3dc   : > { %v1371_v49 = vsel %vm299_vm0, %v5627_v60, %v5661_v16  ;;  %v1397_v54 = vsel %vm326_vm1, %v5632_v15, %v5666_v39  ;;  %v1372_v55 = vsel %vm299_vm0, %v5661_v16, %v5662_v19  ;;  %v5098_v60 = vpack.c.bf16 %v1527_v40, %v1501_v42 }
 0x3dd   : > { %v5670_v7 = vpop.permute.xlu0 %5669  ;;  %v1367_v2 = vpop.permute.xlu1 %1366  ;;  %v5086_v62 = vpack.c.bf16 %v1371_v49, %v6859_v0  ;;  %v1449_v0 = vsel %vm380_vm3, %v5642_v21, %v7009_v5  ;;  %v5104_v20 = vpack.c.bf16 %v1372_v55, %v6874_v25  ;;  %v1398_v13 = vsel %vm326_vm1, %v5666_v39, %v5667_v1 }
 0x3de   : > { %v5671_v52 = vunpack.i.l.bf16 %v5670_v7  ;;  %v5094_v35 = vpack.c.bf16 %v1475_v26, %v1449_v0  ;;  %v1373_v58 = vsel %vm299_vm0, %v5662_v19, %v1367_v2  ;;  %v5672_v32 = vunpack.i.h.bf16 %v5670_v7 }
 0x3df   : > { %5087 = vmatprep.subr.bf16.mxu1 %v5086_v62  ;;  %v5102_v48 = vpack.c.bf16 %v1373_v58, %v6883_v38  ;;  %v5100_v38 = vpack.c.bf16 %v1526_v51, %v1500_v31 }
 0x3e0   : > { %5089 = vmatpush1.bf16.msra.mxu1 %v5088_v14  ;;  %v1423_v23 = vsel %vm353_vm2, %v5637_v12, %v5671_v52  ;;  %v1424_v34 = vsel %vm353_vm2, %v5671_v52, %v5672_v32 }
 0x3e1   : > { %v1539_v43 = vpop.permute.xlu0 %1538  ;;  %v1541_v22 = vpop.permute.xlu1 %1540  ;;  %v5090_v3 = vpack.c.bf16 %v1423_v23, %v1397_v54  ;;  %v5108_v12 = vpack.c.bf16 %v1424_v34, %v1398_v13  ;;  %v7109_v13 = vld [vmem:[%s8472_s3 + $0xc] sm:$0x3f] }
 0x3e2   : > { %v1551_v33 = vsel %vm488_vm7, %v1539_v43, %v1541_v22 }
 0x3e3   : > { %1590 = vmatprep.subr.mxu0 %v1551_v33  ;;  %5091 = vmatprep.subr.bf16.mxu1 %v5090_v3 }
 0x3e4   : > { %5093 = vmatpush1.bf16.msra.mxu1 %v5092_v24 }
 0x3e5   : > { %v1537_v45 = vpop.permute.xlu0 %1536  ;;  %v1393_v30 = vpop.permute.xlu1 %1392  ;;  %5095 = vmatprep.subr.bf16.mxu1 %v5094_v35 }
 0x3e6   : > { %v1550_v44 = vsel %vm488_vm7, %v1537_v45, %v1539_v43  ;;  %v1399_v47 = vsel %vm326_vm1, %v5667_v1, %v1393_v30 }
 0x3e7   : > { %1591 = vmatpush1.msra.mxu0 %v1550_v44 }
 0x3e8   : > { %4935 = vmatmul.mubr.msk.f32.vlgmr.msra.gmra.mrb[6].mxu0 %vm508_vm8, %v7062_v46  ;;  %5097 = vmatpush1.bf16.msra.mxu1 %v5096_v53 }
 0x3e9   : > { %5103 = vmatprep.subr.bf16.mxu0 %v5102_v48  ;;  %v1419_v4 = vpop.permute.xlu0 %1418  ;;  %v1543_v16 = vpop.permute.xlu1 %1542  ;;  %5099 = vmatprep.subr.bf16.mxu1 %v5098_v60 }
 0x3ea   : > { %v1425_v6 = vsel %vm353_vm2, %v5672_v32, %v1419_v4  ;;  %5105 = vmatpush1.bf16.msra.mxu0 %v5104_v20  ;;  %1780 = vmatprep.mubr.f32.mxu0 %v6333_v10  ;;  %v1552_v62 = vsel %vm488_vm7, %v1541_v22, %v1543_v16 }
 0x3eb   : > { %v5106_v8 = vpack.c.bf16 %v1425_v6, %v1399_v47 }
 0x3ec   : > { %5101 = vmatpush1.bf16.msra.mxu1 %v5100_v38 }
 0x3ed   : > { %v1545_v25 = vpop.permute.xlu0 %1544  ;;  %v5675_v15 = vpop.permute.xlu1 %5674  ;;  %5107 = vmatprep.subr.bf16.mxu0 %v5106_v8 }
 0x3ee   : > { %5109 = vmatpush1.bf16.msra.mxu0 %v5108_v12  ;;  %v1553_v49 = vsel %vm488_vm7, %v1543_v16, %v1545_v25  ;;  %v5677_v7 = vunpack.i.h.bf16 %v5675_v15  ;;  %v5676_v2 = vunpack.i.l.bf16 %v5675_v15 }
 0x3ef   : > { %1661 = vmatprep.subr.mxu1 %v1553_v49 }
 0x3f0   : > { %1662 = vmatpush1.msra.mxu1 %v1552_v62  ;;  %v1450_v14 = vsel %vm380_vm3, %v7009_v5, %v5676_v2  ;;  %v1451_v28 = vsel %vm380_vm3, %v5676_v2, %v5677_v7  ;;  %v1862_v7 = vrot.slane %v7109_v13, %v6576_v59 }
 0x3f1   : > { %v5680_v50 = vpop.permute.xlu0 %5679  ;;  %v5685_v21 = vpop.permute.xlu1 %5684  ;;  %4936 = vmatmul.mubr.msk.f32.vlgmr.msra.gmra.mrb[6].mxu1 %vm508_vm8, %v7062_v46 }
 0x3f2   : > { %v5682_v39 = vunpack.i.h.bf16 %v5680_v50  ;;  %v5681_v52 = vunpack.i.l.bf16 %v5680_v50  ;;  %2205 = vmatprep.mubr.f32.mxu1 %v6333_v10  ;;  %v5687_v26 = vunpack.i.h.bf16 %v5685_v21  ;;  %v5686_v0 = vunpack.i.l.bf16 %v5685_v21 }
 0x3f4   : > { %v1476_v57 = vsel %vm407_vm4, %v7007_v37, %v5681_v52  ;;  %v1477_v54 = vsel %vm407_vm4, %v5681_v52, %v5682_v39  ;;  %v1502_v41 = vsel %vm434_vm5, %v7018_v56, %v5686_v0  ;;  %v1503_v27 = vsel %vm434_vm5, %v5686_v0, %v5687_v26 }
 0x3f5   : > { %v5690_v23 = vpop.permute.xlu0 %5689  ;;  %v5110_v19 = vpack.c.bf16 %v1477_v54, %v1451_v28  ;;  %v5112_v43 = vpack.c.bf16 %v1476_v57, %v1450_v14  ;;  %v1547_v29 = vpop.permute.xlu1 %1546  ;;  %v1866_v57 = vrot.slane %v7109_v13, %v6587_v18  ;;  %v1870_v26 = vrot.slane %v7109_v13, %v6589_v9 }
 0x3f6   : > { %v5692_v22 = vunpack.i.h.bf16 %v5690_v23  ;;  %v5691_v3 = vunpack.i.l.bf16 %v5690_v23  ;;  %v1554_v40 = vsel %vm488_vm7, %v1545_v25, %v1547_v29 }
 0x3f7   : > { %5111 = vmatprep.subr.bf16.mxu0 %v5110_v19 }
 0x3f8   : > { %v1528_v5 = vsel %vm461_vm6, %v7016_v63, %v5691_v3  ;;  %5113 = vmatpush1.bf16.msra.mxu0 %v5112_v43  ;;  %v1529_v37 = vsel %vm461_vm6, %v5691_v3, %v5692_v22 }
 0x3f9   : > { %v1549_v33 = vpop.permute.xlu0 %1548  ;;  %v5114_v24 = vpack.c.bf16 %v1529_v37, %v1503_v27  ;;  %v5116_v61 = vpack.c.bf16 %v1528_v5, %v1502_v41 }
 0x3fa   : > { %v1555_v35 = vsel %vm488_vm7, %v1547_v29, %v1549_v33 }
 0x3fb   : > { %5115 = vmatprep.subr.bf16.mxu0 %v5114_v24 }
 0x3fc   : > { %5117 = vmatpush1.bf16.msra.mxu0 %v5116_v61 }
 0x3fd   : > { %1732 = vmatprep.subr.mxu0 %v1555_v35  ;;  %v1797_v58 = vpop.permute.xlu0 %1796 }
 0x400   : > { %1733 = vmatpush1.msra.mxu0 %v1554_v40 }
 0x401   : > { %4937 = vmatmul.mubr.msk.f32.vlgmr.msra.gmra.mrb[8].mxu0 %vm508_vm8, %v7062_v46  ;;  %v1801_v48 = vpop.permute.xlu0 %1800 }
 0x402   : > { %2276 = vmatprep.mubr.f32.mxu0 %v6333_v10 }
 0x405   : > { %v1803_v16 = vpop.permute.xlu0 %1802 }
 0x406   : > { %v1569_v63 = vpop.permute.xlu1 %1568  ;;  %v1811_v8 = vsel %vm488_vm7, %v1801_v48, %v1803_v16 }
 0x409   : > { %v1807_v3 = vpop.permute.xlu0 %1806 }
 0x40a   : > { %v1799_v56 = vpop.permute.xlu1 %1798 }
 0x40b   : > { %v1809_v53 = vsel %vm488_vm7, %v1797_v58, %v1799_v56  ;;  %v1810_v4 = vsel %vm488_vm7, %v1799_v56, %v1801_v48 }
 0x40e   : > { %v1795_v42 = vpop.permute.xlu1 %1794 }
 0x40f   : > { %v1808_v30 = vsel %vm488_vm7, %v1795_v42, %v1797_v58 }
 0x412   : > { %v1805_v54 = vpop.permute.xlu1 %1804 }
 0x413   : > { %v1812_v27 = vsel %vm488_vm7, %v1803_v16, %v1805_v54  ;;  %v1813_v61 = vsel %vm488_vm7, %v1805_v54, %v1807_v3 }
 0x4bb   : > { %v1640_v55 = vpop.f32.mrb[6].mxu0 }
 0x4bc   : > { %v1641_v32 = vadd.f32 %v1640_v55, %v1569_v63  ;;  %v1642_v45 = vpop.f32.mrb[7].mxu0 }
 0x4bd   : > { %v1643_v51 = vadd.f32 %v1642_v45, %v1569_v63 }
 0x4be   : > { %v1820_v44 = vadd.f32 %v1808_v30, %v1641_v32  ;;  %v1874_v32 = vrot.slane %v7109_v13, %v6591_v11 }
 0x4bf   : > { %v1821_v31 = vadd.f32 %v1809_v53, %v1643_v51 }
 0x4c0   : > { %v1832_v1 = vmul.f32 0.70710677, %v1820_v44  ;;  %v1826_v15 = vmul.f32 0.5, %v1820_v44 }
 0x4c1   : > { %v1833_v60 = vmul.f32 0.70710677, %v1821_v31  ;;  %v1827_v52 = vmul.f32 0.5, %v1821_v31 }
 0x4c2   : > { %6243 = verf.f32 %v1832_v1 }
 0x4c3   : > { %6245 = verf.f32 %v1833_v60  ;;  %v1878_v60 = vrot.slane %v7109_v13, %v6621_v36 }
 0x4c4   : > { %v1711_v46 = vpop.f32.mrb[6].mxu1 }
 0x4c5   : > { %v1712_v20 = vadd.f32 %v1711_v46, %v1569_v63  ;;  %v1713_v34 = vpop.f32.mrb[7].mxu1  ;;  %v1882_v46 = vrot.slane %v7109_v13, %v6623_v17  ;;  %v4940_v13 = vld [vmem:[%s8471_s2 + $0x18] sm:$0xff] }
 0x4c6   : > { %v1714_v6 = vadd.f32 %v1713_v34, %v1569_v63 }
 0x4c7   : > { %v1822_v47 = vadd.f32 %v1810_v4, %v1712_v20 }
 0x4c8   : > { %v1823_v12 = vadd.f32 %v1811_v8, %v1714_v6  ;;  %v7194_v8 = vpop.permute.xlu0 %1933 }
 0x4c9   : > { %v1834_v38 = vmul.f32 0.70710677, %v1822_v47  ;;  %v1828_v19 = vmul.f32 0.5, %v1822_v47 }
 0x4ca   : > { %v1835_v50 = vmul.f32 0.70710677, %v1823_v12  ;;  %v1829_v58 = vmul.f32 0.5, %v1823_v12 }
 0x4cb   : > { %6247 = verf.f32 %v1834_v38 }
 0x4cc   : > { %v6244_v25 = vpop.eup %6243  ;;  %6249 = verf.f32 %v1835_v50  ;;  %v7196_v12 = vpop.permute.xlu0 %1959 }
 0x4cd   : > { %v1844_v49 = vadd.f32 1.0, %v6244_v25  ;;  %v6246_v2 = vpop.eup %6245  ;;  %v7198_v25 = vpop.permute.xlu1 %1985 }
 0x4ce   : > { %v1845_v39 = vadd.f32 1.0, %v6246_v2 }
 0x4cf   : > { %v1850_v62 = vmul.f32 %v1844_v49, %v1826_v15 }
 0x4d0   : > { %v1851_v23 = vmul.f32 %v1845_v39, %v1827_v52 }
 0x4d1   : > { %v7114_v21 = vmul.f32 %v1862_v7, %v1850_v62 }
 0x4d2   : > { %v7125_v37 = vmul.f32 %v1866_v57, %v1851_v23 }
 0x4d3   : > { %2103 = vrot.lane.b32.xlu1 %v7114_v21, %s6334_s10  ;;  %2077 = vrot.lane.b32.xlu0 %v7114_v21, %s6332_s9 }
 0x4d4   : > { %v1782_v14 = vpop.f32.mrb[8].mxu0 }
 0x4d5   : > { %v6248_v28 = vpop.eup %6247  ;;  %v1784_v0 = vpop.f32.mrb[9].mxu0  ;;  %v1783_v22 = vadd.f32 %v1782_v14, %v1569_v63 }
 0x4d6   : > { %v1846_v43 = vadd.f32 1.0, %v6248_v28  ;;  %v1785_v41 = vadd.f32 %v1784_v0, %v1569_v63  ;;  %v6250_v40 = vpop.eup %6249 }
 0x4d7   : > { %v1824_v24 = vadd.f32 %v1812_v27, %v1783_v22  ;;  %v1847_v42 = vadd.f32 1.0, %v6250_v40 }
 0x4d8   : > { %v1852_v5 = vmul.f32 %v1846_v43, %v1828_v19  ;;  %v1825_v29 = vadd.f32 %v1813_v61, %v1785_v41 }
 0x4d9   : > { %v1836_v56 = vmul.f32 0.70710677, %v1824_v24  ;;  %v1853_v55 = vmul.f32 %v1847_v42, %v1829_v58  ;;  %v1830_v1 = vmul.f32 0.5, %v1824_v24 }
 0x4da   : > { %v7127_v33 = vmul.f32 %v1870_v26, %v1852_v5  ;;  %v1837_v63 = vmul.f32 0.70710677, %v1825_v29  ;;  %v1831_v48 = vmul.f32 0.5, %v1825_v29 }
 0x4db   : > { %6251 = verf.f32 %v1836_v56  ;;  %v7140_v45 = vmul.f32 %v1874_v32, %v1853_v55 }
 0x4dc   : > { %v5693_v35 = vpack.i.bf16 %v7127_v33, %v7125_v37  ;;  %6253 = verf.f32 %v1837_v63 }
 0x4dd   : > { %v5728_v51 = vpack.i.bf16 %v7140_v45, %v7114_v21 }
 0x4de   : > { %5694 = vrot.lane.b32.xlu1 %v5693_v35, %s6326_s27  ;;  %5704 = vrot.lane.b32.xlu0 %v5693_v35, %s6328_s29 }
 0x4e2   : > { %5699 = vrot.lane.b32.xlu1 %v5693_v35, %s6327_s28  ;;  %5714 = vrot.lane.b32.xlu0 %v5693_v35, %s6330_s7 }
 0x4e5   : > { %v6252_v30 = vpop.eup %6251 }
 0x4e6   : > { %5709 = vrot.lane.b32.xlu1 %v5693_v35, %s6329_s30  ;;  %5724 = vrot.lane.b32.xlu0 %v5693_v35, %s6332_s9  ;;  %v6254_v44 = vpop.eup %6253  ;;  %v1848_v53 = vadd.f32 1.0, %v6252_v30 }
 0x4e7   : > { %v1849_v31 = vadd.f32 1.0, %v6254_v44 }
 0x4e8   : > { %v1854_v20 = vmul.f32 %v1848_v53, %v1830_v1 }
 0x4e9   : > { %v1855_v34 = vmul.f32 %v1849_v31, %v1831_v48 }
 0x4ea   : > { %5719 = vrot.lane.b32.xlu1 %v5693_v35, %s6331_s8  ;;  %2107 = vrot.lane.b32.xlu0 %v7127_v33, %s6334_s10  ;;  %v7158_v4 = vmul.f32 %v1878_v60, %v1854_v20 }
 0x4eb   : > { %v7160_v16 = vmul.f32 %v1882_v46, %v1855_v34 }
 0x4ec   : > { %v5783_v6 = vpack.i.bf16 %v7158_v4, %v7140_v45 }
 0x4ed   : > { %v5768_v47 = vpack.i.bf16 %v7160_v16, %v7158_v4  ;;  %v5793_v38 = vpack.i.bf16 %v6333_v10, %v7160_v16 }
 0x4ee   : > { %2105 = vrot.lane.b32.xlu1 %v7125_v37, %s6334_s10  ;;  %5729 = vrot.lane.b32.xlu0 %v5728_v51, %s6326_s27 }
 0x4f2   : > { %5734 = vrot.lane.b32.xlu1 %v5728_v51, %s6327_s28  ;;  %5739 = vrot.lane.b32.xlu0 %v5728_v51, %s6328_s29 }
 0x4f6   : > { %5744 = vrot.lane.b32.xlu1 %v5728_v51, %s6329_s30  ;;  %5749 = vrot.lane.b32.xlu0 %v5728_v51, %s6330_s7 }
 0x4fa   : > { %2037 = vrot.lane.b32.xlu1 %v6333_v10, %s6330_s7  ;;  %2011 = vrot.lane.b32.xlu0 %v6333_v10, %s6329_s30 }
 0x4fe   : > { %5754 = vrot.lane.b32.xlu1 %v5728_v51, %s6331_s8  ;;  %5769 = vrot.lane.b32.xlu0 %v5768_v47, %s6328_s29 }
 0x502   : > { %5759 = vrot.lane.b32.xlu1 %v5768_v47, %s6326_s27  ;;  %5774 = vrot.lane.b32.xlu0 %v5768_v47, %s6329_s30 }
 0x506   : > { %5764 = vrot.lane.b32.xlu1 %v5768_v47, %s6327_s28  ;;  %5789 = vrot.lane.b32.xlu0 %v5768_v47, %s6331_s8 }
 0x50a   : > { %5779 = vrot.lane.b32.xlu1 %v5768_v47, %s6330_s7  ;;  %2063 = vrot.lane.b32.xlu0 %v6333_v10, %s6331_s8 }
 0x50e   : > { %5784 = vrot.lane.b32.xlu1 %v5783_v6, %s6332_s9  ;;  %2109 = vrot.lane.b32.xlu0 %v7140_v45, %s6334_s10 }
 0x512   : > { %5794 = vrot.lane.b32.xlu1 %v5793_v38, %s6332_s9  ;;  %2113 = vrot.lane.b32.xlu0 %v7160_v16, %s6334_s10 }
 0x516   : > { %2111 = vrot.lane.b32.xlu1 %v7158_v4, %s6334_s10  ;;  %2135 = vperm.xlu0 %5798, %v4940_v13  }
 0x51a   : > { %2115 = vrot.lane.b32.xlu1 %v6333_v10, %s6334_s10 }
 0x545   : > { %v7200_v15 = vpop.permute.xlu1 %2103  ;;  %v7202_v49 = vpop.permute.xlu0 %2077 }
 0x550   : > { %v7204_v7 = vpop.permute.xlu1 %5694  ;;  %v7206_v2 = vpop.permute.xlu0 %5704 }
 0x551   : > { %v5697_v62 = vunpack.i.h.bf16 %v7204_v7  ;;  %v5696_v50 = vunpack.i.l.bf16 %v7204_v7  ;;  %v5707_v43 = vunpack.i.h.bf16 %v7206_v2  ;;  %v5706_v22 = vunpack.i.l.bf16 %v7206_v2 }
 0x553   : > { %v1936_v39 = vsel %vm299_vm0, %v5696_v50, %v5697_v62  ;;  %v1988_v58 = vsel %vm353_vm2, %v5706_v22, %v5707_v43 }
 0x554   : > { %v7213_v52 = vpop.permute.xlu1 %5699  ;;  %v7215_v14 = vpop.permute.xlu0 %5714  ;;  %v5118_v28 = vpack.c.bf16 %v1936_v39, %v7125_v37 }
 0x555   : > { %v5702_v23 = vunpack.i.h.bf16 %v7213_v52  ;;  %v5701_v19 = vunpack.i.l.bf16 %v7213_v52  ;;  %v5717_v35 = vunpack.i.h.bf16 %v7215_v14  ;;  %v5716_v40 = vunpack.i.l.bf16 %v7215_v14 }
 0x556   : > { %5119 = vmatprep.subr.bf16.mxu1 %v5118_v28 }
 0x557   : > { %v1962_v61 = vsel %vm326_vm1, %v5701_v19, %v5702_v23  ;;  %v2040_v47 = vsel %vm407_vm4, %v5716_v40, %v5717_v35 }
 0x558   : > { %v7218_v57 = vpop.permute.xlu1 %5709  ;;  %v7220_v26 = vpop.permute.xlu0 %5724  ;;  %v5122_v30 = vpack.c.bf16 %v1988_v58, %v1962_v61 }
 0x559   : > { %v5712_v27 = vunpack.i.h.bf16 %v7218_v57  ;;  %v5711_v24 = vunpack.i.l.bf16 %v7218_v57  ;;  %v5727_v48 = vunpack.i.h.bf16 %v7220_v26  ;;  %v5726_v60 = vunpack.i.l.bf16 %v7220_v26 }
 0x55b   : > { %v2014_v53 = vsel %vm380_vm3, %v5711_v24, %v5712_v27  ;;  %v2092_v61 = vsel %vm461_vm6, %v5726_v60, %v5727_v48 }
 0x55c   : > { %v7222_v0 = vpop.permute.xlu1 %5719  ;;  %v7224_v54 = vpop.permute.xlu0 %2107  ;;  %v5126_v13 = vpack.c.bf16 %v2040_v47, %v2014_v53 }
 0x55d   : > { %v5722_v51 = vunpack.i.h.bf16 %v7222_v0  ;;  %v5721_v44 = vunpack.i.l.bf16 %v7222_v0 }
 0x560   : > { %v7230_v3 = vpop.permute.xlu1 %2105  ;;  %v7232_v41 = vpop.permute.xlu0 %5729 }
 0x561   : > { %v5731_v5 = vunpack.i.l.bf16 %v7232_v41 }
 0x563   : > { %v1935_v29 = vsel %vm299_vm0, %v5731_v5, %v5696_v50  ;;  %v2066_v50 = vsel %vm434_vm5, %v5721_v44, %v5722_v51 }
 0x564   : > { %v7243_v56 = vpop.permute.xlu1 %5734  ;;  %v7245_v63 = vpop.permute.xlu0 %5739  ;;  %v5120_v42 = vpack.c.bf16 %v1935_v29, %v7114_v21  ;;  %v5130_v29 = vpack.c.bf16 %v2092_v61, %v2066_v50 }
 0x565   : > { %v5736_v55 = vunpack.i.l.bf16 %v7243_v56  ;;  %v5741_v32 = vunpack.i.l.bf16 %v7245_v63 }
 0x566   : > { %5121 = vmatpush1.bf16.msra.mxu1 %v5120_v42 }
 0x567   : > { %v1961_v31 = vsel %vm326_vm1, %v5736_v55, %v5701_v19  ;;  %v1987_v1 = vsel %vm353_vm2, %v5741_v32, %v5706_v22  ;;  %5123 = vmatprep.subr.bf16.mxu1 %v5122_v30  ;;  %v5737_v55 = vunpack.i.h.bf16 %v7243_v56  ;;  %v2091_v32 = vsel %vm461_vm6, %v7202_v49, %v5726_v60 }
 0x568   : > { %v7262_v46 = vpop.permute.xlu1 %5744  ;;  %v7264_v20 = vpop.permute.xlu0 %5749  ;;  %v5124_v34 = vpack.c.bf16 %v1987_v1, %v1961_v31  ;;  %v5742_v30 = vunpack.i.h.bf16 %v7245_v63  ;;  %v2117_v63 = vsel %vm488_vm7, %v7200_v15, %v7230_v3 }
 0x569   : > { %v5746_v6 = vunpack.i.l.bf16 %v7262_v46  ;;  %v5751_v38 = vunpack.i.l.bf16 %v7264_v20  ;;  %v1963_v49 = vsel %vm326_vm1, %v5702_v23, %v5737_v55  ;;  %v5747_v56 = vunpack.i.h.bf16 %v7262_v46 }
 0x56a   : > { %5125 = vmatpush1.bf16.msra.mxu1 %v5124_v34  ;;  %v5752_v15 = vunpack.i.h.bf16 %v7264_v20 }
 0x56b   : > { %v2013_v39 = vsel %vm380_vm3, %v5746_v6, %v5711_v24  ;;  %v2039_v28 = vsel %vm407_vm4, %v5751_v38, %v5716_v40  ;;  %5127 = vmatprep.subr.bf16.mxu1 %v5126_v13  ;;  %v5732_v40 = vunpack.i.h.bf16 %v7232_v41  ;;  %v2118_v38 = vsel %vm488_vm7, %v7230_v3, %v7224_v54 }
 0x56c   : > { %v7276_v19 = vpop.permute.xlu1 %2037  ;;  %v7278_v22 = vpop.permute.xlu0 %2011  ;;  %v5128_v5 = vpack.c.bf16 %v2039_v28, %v2013_v39  ;;  %v7321_v39 = vld [vmem:[%s8470_s1 + $0x18] sm:$0xff] }
 0x56d   : > { %v1937_v41 = vsel %vm299_vm0, %v5697_v62, %v5732_v40 }
 0x56e   : > { %5129 = vmatpush1.bf16.msra.mxu1 %v5128_v5 }
 0x56f   : > { %5131 = vmatprep.subr.bf16.mxu1 %v5130_v29 }
 0x570   : > { %v7283_v42 = vpop.permute.xlu1 %5754  ;;  %v5770_v58 = vpop.permute.xlu0 %5769 }
 0x571   : > { %v5756_v24 = vunpack.i.l.bf16 %v7283_v42  ;;  %v5771_v60 = vunpack.i.l.bf16 %v5770_v58  ;;  %v5772_v52 = vunpack.i.h.bf16 %v5770_v58 }
 0x573   : > { %v2065_v53 = vsel %vm434_vm5, %v5756_v24, %v5721_v44  ;;  %v1989_v44 = vsel %vm353_vm2, %v5707_v43, %v5742_v30  ;;  %v5136_v43 = vpack.c.bf16 %v1937_v41, %v7127_v33  ;;  %v1990_v24 = vsel %vm353_vm2, %v5742_v30, %v5771_v60 }
 0x574   : > { %v5760_v31 = vpop.permute.xlu1 %5759  ;;  %v7292_v1 = vpop.permute.xlu0 %5774  ;;  %v5132_v34 = vpack.c.bf16 %v2091_v32, %v2065_v53  ;;  %v5140_v20 = vpack.c.bf16 %v1989_v44, %v1963_v49  ;;  %v1992_v53 = vsel %vm353_vm2, %v5772_v52, %v7198_v25 }
 0x575   : > { %v5762_v47 = vunpack.i.h.bf16 %v5760_v31  ;;  %v5761_v6 = vunpack.i.l.bf16 %v5760_v31  ;;  %v5777_v28 = vunpack.i.h.bf16 %v7292_v1  ;;  %v5776_v5 = vunpack.i.l.bf16 %v7292_v1 }
 0x576   : > { %5133 = vmatpush1.bf16.msra.mxu1 %v5132_v34  ;;  %v2041_v31 = vsel %vm407_vm4, %v5717_v35, %v5752_v15  ;;  %v5757_v34 = vunpack.i.h.bf16 %v7283_v42 }
 0x577   : > { %2157 = vmatprep.subr.mxu1 %v2118_v38  ;;  %v1938_v7 = vsel %vm299_vm0, %v5732_v40, %v5761_v6  ;;  %v1940_v62 = vsel %vm299_vm0, %v5762_v47, %v7194_v8  ;;  %v1939_v23 = vsel %vm299_vm0, %v5761_v6, %v5762_v47  ;;  %v2015_v8 = vsel %vm380_vm3, %v5712_v27, %v5747_v56 }
 0x578   : > { %v5765_v46 = vpop.permute.xlu1 %5764  ;;  %v5134_v13 = vpack.c.bf16 %v1938_v7, %v7140_v45  ;;  %v5150_v50 = vpack.c.bf16 %v1940_v62, %v7160_v16  ;;  %v5790_v61 = vpop.permute.xlu0 %5789  ;;  %v5152_v29 = vpack.c.bf16 %v1939_v23, %v7158_v4  ;;  %v1991_v47 = vsel %vm353_vm2, %v5771_v60, %v5772_v52 }
 0x579   : > { %v5767_v2 = vunpack.i.h.bf16 %v5765_v46  ;;  %v5766_v3 = vunpack.i.l.bf16 %v5765_v46  ;;  %v2018_v25 = vsel %vm380_vm3, %v5777_v28, %v7278_v22  ;;  %v5791_v6 = vunpack.i.l.bf16 %v5790_v61 }
 0x57a   : > { %2158 = vmatpush1.msra.mxu1 %v2117_v63  ;;  %5135 = vmatprep.subr.bf16.mxu0 %v5134_v13  ;;  %v5144_v7 = vpack.c.bf16 %v2041_v31, %v2015_v8  ;;  %v2067_v22 = vsel %vm434_vm5, %v5722_v51, %v5757_v34  ;;  %v2017_v62 = vsel %vm380_vm3, %v5776_v5, %v5777_v28  ;;  %v5792_v52 = vunpack.i.h.bf16 %v5790_v61 }
 0x57b   : > { %5137 = vmatpush1.bf16.msra.mxu0 %v5136_v43  ;;  %5151 = vmatprep.subr.bf16.mxu1 %v5150_v50  ;;  %v1964_v58 = vsel %vm326_vm1, %v5737_v55, %v5766_v3  ;;  %v1965_v57 = vsel %vm326_vm1, %v5766_v3, %v5767_v2  ;;  %v1966_v32 = vsel %vm326_vm1, %v5767_v2, %v7196_v12 }
 0x57c   : > { %v5780_v40 = vpop.permute.xlu1 %5779  ;;  %4941 = vmatmul.mubr.msk.f32.vlgmr.msra.gmra.mrb[8].mxu1 %vm508_vm8, %v7321_v39  ;;  %v5138_v27 = vpack.c.bf16 %v1990_v24, %v1964_v58  ;;  %v5154_v30 = vpack.c.bf16 %v1992_v53, %v1966_v32  ;;  %v2016_v12 = vsel %vm380_vm3, %v5747_v56, %v5776_v5  ;;  %v5156_v14 = vpack.c.bf16 %v1991_v47, %v1965_v57  ;;  %v2064_v42 = vpop.permute.xlu0 %2063 }
 0x57d   : > { %v5782_v55 = vunpack.i.h.bf16 %v5780_v40  ;;  %v5781_v1 = vunpack.i.l.bf16 %v5780_v40  ;;  %5153 = vmatpush1.bf16.msra.mxu1 %v5152_v29  ;;  %2347 = vmatprep.mubr.f32.mxu1 %v6333_v10  ;;  %v2068_v46 = vsel %vm434_vm5, %v5757_v34, %v5791_v6  ;;  %v2069_v43 = vsel %vm434_vm5, %v5791_v6, %v5792_v52 }
 0x57e   : > { %5139 = vmatprep.subr.bf16.mxu0 %v5138_v27  ;;  %5155 = vmatprep.subr.bf16.mxu1 %v5154_v30  ;;  %v2070_v26 = vsel %vm434_vm5, %v5792_v52, %v2064_v42  ;;  %v4944_v42 = vld [vmem:[%s8472_s3 + $0x12] sm:$0x3f] }
 0x57f   : > { %5141 = vmatpush1.bf16.msra.mxu0 %v5140_v20  ;;  %v2042_v35 = vsel %vm407_vm4, %v5752_v15, %v5781_v1  ;;  %v2044_v38 = vsel %vm407_vm4, %v5782_v55, %v7276_v19  ;;  %v2043_v41 = vsel %vm407_vm4, %v5781_v1, %v5782_v55 }
 0x580   : > { %v5785_v49 = vpop.permute.xlu1 %5784  ;;  %v5142_v63 = vpack.c.bf16 %v2042_v35, %v2016_v12  ;;  %v5158_v44 = vpack.c.bf16 %v2044_v38, %v2018_v25  ;;  %v5160_v23 = vpack.c.bf16 %v2043_v41, %v2017_v62  ;;  %v2110_v3 = vpop.permute.xlu0 %2109 }
 0x581   : > { %v5787_v60 = vunpack.i.h.bf16 %v5785_v49  ;;  %v5786_v56 = vunpack.i.l.bf16 %v5785_v49  ;;  %5157 = vmatpush1.bf16.msra.mxu1 %v5156_v14  ;;  %v2119_v29 = vsel %vm488_vm7, %v7224_v54, %v2110_v3 }
 0x582   : > { %5143 = vmatprep.subr.bf16.mxu0 %v5142_v63  ;;  %5159 = vmatprep.subr.bf16.mxu1 %v5158_v44  ;;  %v2394_v44 = vrot.slane %v4944_v42, %v6587_v18 }
 0x583   : > { %v2093_v19 = vsel %vm461_vm6, %v5727_v48, %v5786_v56  ;;  %5145 = vmatpush1.bf16.msra.mxu0 %v5144_v7  ;;  %v2094_v13 = vsel %vm461_vm6, %v5786_v56, %v5787_v60 }
 0x584   : > { %v5795_v50 = vpop.permute.xlu1 %5794  ;;  %v5146_v15 = vpack.c.bf16 %v2094_v13, %v2068_v46  ;;  %v5148_v0 = vpack.c.bf16 %v2093_v19, %v2067_v22  ;;  %v2114_v58 = vpop.permute.xlu0 %2113  ;;  %v2398_v22 = vrot.slane %v4944_v42, %v6589_v9 }
 0x585   : > { %v5797_v2 = vunpack.i.h.bf16 %v5795_v50  ;;  %v5796_v51 = vunpack.i.l.bf16 %v5795_v50  ;;  %5161 = vmatpush1.bf16.msra.mxu1 %v5160_v23 }
 0x586   : > { %5147 = vmatprep.subr.bf16.mxu0 %v5146_v15 }
 0x587   : > { %v2095_v48 = vsel %vm461_vm6, %v5787_v60, %v5796_v51  ;;  %5149 = vmatpush1.bf16.msra.mxu0 %v5148_v0  ;;  %v2096_v8 = vsel %vm461_vm6, %v5796_v51, %v5797_v2 }
 0x588   : > { %v2112_v28 = vpop.permute.xlu1 %2111  ;;  %v5162_v5 = vpack.c.bf16 %v2096_v8, %v2070_v26  ;;  %v5164_v61 = vpack.c.bf16 %v2095_v48, %v2069_v43  ;;  %v2402_v48 = vrot.slane %v4944_v42, %v6591_v11 }
 0x589   : > { %v2120_v20 = vsel %vm488_vm7, %v2110_v3, %v2112_v28  ;;  %v2121_v40 = vsel %vm488_vm7, %v2112_v28, %v2114_v58  ;;  %v2390_v28 = vrot.slane %v4944_v42, %v6576_v59 }
 0x58a   : > { %2228 = vmatprep.subr.mxu0 %v2120_v20  ;;  %5163 = vmatprep.subr.bf16.mxu1 %v5162_v5 }
 0x58b   : > { %2229 = vmatpush1.msra.mxu0 %v2119_v29  ;;  %5165 = vmatpush1.bf16.msra.mxu1 %v5164_v61 }
 0x58c   : > { %v2116_v24 = vpop.permute.xlu1 %2115  ;;  %4942 = vmatmul.mubr.msk.f32.vlgmr.msra.gmra.mrb[10].mxu0 %vm508_vm8, %v7321_v39 }
 0x58d   : > { %v2122_v57 = vsel %vm488_vm7, %v2114_v58, %v2116_v24  ;;  %2740 = vmatprep.mubr.f32.mxu0 %v6333_v10 }
 0x58e   : > { %2299 = vmatprep.subr.mxu1 %v2122_v57 }
 0x58f   : > { %2300 = vmatpush1.msra.mxu1 %v2121_v40  ;;  %v2406_v40 = vrot.slane %v4944_v42, %v6621_v36 }
 0x590   : > { %4943 = vmatmul.mubr.msk.f32.vlgmr.msra.gmra.mrb[10].mxu1 %vm508_vm8, %v7321_v39 }
 0x591   : > { %2811 = vmatprep.mubr.f32.mxu1 %v6333_v10 }
 0x595   : > { %v2136_v32 = vpop.permute.xlu0 %2135 }
 0x64f   : > { %v2207_v54 = vpop.f32.mrb[8].mxu1 }
 0x650   : > { %v2209_v27 = vpop.f32.mrb[9].mxu1  ;;  %v2208_v47 = vadd.f32 %v2207_v54, %v2136_v32 }
 0x651   : > { %v2210_v53 = vadd.f32 %v2209_v27, %v2136_v32 }
 0x652   : > { %v2360_v35 = vmul.f32 0.70710677, %v2208_v47  ;;  %v2354_v2 = vmul.f32 0.5, %v2208_v47 }
 0x653   : > { %v2361_v31 = vmul.f32 0.70710677, %v2210_v53  ;;  %v2355_v38 = vmul.f32 0.5, %v2210_v53 }
 0x655   : > { %6255 = verf.f32 %v2361_v31 }
 0x65f   : > { %v2278_v55 = vpop.f32.mrb[10].mxu0  ;;  %v6256_v39 = vpop.eup %6255 }
 0x660   : > { %v2279_v1 = vadd.f32 %v2278_v55, %v2136_v32  ;;  %v2280_v30 = vpop.f32.mrb[11].mxu0  ;;  %v2373_v41 = vadd.f32 1.0, %v6256_v39  ;;  %v2410_v55 = vrot.slane %v4944_v42, %v6623_v17 }
 0x661   : > { %v2281_v34 = vadd.f32 %v2280_v30, %v2136_v32 }
 0x662   : > { %v2362_v12 = vmul.f32 0.70710677, %v2279_v1  ;;  %v2379_v60 = vmul.f32 %v2373_v41, %v2355_v38  ;;  %v2356_v56 = vmul.f32 0.5, %v2279_v1 }
 0x663   : > { %v2349_v25 = vpop.f32.mrb[10].mxu1  ;;  %v2363_v6 = vmul.f32 0.70710677, %v2281_v34  ;;  %v2357_v3 = vmul.f32 0.5, %v2281_v34  ;;  %v6316_v34 = vld [vmem:[%s6385_s26 + $0x30] sm:$0xff] }
 0x664   : > { %6257 = verf.f32 %v2362_v12  ;;  %v2351_v14 = vpop.f32.mrb[11].mxu1  ;;  %v2350_v49 = vadd.f32 %v2349_v25, %v2136_v32  ;;  %v7380_v23 = vmul.f32 %v2394_v44, %v2379_v60  ;;  %v4946_v12 = vld [vmem:[%s8471_s2 + $0x20] sm:$0xff] }
 0x665   : > { %6259 = verf.f32 %v2363_v6  ;;  %v2352_v50 = vadd.f32 %v2351_v14, %v2136_v32 }
 0x666   : > { %6261 = verf.f32 %v2360_v35  ;;  %v2364_v62 = vmul.f32 0.70710677, %v2350_v49  ;;  %v2358_v24 = vmul.f32 0.5, %v2350_v49 }
 0x667   : > { %v2365_v43 = vmul.f32 0.70710677, %v2352_v50  ;;  %v2359_v53 = vmul.f32 0.5, %v2352_v50 }
 0x668   : > { %6263 = verf.f32 %v2364_v62 }
 0x669   : > { %6265 = verf.f32 %v2365_v43 }
 0x66e   : > { %v6258_v63 = vpop.eup %6257 }
 0x66f   : > { %v2374_v7 = vadd.f32 1.0, %v6258_v63  ;;  %v6260_v19 = vpop.eup %6259 }
 0x670   : > { %v6262_v13 = vpop.eup %6261  ;;  %v2375_v15 = vadd.f32 1.0, %v6260_v19 }
 0x671   : > { %v2380_v52 = vmul.f32 %v2374_v7, %v2356_v56  ;;  %v2372_v51 = vadd.f32 1.0, %v6262_v13 }
 0x672   : > { %v2381_v26 = vmul.f32 %v2375_v15, %v2357_v3  ;;  %v6264_v61 = vpop.eup %6263 }
 0x673   : > { %v7382_v46 = vmul.f32 %v2398_v22, %v2380_v52  ;;  %v2378_v8 = vmul.f32 %v2372_v51, %v2354_v2  ;;  %v2376_v29 = vadd.f32 1.0, %v6264_v61  ;;  %v6266_v54 = vpop.eup %6265 }
 0x674   : > { %v7392_v5 = vmul.f32 %v2402_v48, %v2381_v26  ;;  %v2377_v32 = vadd.f32 1.0, %v6266_v54 }
 0x675   : > { %v5809_v0 = vpack.i.bf16 %v7382_v46, %v7380_v23  ;;  %v7394_v20 = vmul.f32 %v2390_v28, %v2378_v8  ;;  %v2382_v57 = vmul.f32 %v2376_v29, %v2358_v24 }
 0x676   : > { %v2383_v31 = vmul.f32 %v2377_v32, %v2359_v53 }
 0x677   : > { %5810 = vrot.lane.b32.xlu0 %v5809_v0, %s6328_s29  ;;  %5800 = vrot.lane.b32.xlu1 %v5809_v0, %s6326_s27  ;;  %v5844_v58 = vpack.i.bf16 %v7392_v5, %v7394_v20  ;;  %v7405_v27 = vmul.f32 %v2406_v40, %v2382_v57 }
 0x678   : > { %v7413_v1 = vmul.f32 %v2410_v55, %v2383_v31 }
 0x67a   : > { %v5869_v30 = vpack.i.bf16 %v7413_v1, %v7405_v27  ;;  %v5889_v47 = vpack.i.bf16 %v6316_v34, %v7413_v1 }
 0x67b   : > { %5820 = vrot.lane.b32.xlu0 %v5809_v0, %s6330_s7  ;;  %5805 = vrot.lane.b32.xlu1 %v5809_v0, %s6327_s28 }
 0x67f   : > { %5830 = vrot.lane.b32.xlu0 %v5809_v0, %s6332_s9  ;;  %5815 = vrot.lane.b32.xlu1 %v5809_v0, %s6329_s30 }
 0x683   : > { %5825 = vrot.lane.b32.xlu1 %v5809_v0, %s6331_s8  ;;  %5845 = vrot.lane.b32.xlu0 %v5844_v58, %s6328_s29 }
 0x687   : > { %5855 = vrot.lane.b32.xlu0 %v5844_v58, %s6330_s7  ;;  %5835 = vrot.lane.b32.xlu1 %v5844_v58, %s6326_s27 }
 0x68b   : > { %2568 = vrot.lane.b32.xlu0 %v7405_v27, %s6330_s7  ;;  %5840 = vrot.lane.b32.xlu1 %v5844_v58, %s6327_s28 }
 0x68f   : > { %5865 = vrot.lane.b32.xlu0 %v5844_v58, %s6332_s9  ;;  %5850 = vrot.lane.b32.xlu1 %v5844_v58, %s6329_s30 }
 0x693   : > { %2620 = vrot.lane.b32.xlu0 %v7405_v27, %s6332_s9  ;;  %2542 = vrot.lane.b32.xlu1 %v7405_v27, %s6329_s30 }
 0x697   : > { %5870 = vrot.lane.b32.xlu0 %v5869_v30, %s6326_s27  ;;  %5860 = vrot.lane.b32.xlu1 %v5844_v58, %s6331_s8 }
 0x69b   : > { %5880 = vrot.lane.b32.xlu0 %v5869_v30, %s6328_s29  ;;  %2594 = vrot.lane.b32.xlu1 %v7405_v27, %s6331_s8 }
 0x69f   : > { %2640 = vrot.lane.b32.xlu0 %v7380_v23, %s6334_s10  ;;  %5875 = vrot.lane.b32.xlu1 %v5869_v30, %s6327_s28 }
 0x6a3   : > { %2638 = vrot.lane.b32.xlu0 %v7394_v20, %s6334_s10  ;;  %2468 = vrot.lane.b32.xlu1 %v6316_v34, %s6326_s27 }
 0x6a7   : > { %2520 = vrot.lane.b32.xlu0 %v6316_v34, %s6328_s29  ;;  %2642 = vrot.lane.b32.xlu1 %v7382_v46, %s6334_s10 }
 0x6ab   : > { %2646 = vrot.lane.b32.xlu0 %v7405_v27, %s6334_s10  ;;  %2494 = vrot.lane.b32.xlu1 %v6316_v34, %s6327_s28 }
 0x6af   : > { %5890 = vrot.lane.b32.xlu0 %v5889_v47, %s6330_s7  ;;  %2644 = vrot.lane.b32.xlu1 %v7392_v5, %s6334_s10 }
 0x6b3   : > { %5900 = vrot.lane.b32.xlu0 %v5889_v47, %s6332_s9  ;;  %5885 = vrot.lane.b32.xlu1 %v5889_v47, %s6329_s30 }
 0x6b7   : > { %2650 = vrot.lane.b32.xlu0 %v6316_v34, %s6334_s10  ;;  %5895 = vrot.lane.b32.xlu1 %v5889_v47, %s6331_s8 }
 0x6bb   : > { %2898 = vrot.lane.b32.xlu0 %v7125_v37, %s6334_s10  ;;  %2648 = vrot.lane.b32.xlu1 %v7413_v1, %s6334_s10 }
 0x6bf   : > { %2902 = vrot.lane.b32.xlu0 %v7140_v45, %s6334_s10  ;;  %2670 = vperm.xlu1 %5482, %v4946_v12  }
 0x6c3   : > { %2904 = vrot.lane.b32.xlu0 %v7158_v4, %s6334_s10  ;;  %2900 = vrot.lane.b32.xlu1 %v7127_v33, %s6334_s10 }
 0x6c7   : > { %2896 = vrot.lane.b32.xlu1 %v7114_v21, %s6334_s10  ;;  %2908 = vrot.lane.b32.xlu0 %v6333_v10, %s6334_s10 }
 0x6cb   : > { %2906 = vrot.lane.b32.xlu1 %v7160_v16, %s6334_s10  ;;  %3035 = vrot.lane.b32.xlu0 %v6333_v10, %s6326_s27 }
 0x6cf   : > { %3061 = vrot.lane.b32.xlu0 %v6333_v10, %s6327_s28  ;;  %3087 = vrot.lane.b32.xlu1 %v6333_v10, %s6328_s29 }
 0x6e9   : > { %v7472_v37 = vpop.permute.xlu0 %5810  ;;  %v7474_v33 = vpop.permute.xlu1 %5800 }
 0x6ea   : > { %v5803_v21 = vunpack.i.h.bf16 %v7474_v33  ;;  %v5802_v45 = vunpack.i.l.bf16 %v7474_v33  ;;  %v5813_v49 = vunpack.i.h.bf16 %v7472_v37  ;;  %v5812_v63 = vunpack.i.l.bf16 %v7472_v37 }
 0x6ec   : > { %v2471_v4 = vsel %vm299_vm0, %v5802_v45, %v5803_v21  ;;  %v2523_v2 = vsel %vm353_vm2, %v5812_v63, %v5813_v49 }
 0x6ed   : > { %v7481_v16 = vpop.permute.xlu0 %5820  ;;  %v7483_v25 = vpop.permute.xlu1 %5805  ;;  %v5166_v6 = vpack.c.bf16 %v2471_v4, %v7380_v23 }
 0x6ee   : > { %v5808_v41 = vunpack.i.h.bf16 %v7483_v25  ;;  %v5807_v42 = vunpack.i.l.bf16 %v7483_v25  ;;  %v5823_v23 = vunpack.i.h.bf16 %v7481_v16  ;;  %v5822_v13 = vunpack.i.l.bf16 %v7481_v16 }
 0x6ef   : > { %5167 = vmatprep.subr.bf16.mxu0 %v5166_v6 }
 0x6f0   : > { %v2497_v62 = vsel %vm326_vm1, %v5807_v42, %v5808_v41  ;;  %v2575_v40 = vsel %vm407_vm4, %v5822_v13, %v5823_v23 }
 0x6f1   : > { %v7486_v14 = vpop.permute.xlu0 %5830  ;;  %v7488_v35 = vpop.permute.xlu1 %5815  ;;  %v5170_v3 = vpack.c.bf16 %v2523_v2, %v2497_v62 }
 0x6f2   : > { %v5818_v7 = vunpack.i.h.bf16 %v7488_v35  ;;  %v5817_v22 = vunpack.i.l.bf16 %v7488_v35  ;;  %v5832_v29 = vunpack.i.l.bf16 %v7486_v14 }
 0x6f4   : > { %v2549_v48 = vsel %vm380_vm3, %v5817_v22, %v5818_v7 }
 0x6f5   : > { %v7490_v39 = vpop.permute.xlu1 %5825  ;;  %v7492_v38 = vpop.permute.xlu0 %5845  ;;  %v5174_v32 = vpack.c.bf16 %v2575_v40, %v2549_v48 }
 0x6f6   : > { %v5847_v52 = vunpack.i.l.bf16 %v7492_v38  ;;  %v5828_v43 = vunpack.i.h.bf16 %v7490_v39  ;;  %v5827_v26 = vunpack.i.l.bf16 %v7490_v39 }
 0x6f8   : > { %v2522_v8 = vsel %vm353_vm2, %v5847_v52, %v5812_v63  ;;  %v2601_v53 = vsel %vm434_vm5, %v5827_v26, %v5828_v43 }
 0x6f9   : > { %v7498_v44 = vpop.permute.xlu0 %5855  ;;  %v5836_v60 = vpop.permute.xlu1 %5835 }
 0x6fa   : > { %v5837_v56 = vunpack.i.l.bf16 %v5836_v60  ;;  %v5857_v28 = vunpack.i.l.bf16 %v7498_v44  ;;  %v5838_v4 = vunpack.i.h.bf16 %v5836_v60 }
 0x6fc   : > { %v2470_v19 = vsel %vm299_vm0, %v5837_v56, %v5802_v45  ;;  %v2574_v31 = vsel %vm407_vm4, %v5857_v28, %v5822_v13  ;;  %v2472_v62 = vsel %vm299_vm0, %v5803_v21, %v5838_v4  ;;  %v5848_v21 = vunpack.i.h.bf16 %v7492_v38 }
 0x6fd   : > { %v7509_v50 = vpop.permute.xlu0 %2568  ;;  %v7511_v15 = vpop.permute.xlu1 %5840  ;;  %v5168_v0 = vpack.c.bf16 %v2470_v19, %v7394_v20  ;;  %v5833_v20 = vunpack.i.h.bf16 %v7486_v14 }
 0x6fe   : > { %v5842_v51 = vunpack.i.l.bf16 %v7511_v15  ;;  %v5843_v48 = vunpack.i.h.bf16 %v7511_v15  ;;  %v2524_v38 = vsel %vm353_vm2, %v5813_v49, %v5848_v21 }
 0x6ff   : > { %5169 = vmatpush1.bf16.msra.mxu0 %v5168_v0  ;;  %v2627_v12 = vsel %vm461_vm6, %v5832_v29, %v5833_v20 }
 0x700   : > { %v2496_v61 = vsel %vm326_vm1, %v5842_v51, %v5807_v42  ;;  %5171 = vmatprep.subr.bf16.mxu0 %v5170_v3  ;;  %v5178_v45 = vpack.c.bf16 %v2627_v12, %v2601_v53  ;;  %v5184_v3 = vpack.c.bf16 %v2472_v62, %v7382_v46 }
 0x701   : > { %v7528_v58 = vpop.permute.xlu0 %5865  ;;  %v5851_v24 = vpop.permute.xlu1 %5850  ;;  %v5172_v57 = vpack.c.bf16 %v2522_v8, %v2496_v61 }
 0x702   : > { %v5852_v54 = vunpack.i.l.bf16 %v5851_v24  ;;  %v5867_v6 = vunpack.i.l.bf16 %v7528_v58  ;;  %v5853_v28 = vunpack.i.h.bf16 %v5851_v24 }
 0x703   : > { %5173 = vmatpush1.bf16.msra.mxu0 %v5172_v57 }
 0x704   : > { %v2548_v55 = vsel %vm380_vm3, %v5852_v54, %v5817_v22  ;;  %5175 = vmatprep.subr.bf16.mxu0 %v5174_v32  ;;  %v2626_v52 = vsel %vm461_vm6, %v5867_v6, %v5832_v29  ;;  %v5858_v29 = vunpack.i.h.bf16 %v7498_v44  ;;  %v2550_v25 = vsel %vm380_vm3, %v5818_v7, %v5853_v28  ;;  %v7594_v6 = vld [vmem:[%s8470_s1 + $0x20] sm:$0xff] }
 0x705   : > { %v7538_v30 = vpop.permute.xlu0 %2620  ;;  %v7540_v34 = vpop.permute.xlu1 %2542  ;;  %v5176_v47 = vpack.c.bf16 %v2574_v31, %v2548_v55  ;;  %v5868_v31 = vunpack.i.h.bf16 %v7528_v58 }
 0x706   : > { %v2551_v46 = vsel %vm380_vm3, %v5853_v28, %v7540_v34  ;;  %v2577_v24 = vsel %vm407_vm4, %v5858_v29, %v7509_v50  ;;  %v2576_v37 = vsel %vm407_vm4, %v5823_v23, %v5858_v29 }
 0x707   : > { %5177 = vmatpush1.bf16.msra.mxu0 %v5176_v47  ;;  %v5190_v55 = vpack.c.bf16 %v2577_v24, %v2551_v46  ;;  %v2629_v35 = vsel %vm461_vm6, %v5868_v31, %v7538_v30 }
 0x708   : > { %5179 = vmatprep.subr.bf16.mxu0 %v5178_v45  ;;  %v5192_v45 = vpack.c.bf16 %v2576_v37, %v2550_v25 }
 0x709   : > { %v5871_v42 = vpop.permute.xlu0 %5870  ;;  %v5861_v63 = vpop.permute.xlu1 %5860 }
 0x70a   : > { %v5872_v56 = vunpack.i.l.bf16 %v5871_v42  ;;  %v5862_v22 = vunpack.i.l.bf16 %v5861_v63  ;;  %v5863_v32 = vunpack.i.h.bf16 %v5861_v63 }
 0x70c   : > { %v2600_v19 = vsel %vm434_vm5, %v5862_v22, %v5827_v26  ;;  %v2473_v13 = vsel %vm299_vm0, %v5838_v4, %v5872_v56  ;;  %v2602_v16 = vsel %vm434_vm5, %v5828_v43, %v5863_v32 }
 0x70d   : > { %v7552_v0 = vpop.permute.xlu0 %5880  ;;  %v7554_v60 = vpop.permute.xlu1 %2594  ;;  %v5180_v2 = vpack.c.bf16 %v2626_v52, %v2600_v19  ;;  %v5182_v51 = vpack.c.bf16 %v2473_v13, %v7392_v5  ;;  %v2498_v5 = vsel %vm326_vm1, %v5808_v41, %v5843_v48  ;;  %v5873_v41 = vunpack.i.h.bf16 %v5871_v42 }
 0x70e   : > { %v5882_v33 = vunpack.i.l.bf16 %v7552_v0  ;;  %v5188_v53 = vpack.c.bf16 %v2524_v38, %v2498_v5  ;;  %v2603_v49 = vsel %vm434_vm5, %v5863_v32, %v7554_v60  ;;  %v5883_v39 = vunpack.i.h.bf16 %v7552_v0 }
 0x70f   : > { %5181 = vmatpush1.bf16.msra.mxu0 %v5180_v2  ;;  %5183 = vmatprep.subr.bf16.mxu1 %v5182_v51  ;;  %v2474_v58 = vsel %vm299_vm0, %v5872_v56, %v5873_v41  ;;  %v5194_v63 = vpack.c.bf16 %v2629_v35, %v2603_v49  ;;  %v2628_v56 = vsel %vm461_vm6, %v5833_v20, %v5868_v31 }
 0x710   : > { %5185 = vmatpush1.bf16.msra.mxu1 %v5184_v3  ;;  %v2525_v57 = vsel %vm353_vm2, %v5848_v21, %v5882_v33  ;;  %v5200_v52 = vpack.c.bf16 %v2474_v58, %v7405_v27  ;;  %v5196_v19 = vpack.c.bf16 %v2628_v56, %v2602_v16  ;;  %v2526_v0 = vsel %vm353_vm2, %v5882_v33, %v5883_v39 }
 0x711   : > { %v2641_v26 = vpop.permute.xlu0 %2640  ;;  %v5876_v8 = vpop.permute.xlu1 %5875 }
 0x712   : > { %v5877_v61 = vunpack.i.l.bf16 %v5876_v8  ;;  %v5878_v23 = vunpack.i.h.bf16 %v5876_v8 }
 0x714   : > { %v2499_v15 = vsel %vm326_vm1, %v5843_v48, %v5877_v61  ;;  %v2500_v13 = vsel %vm326_vm1, %v5877_v61, %v5878_v23 }
 0x715   : > { %v2639_v40 = vpop.permute.xlu0 %2638  ;;  %v2469_v44 = vpop.permute.xlu1 %2468  ;;  %v5186_v54 = vpack.c.bf16 %v2525_v57, %v2499_v15  ;;  %v5204_v3 = vpack.c.bf16 %v2526_v0, %v2500_v13  ;;  %v7639_v0 = vld [vmem:[%s8472_s3 + $0x18] sm:$0x3f] }
 0x716   : > { %v2475_v7 = vsel %vm299_vm0, %v5873_v41, %v2469_v44  ;;  %v2652_v42 = vsel %vm488_vm7, %v2639_v40, %v2641_v26 }
 0x717   : > { %5187 = vmatprep.subr.bf16.mxu1 %v5186_v54  ;;  %v5198_v43 = vpack.c.bf16 %v2475_v7, %v7413_v1 }
 0x718   : > { %5189 = vmatpush1.bf16.msra.mxu1 %v5188_v53 }
 0x719   : > { %v2521_v47 = vpop.permute.xlu0 %2520  ;;  %v2643_v12 = vpop.permute.xlu1 %2642  ;;  %5191 = vmatprep.subr.bf16.mxu1 %v5190_v55 }
 0x71a   : > { %v2653_v4 = vsel %vm488_vm7, %v2641_v26, %v2643_v12  ;;  %v2527_v14 = vsel %vm353_vm2, %v5883_v39, %v2521_v47 }
 0x71b   : > { %2692 = vmatprep.subr.mxu0 %v2653_v4 }
 0x71c   : > { %2693 = vmatpush1.msra.mxu0 %v2652_v42  ;;  %5193 = vmatpush1.bf16.msra.mxu1 %v5192_v45 }
 0x71d   : > { %v2647_v22 = vpop.permute.xlu0 %2646  ;;  %v2495_v62 = vpop.permute.xlu1 %2494  ;;  %4947 = vmatmul.mubr.msk.f32.vlgmr.msra.gmra.mrb[12].mxu0 %vm508_vm8, %v7594_v6  ;;  %5195 = vmatprep.subr.bf16.mxu1 %v5194_v63 }
 0x71e   : > { %v2501_v20 = vsel %vm326_vm1, %v5878_v23, %v2495_v62  ;;  %5199 = vmatprep.subr.bf16.mxu0 %v5198_v43  ;;  %2882 = vmatprep.mubr.f32.mxu0 %v6333_v10 }
 0x71f   : > { %v5202_v1 = vpack.c.bf16 %v2527_v14, %v2501_v20  ;;  %5201 = vmatpush1.bf16.msra.mxu0 %v5200_v52 }
 0x720   : > { %5197 = vmatpush1.bf16.msra.mxu1 %v5196_v19 }
 0x721   : > { %v5891_v2 = vpop.permute.xlu0 %5890  ;;  %v2645_v51 = vpop.permute.xlu1 %2644  ;;  %5203 = vmatprep.subr.bf16.mxu0 %v5202_v1 }
 0x722   : > { %v2655_v27 = vsel %vm488_vm7, %v2645_v51, %v2647_v22  ;;  %v2654_v48 = vsel %vm488_vm7, %v2643_v12, %v2645_v51  ;;  %v5893_v21 = vunpack.i.h.bf16 %v5891_v2  ;;  %v5892_v26 = vunpack.i.l.bf16 %v5891_v2 }
 0x723   : > { %5205 = vmatpush1.bf16.msra.mxu0 %v5204_v3  ;;  %2763 = vmatprep.subr.mxu1 %v2655_v27 }
 0x724   : > { %2764 = vmatpush1.msra.mxu1 %v2654_v48  ;;  %v2578_v29 = vsel %vm407_vm4, %v7509_v50, %v5892_v26  ;;  %v2579_v5 = vsel %vm407_vm4, %v5892_v26, %v5893_v21  ;;  %v2964_v48 = vrot.slane %v7639_v0, %v6576_v59 }
 0x725   : > { %v5901_v8 = vpop.permute.xlu0 %5900  ;;  %v5886_v28 = vpop.permute.xlu1 %5885  ;;  %4948 = vmatmul.mubr.msk.f32.vlgmr.msra.gmra.mrb[12].mxu1 %vm508_vm8, %v7594_v6 }
 0x726   : > { %v5888_v33 = vunpack.i.h.bf16 %v5886_v28  ;;  %v5887_v61 = vunpack.i.l.bf16 %v5886_v28  ;;  %3307 = vmatprep.mubr.f32.mxu1 %v6333_v10  ;;  %v5903_v46 = vunpack.i.h.bf16 %v5901_v8  ;;  %v5902_v15 = vunpack.i.l.bf16 %v5901_v8 }
 0x728   : > { %v2552_v57 = vsel %vm380_vm3, %v7540_v34, %v5887_v61  ;;  %v2553_v38 = vsel %vm380_vm3, %v5887_v61, %v5888_v33  ;;  %v2630_v41 = vsel %vm461_vm6, %v7538_v30, %v5902_v15  ;;  %v2631_v53 = vsel %vm461_vm6, %v5902_v15, %v5903_v46 }
 0x729   : > { %v5896_v24 = vpop.permute.xlu1 %5895  ;;  %v5206_v40 = vpack.c.bf16 %v2579_v5, %v2553_v38  ;;  %v5208_v44 = vpack.c.bf16 %v2578_v29, %v2552_v57  ;;  %v2651_v37 = vpop.permute.xlu0 %2650  ;;  %v2968_v46 = vrot.slane %v7639_v0, %v6587_v18  ;;  %v2972_v15 = vrot.slane %v7639_v0, %v6589_v9 }
 0x72a   : > { %v5898_v54 = vunpack.i.h.bf16 %v5896_v24  ;;  %v5897_v25 = vunpack.i.l.bf16 %v5896_v24 }
 0x72b   : > { %5207 = vmatprep.subr.bf16.mxu0 %v5206_v40 }
 0x72c   : > { %v2604_v50 = vsel %vm434_vm5, %v7554_v60, %v5897_v25  ;;  %5209 = vmatpush1.bf16.msra.mxu0 %v5208_v44  ;;  %v2605_v32 = vsel %vm434_vm5, %v5897_v25, %v5898_v54 }
 0x72d   : > { %v2649_v34 = vpop.permute.xlu1 %2648  ;;  %v5210_v31 = vpack.c.bf16 %v2631_v53, %v2605_v32  ;;  %v5212_v55 = vpack.c.bf16 %v2630_v41, %v2604_v50  ;;  %v2899_v7 = vpop.permute.xlu0 %2898 }
 0x72e   : > { %v2657_v49 = vsel %vm488_vm7, %v2649_v34, %v2651_v37  ;;  %v2656_v35 = vsel %vm488_vm7, %v2647_v22, %v2649_v34 }
 0x72f   : > { %5211 = vmatprep.subr.bf16.mxu0 %v5210_v31 }
 0x730   : > { %5213 = vmatpush1.bf16.msra.mxu0 %v5212_v55 }
 0x731   : > { %2834 = vmatprep.subr.mxu0 %v2657_v49  ;;  %v2903_v56 = vpop.permute.xlu0 %2902 }
 0x734   : > { %2835 = vmatpush1.msra.mxu0 %v2656_v35 }
 0x735   : > { %4949 = vmatmul.mubr.msk.f32.vlgmr.msra.gmra.mrb[14].mxu0 %vm508_vm8, %v7594_v6  ;;  %v2905_v19 = vpop.permute.xlu0 %2904 }
 0x736   : > { %3378 = vmatprep.mubr.f32.mxu0 %v6333_v10  ;;  %v2913_v1 = vsel %vm488_vm7, %v2903_v56, %v2905_v19 }
 0x739   : > { %v2909_v25 = vpop.permute.xlu0 %2908 }
 0x73e   : > { %v2671_v30 = vpop.permute.xlu1 %2670 }
 0x742   : > { %v2901_v60 = vpop.permute.xlu1 %2900 }
 0x743   : > { %v2911_v42 = vsel %vm488_vm7, %v2899_v7, %v2901_v60  ;;  %v2912_v52 = vsel %vm488_vm7, %v2901_v60, %v2903_v56 }
 0x746   : > { %v2897_v47 = vpop.permute.xlu1 %2896 }
 0x747   : > { %v2910_v16 = vsel %vm488_vm7, %v2897_v47, %v2899_v7 }
 0x74a   : > { %v2907_v38 = vpop.permute.xlu1 %2906 }
 0x74b   : > { %v2914_v32 = vsel %vm488_vm7, %v2905_v19, %v2907_v38  ;;  %v2915_v55 = vsel %vm488_vm7, %v2907_v38, %v2909_v25 }
 0x7f0   : > { %v2742_v12 = vpop.f32.mrb[12].mxu0 }
 0x7f1   : > { %v2743_v45 = vadd.f32 %v2742_v12, %v2671_v30  ;;  %v2744_v58 = vpop.f32.mrb[13].mxu0 }
 0x7f2   : > { %v2745_v23 = vadd.f32 %v2744_v58, %v2671_v30 }
 0x7f3   : > { %v2922_v4 = vadd.f32 %v2910_v16, %v2743_v45  ;;  %v2976_v45 = vrot.slane %v7639_v0, %v6591_v11 }
 0x7f4   : > { %v2923_v63 = vadd.f32 %v2911_v42, %v2745_v23 }
 0x7f5   : > { %v2934_v39 = vmul.f32 0.70710677, %v2922_v4  ;;  %v2928_v3 = vmul.f32 0.5, %v2922_v4 }
 0x7f6   : > { %v2935_v43 = vmul.f32 0.70710677, %v2923_v63  ;;  %v2929_v61 = vmul.f32 0.5, %v2923_v63 }
 0x7f7   : > { %6267 = verf.f32 %v2934_v39 }
 0x7f8   : > { %v2813_v6 = vpop.f32.mrb[12].mxu1  ;;  %6269 = verf.f32 %v2935_v43  ;;  %v2980_v43 = vrot.slane %v7639_v0, %v6621_v36 }
 0x7f9   : > { %v2814_v22 = vadd.f32 %v2813_v6, %v2671_v30  ;;  %v2815_v62 = vpop.f32.mrb[13].mxu1  ;;  %v2984_v6 = vrot.slane %v7639_v0, %v6623_v17  ;;  %v7723_v0 = vpop.permute.xlu0 %3035 }
 0x7fa   : > { %v2816_v14 = vadd.f32 %v2815_v62, %v2671_v30 }
 0x7fb   : > { %v2924_v13 = vadd.f32 %v2912_v52, %v2814_v22 }
 0x7fc   : > { %v2925_v2 = vadd.f32 %v2913_v1, %v2816_v14  ;;  %v4952_v1 = vld [vmem:[%s8471_s2 + $0x28] sm:$0xff] }
 0x7fd   : > { %v2936_v20 = vmul.f32 0.70710677, %v2924_v13  ;;  %v2930_v40 = vmul.f32 0.5, %v2924_v13 }
 0x7fe   : > { %v2937_v26 = vmul.f32 0.70710677, %v2925_v2  ;;  %v2931_v47 = vmul.f32 0.5, %v2925_v2  ;;  %v7725_v2 = vpop.permute.xlu0 %3061 }
 0x7ff   : > { %6271 = verf.f32 %v2936_v20 }
 0x800   : > { %6273 = verf.f32 %v2937_v26 }
 0x801   : > { %v6268_v51 = vpop.eup %6267 }
 0x802   : > { %v2946_v27 = vadd.f32 1.0, %v6268_v51  ;;  %v6270_v21 = vpop.eup %6269  ;;  %v7727_v51 = vpop.permute.xlu1 %3087 }
 0x803   : > { %v2947_v33 = vadd.f32 1.0, %v6270_v21 }
 0x804   : > { %v2952_v8 = vmul.f32 %v2946_v27, %v2928_v3 }
 0x805   : > { %v2953_v24 = vmul.f32 %v2947_v33, %v2929_v61 }
 0x806   : > { %v7643_v28 = vmul.f32 %v2964_v48, %v2952_v8 }
 0x807   : > { %v7654_v53 = vmul.f32 %v2968_v46, %v2953_v24 }
 0x808   : > { %v2884_v29 = vpop.f32.mrb[14].mxu0  ;;  %3205 = vrot.lane.b32.xlu1 %v7643_v28, %s6334_s10  ;;  %3179 = vrot.lane.b32.xlu0 %v7643_v28, %s6332_s9 }
 0x809   : > { %v6272_v5 = vpop.eup %6271  ;;  %v2886_v57 = vpop.f32.mrb[15].mxu0  ;;  %v2885_v54 = vadd.f32 %v2884_v29, %v2671_v30 }
 0x80a   : > { %v2948_v44 = vadd.f32 1.0, %v6272_v5  ;;  %v2887_v41 = vadd.f32 %v2886_v57, %v2671_v30  ;;  %v6274_v35 = vpop.eup %6273 }
 0x80b   : > { %v2926_v31 = vadd.f32 %v2914_v32, %v2885_v54  ;;  %v2949_v7 = vadd.f32 1.0, %v6274_v35 }
 0x80c   : > { %v2954_v50 = vmul.f32 %v2948_v44, %v2930_v40  ;;  %v2927_v37 = vadd.f32 %v2915_v55, %v2887_v41 }
 0x80d   : > { %v2938_v60 = vmul.f32 0.70710677, %v2926_v31  ;;  %v2955_v12 = vmul.f32 %v2949_v7, %v2931_v47  ;;  %v2932_v56 = vmul.f32 0.5, %v2926_v31 }
 0x80e   : > { %v7656_v34 = vmul.f32 %v2972_v15, %v2954_v50  ;;  %v2939_v30 = vmul.f32 0.70710677, %v2927_v37  ;;  %v2933_v39 = vmul.f32 0.5, %v2927_v37 }
 0x80f   : > { %6275 = verf.f32 %v2938_v60  ;;  %v7669_v58 = vmul.f32 %v2976_v45, %v2955_v12 }
 0x810   : > { %v5904_v49 = vpack.i.bf16 %v7656_v34, %v7654_v53  ;;  %6277 = verf.f32 %v2939_v30 }
 0x811   : > { %v5939_v23 = vpack.i.bf16 %v7669_v58, %v7643_v28 }
 0x812   : > { %5905 = vrot.lane.b32.xlu1 %v5904_v49, %s6326_s27  ;;  %5915 = vrot.lane.b32.xlu0 %v5904_v49, %s6328_s29 }
 0x816   : > { %5910 = vrot.lane.b32.xlu1 %v5904_v49, %s6327_s28  ;;  %5925 = vrot.lane.b32.xlu0 %v5904_v49, %s6330_s7 }
 0x819   : > { %v6276_v16 = vpop.eup %6275 }
 0x81a   : > { %5920 = vrot.lane.b32.xlu1 %v5904_v49, %s6329_s30  ;;  %5935 = vrot.lane.b32.xlu0 %v5904_v49, %s6332_s9  ;;  %v6278_v4 = vpop.eup %6277  ;;  %v2950_v42 = vadd.f32 1.0, %v6276_v16 }
 0x81b   : > { %v2951_v63 = vadd.f32 1.0, %v6278_v4 }
 0x81c   : > { %v2956_v22 = vmul.f32 %v2950_v42, %v2932_v56 }
 0x81d   : > { %v2957_v62 = vmul.f32 %v2951_v63, %v2933_v39 }
 0x81e   : > { %5930 = vrot.lane.b32.xlu1 %v5904_v49, %s6331_s8  ;;  %3209 = vrot.lane.b32.xlu0 %v7656_v34, %s6334_s10  ;;  %v7687_v52 = vmul.f32 %v2980_v43, %v2956_v22 }
 0x81f   : > { %v7689_v19 = vmul.f32 %v2984_v6, %v2957_v62 }
 0x820   : > { %v5994_v14 = vpack.i.bf16 %v7687_v52, %v7669_v58 }
 0x821   : > { %v5979_v13 = vpack.i.bf16 %v7689_v19, %v7687_v52  ;;  %v6004_v20 = vpack.i.bf16 %v6333_v10, %v7689_v19 }
 0x822   : > { %3207 = vrot.lane.b32.xlu1 %v7654_v53, %s6334_s10  ;;  %5940 = vrot.lane.b32.xlu0 %v5939_v23, %s6326_s27 }
 0x826   : > { %5945 = vrot.lane.b32.xlu1 %v5939_v23, %s6327_s28  ;;  %5950 = vrot.lane.b32.xlu0 %v5939_v23, %s6328_s29 }
 0x82a   : > { %5955 = vrot.lane.b32.xlu1 %v5939_v23, %s6329_s30  ;;  %5960 = vrot.lane.b32.xlu0 %v5939_v23, %s6330_s7 }
 0x82e   : > { %3139 = vrot.lane.b32.xlu1 %v6333_v10, %s6330_s7  ;;  %3113 = vrot.lane.b32.xlu0 %v6333_v10, %s6329_s30 }
 0x832   : > { %5965 = vrot.lane.b32.xlu1 %v5939_v23, %s6331_s8  ;;  %5980 = vrot.lane.b32.xlu0 %v5979_v13, %s6328_s29 }
 0x836   : > { %5970 = vrot.lane.b32.xlu1 %v5979_v13, %s6326_s27  ;;  %5985 = vrot.lane.b32.xlu0 %v5979_v13, %s6329_s30 }
 0x83a   : > { %5975 = vrot.lane.b32.xlu1 %v5979_v13, %s6327_s28  ;;  %6000 = vrot.lane.b32.xlu0 %v5979_v13, %s6331_s8 }
 0x83e   : > { %5990 = vrot.lane.b32.xlu1 %v5979_v13, %s6330_s7  ;;  %3165 = vrot.lane.b32.xlu0 %v6333_v10, %s6331_s8 }
 0x842   : > { %5995 = vrot.lane.b32.xlu1 %v5994_v14, %s6332_s9  ;;  %3211 = vrot.lane.b32.xlu0 %v7669_v58, %s6334_s10 }
 0x846   : > { %6005 = vrot.lane.b32.xlu1 %v6004_v20, %s6332_s9  ;;  %3215 = vrot.lane.b32.xlu0 %v7689_v19, %s6334_s10 }
 0x84a   : > { %3213 = vrot.lane.b32.xlu1 %v7687_v52, %s6334_s10  ;;  %3237 = vperm.xlu0 %5798, %v4952_v1  }
 0x84e   : > { %3217 = vrot.lane.b32.xlu1 %v6333_v10, %s6334_s10 }
 0x87a   : > { %v7729_v3 = vpop.permute.xlu1 %3205  ;;  %v7731_v27 = vpop.permute.xlu0 %3179 }
 0x884   : > { %v7733_v48 = vpop.permute.xlu1 %5905  ;;  %v7735_v21 = vpop.permute.xlu0 %5915 }
 0x885   : > { %v5908_v26 = vunpack.i.h.bf16 %v7733_v48  ;;  %v5907_v8 = vunpack.i.l.bf16 %v7733_v48  ;;  %v5918_v44 = vunpack.i.h.bf16 %v7735_v21  ;;  %v5917_v54 = vunpack.i.l.bf16 %v7735_v21 }
 0x887   : > { %v3038_v33 = vsel %vm299_vm0, %v5907_v8, %v5908_v26  ;;  %v3090_v47 = vsel %vm353_vm2, %v5917_v54, %v5918_v44 }
 0x888   : > { %v7742_v61 = vpop.permute.xlu1 %5910  ;;  %v7744_v29 = vpop.permute.xlu0 %5925  ;;  %v5214_v5 = vpack.c.bf16 %v3038_v33, %v7654_v53 }
 0x889   : > { %v5913_v24 = vunpack.i.h.bf16 %v7742_v61  ;;  %v5912_v40 = vunpack.i.l.bf16 %v7742_v61  ;;  %v5928_v49 = vunpack.i.h.bf16 %v7744_v29  ;;  %v5927_v35 = vunpack.i.l.bf16 %v7744_v29 }
 0x88a   : > { %5215 = vmatprep.subr.bf16.mxu1 %v5214_v5 }
 0x88b   : > { %v3064_v55 = vsel %vm326_vm1, %v5912_v40, %v5913_v24  ;;  %v3142_v13 = vsel %vm407_vm4, %v5927_v35, %v5928_v49 }
 0x88c   : > { %v7747_v46 = vpop.permute.xlu1 %5920  ;;  %v7749_v15 = vpop.permute.xlu0 %5935  ;;  %v5218_v16 = vpack.c.bf16 %v3090_v47, %v3064_v55 }
 0x88d   : > { %v5923_v32 = vunpack.i.h.bf16 %v7747_v46  ;;  %v5922_v31 = vunpack.i.l.bf16 %v7747_v46  ;;  %v5938_v39 = vunpack.i.h.bf16 %v7749_v15  ;;  %v5937_v43 = vunpack.i.l.bf16 %v7749_v15 }
 0x88f   : > { %v3116_v42 = vsel %vm380_vm3, %v5922_v31, %v5923_v32  ;;  %v3194_v55 = vsel %vm461_vm6, %v5937_v43, %v5938_v39 }
 0x890   : > { %v7751_v57 = vpop.permute.xlu1 %5930  ;;  %v7753_v38 = vpop.permute.xlu0 %3209  ;;  %v5222_v1 = vpack.c.bf16 %v3142_v13, %v3116_v42 }
 0x891   : > { %v5933_v23 = vunpack.i.h.bf16 %v7751_v57  ;;  %v5932_v4 = vunpack.i.l.bf16 %v7751_v57 }
 0x894   : > { %v7759_v25 = vpop.permute.xlu1 %3207  ;;  %v7761_v41 = vpop.permute.xlu0 %5940 }
 0x895   : > { %v5942_v50 = vunpack.i.l.bf16 %v7761_v41 }
 0x897   : > { %v3037_v37 = vsel %vm299_vm0, %v5942_v50, %v5907_v8  ;;  %v3168_v8 = vsel %vm434_vm5, %v5932_v4, %v5933_v23 }
 0x898   : > { %v7772_v60 = vpop.permute.xlu1 %5945  ;;  %v7774_v30 = vpop.permute.xlu0 %5950  ;;  %v5216_v7 = vpack.c.bf16 %v3037_v37, %v7643_v28  ;;  %v5226_v37 = vpack.c.bf16 %v3194_v55, %v3168_v8 }
 0x899   : > { %v5947_v12 = vunpack.i.l.bf16 %v7772_v60  ;;  %v5952_v45 = vunpack.i.l.bf16 %v7774_v30 }
 0x89a   : > { %5217 = vmatpush1.bf16.msra.mxu1 %v5216_v7 }
 0x89b   : > { %v3063_v63 = vsel %vm326_vm1, %v5947_v12, %v5912_v40  ;;  %v3089_v56 = vsel %vm353_vm2, %v5952_v45, %v5917_v54  ;;  %5219 = vmatprep.subr.bf16.mxu1 %v5218_v16  ;;  %v5948_v12 = vunpack.i.h.bf16 %v7772_v60  ;;  %v3193_v45 = vsel %vm461_vm6, %v7731_v27, %v5937_v43 }
 0x89c   : > { %v7791_v6 = vpop.permute.xlu1 %5955  ;;  %v7793_v22 = vpop.permute.xlu0 %5960  ;;  %v5220_v62 = vpack.c.bf16 %v3089_v56, %v3063_v63  ;;  %v5953_v16 = vunpack.i.h.bf16 %v7774_v30  ;;  %v3219_v30 = vsel %vm488_vm7, %v7729_v3, %v7759_v25  ;;  %v7847_v3 = vld [vmem:[%s8470_s1 + $0x28] sm:$0xff] }
 0x89d   : > { %v5957_v14 = vunpack.i.l.bf16 %v7791_v6  ;;  %v5962_v20 = vunpack.i.l.bf16 %v7793_v22  ;;  %v3065_v27 = vsel %vm326_vm1, %v5913_v24, %v5948_v12  ;;  %v5958_v60 = vunpack.i.h.bf16 %v7791_v6 }
 0x89e   : > { %5221 = vmatpush1.bf16.msra.mxu1 %v5220_v62 }
 0x89f   : > { %v3115_v33 = vsel %vm380_vm3, %v5957_v14, %v5922_v31  ;;  %v3141_v5 = vsel %vm407_vm4, %v5962_v20, %v5927_v35  ;;  %5223 = vmatprep.subr.bf16.mxu1 %v5222_v1  ;;  %v5943_v35 = vunpack.i.h.bf16 %v7761_v41  ;;  %v3220_v20 = vsel %vm488_vm7, %v7759_v25, %v7753_v38 }
 0x8a0   : > { %v5224_v40 = vpack.c.bf16 %v3141_v5, %v3115_v33  ;;  %v7805_v54 = vpop.permute.xlu1 %3139  ;;  %v7807_v50 = vpop.permute.xlu0 %3113 }
 0x8a1   : > { %v3039_v41 = vsel %vm299_vm0, %v5908_v26, %v5943_v35 }
 0x8a2   : > { %5225 = vmatpush1.bf16.msra.mxu1 %v5224_v40  ;;  %v5232_v33 = vpack.c.bf16 %v3039_v41, %v7656_v34 }
 0x8a3   : > { %5227 = vmatprep.subr.bf16.mxu1 %v5226_v37 }
 0x8a4   : > { %v7812_v7 = vpop.permute.xlu1 %5965  ;;  %v5981_v47 = vpop.permute.xlu0 %5980 }
 0x8a5   : > { %v5967_v31 = vunpack.i.l.bf16 %v7812_v7  ;;  %v5982_v43 = vunpack.i.l.bf16 %v5981_v47  ;;  %v5983_v61 = vunpack.i.h.bf16 %v5981_v47 }
 0x8a7   : > { %v3167_v42 = vsel %vm434_vm5, %v5967_v31, %v5932_v4  ;;  %v3091_v4 = vsel %vm353_vm2, %v5918_v44, %v5953_v16  ;;  %v5963_v44 = vunpack.i.h.bf16 %v7793_v22  ;;  %v3092_v46 = vsel %vm353_vm2, %v5953_v16, %v5982_v43 }
 0x8a8   : > { %v5228_v63 = vpack.c.bf16 %v3193_v45, %v3167_v42  ;;  %v5971_v56 = vpop.permute.xlu1 %5970  ;;  %v7821_v62 = vpop.permute.xlu0 %5985  ;;  %v5236_v37 = vpack.c.bf16 %v3091_v4, %v3065_v27  ;;  %v3094_v42 = vsel %vm353_vm2, %v5983_v61, %v7727_v51  ;;  %v5968_v16 = vunpack.i.h.bf16 %v7812_v7 }
 0x8a9   : > { %v5973_v13 = vunpack.i.h.bf16 %v5971_v56  ;;  %v5972_v14 = vunpack.i.l.bf16 %v5971_v56  ;;  %v5988_v5 = vunpack.i.h.bf16 %v7821_v62  ;;  %v5987_v40 = vunpack.i.l.bf16 %v7821_v62 }
 0x8aa   : > { %5229 = vmatpush1.bf16.msra.mxu1 %v5228_v63  ;;  %v3143_v63 = vsel %vm407_vm4, %v5928_v49, %v5963_v44 }
 0x8ab   : > { %3259 = vmatprep.subr.mxu1 %v3220_v20  ;;  %v3040_v48 = vsel %vm299_vm0, %v5943_v35, %v5972_v14  ;;  %v3042_v26 = vsel %vm299_vm0, %v5973_v13, %v7723_v0  ;;  %v3041_v24 = vsel %vm299_vm0, %v5972_v14, %v5973_v13  ;;  %v3117_v0 = vsel %vm380_vm3, %v5923_v32, %v5958_v60 }
 0x8ac   : > { %v5976_v6 = vpop.permute.xlu1 %5975  ;;  %v5230_v1 = vpack.c.bf16 %v3040_v48, %v7669_v58  ;;  %v5246_v21 = vpack.c.bf16 %v3042_v26, %v7689_v19  ;;  %v6001_v55 = vpop.permute.xlu0 %6000  ;;  %v5248_v47 = vpack.c.bf16 %v3041_v24, %v7687_v52  ;;  %v3093_v13 = vsel %vm353_vm2, %v5982_v43, %v5983_v61 }
 0x8ad   : > { %v5978_v25 = vunpack.i.h.bf16 %v5976_v6  ;;  %v5977_v8 = vunpack.i.l.bf16 %v5976_v6  ;;  %v3120_v51 = vsel %vm380_vm3, %v5988_v5, %v7807_v50  ;;  %v6002_v29 = vunpack.i.l.bf16 %v6001_v55 }
 0x8ae   : > { %3260 = vmatpush1.msra.mxu1 %v3219_v30  ;;  %5231 = vmatprep.subr.bf16.mxu0 %v5230_v1  ;;  %v5240_v43 = vpack.c.bf16 %v3143_v63, %v3117_v0  ;;  %v3169_v50 = vsel %vm434_vm5, %v5933_v23, %v5968_v16  ;;  %v3119_v26 = vsel %vm380_vm3, %v5987_v40, %v5988_v5  ;;  %v6003_v61 = vunpack.i.h.bf16 %v6001_v55 }
 0x8af   : > { %4953 = vmatmul.mubr.msk.f32.vlgmr.msra.gmra.mrb[14].mxu1 %vm508_vm8, %v7847_v3  ;;  %5233 = vmatpush1.bf16.msra.mxu0 %v5232_v33  ;;  %v3066_v22 = vsel %vm326_vm1, %v5948_v12, %v5977_v8  ;;  %v3067_v32 = vsel %vm326_vm1, %v5977_v8, %v5978_v25  ;;  %v3068_v45 = vsel %vm326_vm1, %v5978_v25, %v7725_v2 }
 0x8b0   : > { %5247 = vmatprep.subr.bf16.mxu1 %v5246_v21  ;;  %v5991_v31 = vpop.permute.xlu1 %5990  ;;  %v5234_v35 = vpack.c.bf16 %v3092_v46, %v3066_v22  ;;  %v5250_v12 = vpack.c.bf16 %v3094_v42, %v3068_v45  ;;  %3449 = vmatprep.mubr.f32.mxu1 %v6333_v10  ;;  %v3118_v2 = vsel %vm380_vm3, %v5958_v60, %v5987_v40  ;;  %v3166_v7 = vpop.permute.xlu0 %3165 }
 0x8b1   : > { %v5993_v56 = vunpack.i.h.bf16 %v5991_v31  ;;  %v5992_v62 = vunpack.i.l.bf16 %v5991_v31  ;;  %5249 = vmatpush1.bf16.msra.mxu1 %v5248_v47  ;;  %v5252_v14 = vpack.c.bf16 %v3093_v13, %v3067_v32  ;;  %v3170_v6 = vsel %vm434_vm5, %v5968_v16, %v6002_v29 }
 0x8b2   : > { %5235 = vmatprep.subr.bf16.mxu0 %v5234_v35  ;;  %5251 = vmatprep.subr.bf16.mxu1 %v5250_v12  ;;  %v3171_v33 = vsel %vm434_vm5, %v6002_v29, %v6003_v61  ;;  %v3172_v0 = vsel %vm434_vm5, %v6003_v61, %v3166_v7 }
 0x8b3   : > { %5237 = vmatpush1.bf16.msra.mxu0 %v5236_v37  ;;  %v3144_v49 = vsel %vm407_vm4, %v5963_v44, %v5992_v62  ;;  %v3146_v20 = vsel %vm407_vm4, %v5993_v56, %v7805_v54  ;;  %v3145_v41 = vsel %vm407_vm4, %v5992_v62, %v5993_v56 }
 0x8b4   : > { %v5996_v27 = vpop.permute.xlu1 %5995  ;;  %v5238_v30 = vpack.c.bf16 %v3144_v49, %v3118_v2  ;;  %v5254_v4 = vpack.c.bf16 %v3146_v20, %v3120_v51  ;;  %v5256_v54 = vpack.c.bf16 %v3145_v41, %v3119_v26  ;;  %v3212_v8 = vpop.permute.xlu0 %3211  ;;  %v4956_v20 = vld [vmem:[%s8472_s3 + $0x1e] sm:$0x3f] }
 0x8b5   : > { %v5998_v60 = vunpack.i.h.bf16 %v5996_v27  ;;  %v5997_v48 = vunpack.i.l.bf16 %v5996_v27  ;;  %5253 = vmatpush1.bf16.msra.mxu1 %v5252_v14  ;;  %v3221_v47 = vsel %vm488_vm7, %v7753_v38, %v3212_v8 }
 0x8b6   : > { %5239 = vmatprep.subr.bf16.mxu0 %v5238_v30  ;;  %5255 = vmatprep.subr.bf16.mxu1 %v5254_v4  ;;  %v3496_v30 = vrot.slane %v4956_v20, %v6587_v18 }
 0x8b7   : > { %v3195_v24 = vsel %vm461_vm6, %v5938_v39, %v5997_v48  ;;  %5241 = vmatpush1.bf16.msra.mxu0 %v5240_v43  ;;  %v3196_v1 = vsel %vm461_vm6, %v5997_v48, %v5998_v60  ;;  %v3500_v48 = vrot.slane %v4956_v20, %v6589_v9 }
 0x8b8   : > { %v5244_v21 = vpack.c.bf16 %v3195_v24, %v3169_v50  ;;  %v6006_v44 = vpop.permute.xlu1 %6005  ;;  %v5242_v57 = vpack.c.bf16 %v3196_v1, %v3170_v6  ;;  %v3216_v22 = vpop.permute.xlu0 %3215 }
 0x8b9   : > { %v6008_v25 = vunpack.i.h.bf16 %v6006_v44  ;;  %v6007_v23 = vunpack.i.l.bf16 %v6006_v44  ;;  %5257 = vmatpush1.bf16.msra.mxu1 %v5256_v54 }
 0x8ba   : > { %5243 = vmatprep.subr.bf16.mxu0 %v5242_v57 }
 0x8bb   : > { %v3197_v15 = vsel %vm461_vm6, %v5998_v60, %v6007_v23  ;;  %5245 = vmatpush1.bf16.msra.mxu0 %v5244_v21  ;;  %v3198_v39 = vsel %vm461_vm6, %v6007_v23, %v6008_v25  ;;  %v3504_v23 = vrot.slane %v4956_v20, %v6591_v11 }
 0x8bc   : > { %v5260_v5 = vpack.c.bf16 %v3197_v15, %v3171_v33  ;;  %v3214_v40 = vpop.permute.xlu1 %3213  ;;  %v5258_v55 = vpack.c.bf16 %v3198_v39, %v3172_v0  ;;  %v3492_v39 = vrot.slane %v4956_v20, %v6576_v59 }
 0x8bd   : > { %v3222_v37 = vsel %vm488_vm7, %v3212_v8, %v3214_v40  ;;  %v3223_v31 = vsel %vm488_vm7, %v3214_v40, %v3216_v22 }
 0x8be   : > { %3330 = vmatprep.subr.mxu0 %v3222_v37  ;;  %5259 = vmatprep.subr.bf16.mxu1 %v5258_v55 }
 0x8bf   : > { %3331 = vmatpush1.msra.mxu0 %v3221_v47  ;;  %5261 = vmatpush1.bf16.msra.mxu1 %v5260_v5 }
 0x8c0   : > { %v3218_v46 = vpop.permute.xlu1 %3217  ;;  %4954 = vmatmul.mubr.msk.f32.vlgmr.msra.gmra.mrb[16].mxu0 %vm508_vm8, %v7847_v3 }
 0x8c1   : > { %v3224_v32 = vsel %vm488_vm7, %v3216_v22, %v3218_v46  ;;  %3842 = vmatprep.mubr.f32.mxu0 %v6333_v10 }
 0x8c2   : > { %3401 = vmatprep.subr.mxu1 %v3224_v32 }
 0x8c3   : > { %3402 = vmatpush1.msra.mxu1 %v3223_v31  ;;  %v3508_v31 = vrot.slane %v4956_v20, %v6621_v36 }
 0x8c4   : > { %4955 = vmatmul.mubr.msk.f32.vlgmr.msra.gmra.mrb[16].mxu1 %vm508_vm8, %v7847_v3 }
 0x8c5   : > { %3913 = vmatprep.mubr.f32.mxu1 %v6333_v10 }
 0x8c9   : > { %v3238_v45 = vpop.permute.xlu0 %3237 }
 0x982   : > { %v3309_v38 = vpop.f32.mrb[14].mxu1 }
 0x983   : > { %v3311_v35 = vpop.f32.mrb[15].mxu1  ;;  %v3310_v13 = vadd.f32 %v3309_v38, %v3238_v45 }
 0x984   : > { %v3312_v42 = vadd.f32 %v3311_v35, %v3238_v45 }
 0x985   : > { %v3462_v49 = vmul.f32 0.70710677, %v3310_v13  ;;  %v3456_v33 = vmul.f32 0.5, %v3310_v13 }
 0x986   : > { %v3463_v63 = vmul.f32 0.70710677, %v3312_v42  ;;  %v3457_v7 = vmul.f32 0.5, %v3312_v42 }
 0x988   : > { %6279 = verf.f32 %v3463_v63 }
 0x992   : > { %v6280_v3 = vpop.eup %6279 }
 0x993   : > { %v3380_v56 = vpop.f32.mrb[16].mxu0  ;;  %v3475_v41 = vadd.f32 1.0, %v6280_v3 }
 0x994   : > { %v3381_v62 = vadd.f32 %v3380_v56, %v3238_v45  ;;  %v3382_v12 = vpop.f32.mrb[17].mxu0  ;;  %v3512_v56 = vrot.slane %v4956_v20, %v6623_v17 }
 0x995   : > { %v3383_v16 = vadd.f32 %v3382_v12, %v3238_v45  ;;  %v3481_v4 = vmul.f32 %v3475_v41, %v3457_v7 }
 0x996   : > { %v3464_v2 = vmul.f32 0.70710677, %v3381_v62  ;;  %v3458_v43 = vmul.f32 0.5, %v3381_v62 }
 0x997   : > { %v3451_v51 = vpop.f32.mrb[16].mxu1  ;;  %v3465_v14 = vmul.f32 0.70710677, %v3383_v16  ;;  %v7909_v54 = vmul.f32 %v3496_v30, %v3481_v4  ;;  %v3459_v25 = vmul.f32 0.5, %v3383_v16  ;;  %v6317_v16 = vld [vmem:[%s6385_s26 + $0x30] sm:$0xff] }
 0x998   : > { %6281 = verf.f32 %v3464_v2  ;;  %v3453_v29 = vpop.f32.mrb[17].mxu1  ;;  %v3452_v50 = vadd.f32 %v3451_v51, %v3238_v45  ;;  %v4958_v2 = vld [vmem:[%s8471_s2 + $0x30] sm:$0xff] }
 0x999   : > { %6283 = verf.f32 %v3465_v14  ;;  %v3454_v8 = vadd.f32 %v3453_v29, %v3238_v45 }
 0x99a   : > { %6285 = verf.f32 %v3462_v49  ;;  %v3466_v1 = vmul.f32 0.70710677, %v3452_v50  ;;  %v3460_v46 = vmul.f32 0.5, %v3452_v50 }
 0x99b   : > { %v3467_v5 = vmul.f32 0.70710677, %v3454_v8  ;;  %v3461_v42 = vmul.f32 0.5, %v3454_v8 }
 0x99c   : > { %6287 = verf.f32 %v3466_v1 }
 0x99d   : > { %6289 = verf.f32 %v3467_v5 }
 0x9a2   : > { %v6282_v27 = vpop.eup %6281 }
 0x9a3   : > { %v3476_v60 = vadd.f32 1.0, %v6282_v27  ;;  %v6284_v61 = vpop.eup %6283 }
 0x9a4   : > { %v6286_v6 = vpop.eup %6285  ;;  %v3477_v21 = vadd.f32 1.0, %v6284_v61 }
 0x9a5   : > { %v3482_v26 = vmul.f32 %v3476_v60, %v3458_v43  ;;  %v3474_v57 = vadd.f32 1.0, %v6286_v6 }
 0x9a6   : > { %v3483_v0 = vmul.f32 %v3477_v21, %v3459_v25  ;;  %v6288_v47 = vpop.eup %6287 }
 0x9a7   : > { %v7911_v24 = vmul.f32 %v3500_v48, %v3482_v26  ;;  %v3480_v15 = vmul.f32 %v3474_v57, %v3456_v33  ;;  %v3478_v22 = vadd.f32 1.0, %v6288_v47  ;;  %v6290_v38 = vpop.eup %6289 }
 0x9a8   : > { %v7921_v40 = vmul.f32 %v3504_v23, %v3483_v0  ;;  %v3479_v45 = vadd.f32 1.0, %v6290_v38 }
 0x9a9   : > { %v6014_v44 = vpack.i.bf16 %v7911_v24, %v7909_v54  ;;  %v7923_v55 = vmul.f32 %v3492_v39, %v3480_v15  ;;  %v3484_v32 = vmul.f32 %v3478_v22, %v3460_v46 }
 0x9aa   : > { %v3485_v63 = vmul.f32 %v3479_v45, %v3461_v42 }
 0x9ab   : > { %6015 = vrot.lane.b32.xlu0 %v6014_v44, %s6327_s28  ;;  %6010 = vrot.lane.b32.xlu1 %v6014_v44, %s6326_s27  ;;  %v6044_v37 = vpack.i.bf16 %v7921_v40, %v7923_v55  ;;  %v7936_v35 = vmul.f32 %v3508_v31, %v3484_v32 }
 0x9ac   : > { %v7945_v62 = vmul.f32 %v3512_v56, %v3485_v63 }
 0x9ae   : > { %v6079_v12 = vpack.i.bf16 %v7945_v62, %v7936_v35  ;;  %v6094_v13 = vpack.i.bf16 %v6317_v16, %v7945_v62 }
 0x9af   : > { %6025 = vrot.lane.b32.xlu0 %v6014_v44, %s6329_s30  ;;  %6020 = vrot.lane.b32.xlu1 %v6014_v44, %s6328_s29 }
 0x9b3   : > { %6035 = vrot.lane.b32.xlu0 %v6014_v44, %s6331_s8  ;;  %6030 = vrot.lane.b32.xlu1 %v6014_v44, %s6330_s7 }
 0x9b7   : > { %6040 = vrot.lane.b32.xlu1 %v6014_v44, %s6332_s9  ;;  %6045 = vrot.lane.b32.xlu0 %v6044_v37, %s6326_s27 }
 0x9bb   : > { %6055 = vrot.lane.b32.xlu1 %v6044_v37, %s6328_s29  ;;  %6050 = vrot.lane.b32.xlu0 %v6044_v37, %s6327_s28 }
 0x9bf   : > { %6065 = vrot.lane.b32.xlu1 %v6044_v37, %s6330_s7  ;;  %6060 = vrot.lane.b32.xlu0 %v6044_v37, %s6329_s30 }
 0x9c3   : > { %3670 = vrot.lane.b32.xlu1 %v7936_v35, %s6330_s7  ;;  %3644 = vrot.lane.b32.xlu0 %v7936_v35, %s6329_s30 }
 0x9c7   : > { %6075 = vrot.lane.b32.xlu1 %v6044_v37, %s6332_s9  ;;  %6070 = vrot.lane.b32.xlu0 %v6044_v37, %s6331_s8 }
 0x9cb   : > { %3722 = vrot.lane.b32.xlu1 %v7936_v35, %s6332_s9  ;;  %3696 = vrot.lane.b32.xlu0 %v7936_v35, %s6331_s8 }
 0x9cf   : > { %6080 = vrot.lane.b32.xlu1 %v6079_v12, %s6326_s27  ;;  %6085 = vrot.lane.b32.xlu0 %v6079_v12, %s6327_s28 }
 0x9d3   : > { %6090 = vrot.lane.b32.xlu1 %v6079_v12, %s6328_s29  ;;  %3570 = vrot.lane.b32.xlu0 %v6317_v16, %s6326_s27 }
 0x9d7   : > { %3742 = vrot.lane.b32.xlu1 %v7909_v54, %s6334_s10  ;;  %3744 = vrot.lane.b32.xlu0 %v7911_v24, %s6334_s10 }
 0x9db   : > { %3740 = vrot.lane.b32.xlu1 %v7923_v55, %s6334_s10  ;;  %3596 = vrot.lane.b32.xlu0 %v6317_v16, %s6327_s28 }
 0x9df   : > { %3622 = vrot.lane.b32.xlu1 %v6317_v16, %s6328_s29  ;;  %3746 = vrot.lane.b32.xlu0 %v7921_v40, %s6334_s10 }
 0x9e3   : > { %3748 = vrot.lane.b32.xlu1 %v7936_v35, %s6334_s10  ;;  %6095 = vrot.lane.b32.xlu0 %v6094_v13, %s6329_s30 }
 0x9e7   : > { %6100 = vrot.lane.b32.xlu1 %v6094_v13, %s6330_s7  ;;  %6105 = vrot.lane.b32.xlu0 %v6094_v13, %s6331_s8 }
 0x9eb   : > { %6110 = vrot.lane.b32.xlu1 %v6094_v13, %s6332_s9  ;;  %3750 = vrot.lane.b32.xlu0 %v7945_v62, %s6334_s10 }
 0x9ef   : > { %3752 = vrot.lane.b32.xlu1 %v6317_v16, %s6334_s10  ;;  %3772 = vperm.xlu0 %5798, %v4958_v2  }
 0x9f3   : > { %4000 = vrot.lane.b32.xlu1 %v7654_v53, %s6334_s10  ;;  %4002 = vrot.lane.b32.xlu0 %v7656_v34, %s6334_s10 }
 0x9f7   : > { %4004 = vrot.lane.b32.xlu1 %v7669_v58, %s6334_s10  ;;  %3998 = vrot.lane.b32.xlu0 %v7643_v28, %s6334_s10 }
 0x9fb   : > { %4006 = vrot.lane.b32.xlu1 %v7687_v52, %s6334_s10  ;;  %4008 = vrot.lane.b32.xlu0 %v7689_v19, %s6334_s10 }
 0x9ff   : > { %4010 = vrot.lane.b32.xlu1 %v6333_v10, %s6334_s10  ;;  %4189 = vrot.lane.b32.xlu0 %v6333_v10, %s6328_s29 }
 0xa03   : > { %4137 = vrot.lane.b32.xlu1 %v6333_v10, %s6326_s27 }
 0xa07   : > { %4163 = vrot.lane.b32.xlu1 %v6333_v10, %s6327_s28 }
 0xa1d   : > { %v8001_v53 = vpop.permute.xlu0 %6015  ;;  %v8003_v28 = vpop.permute.xlu1 %6010 }
 0xa1e   : > { %v6013_v34 = vunpack.i.h.bf16 %v8003_v28  ;;  %v6012_v58 = vunpack.i.l.bf16 %v8003_v28  ;;  %v6018_v41 = vunpack.i.h.bf16 %v8001_v53  ;;  %v6017_v7 = vunpack.i.l.bf16 %v8001_v53 }
 0xa20   : > { %v3573_v52 = vsel %vm299_vm0, %v6012_v58, %v6013_v34  ;;  %v3599_v21 = vsel %vm326_vm1, %v6017_v7, %v6018_v41 }
 0xa21   : > { %v8010_v19 = vpop.permute.xlu0 %6025  ;;  %v8012_v51 = vpop.permute.xlu1 %6020  ;;  %v5262_v14 = vpack.c.bf16 %v3573_v52, %v7909_v54 }
 0xa22   : > { %v6023_v3 = vunpack.i.h.bf16 %v8012_v51  ;;  %v6022_v20 = vunpack.i.l.bf16 %v8012_v51  ;;  %v6028_v26 = vunpack.i.h.bf16 %v8010_v19  ;;  %v6027_v61 = vunpack.i.l.bf16 %v8010_v19  ;;  %v8116_v19 = vld [vmem:[%s8470_s1 + $0x30] sm:$0xff] }
 0xa23   : > { %5263 = vmatprep.subr.bf16.mxu0 %v5262_v14 }
 0xa24   : > { %v3625_v48 = vsel %vm353_vm2, %v6022_v20, %v6023_v3  ;;  %v3651_v22 = vsel %vm380_vm3, %v6027_v61, %v6028_v26 }
 0xa25   : > { %v8015_v29 = vpop.permute.xlu0 %6035  ;;  %v8017_v49 = vpop.permute.xlu1 %6030  ;;  %v5266_v25 = vpack.c.bf16 %v3625_v48, %v3599_v21 }
 0xa26   : > { %v6033_v43 = vunpack.i.h.bf16 %v8017_v49  ;;  %v6032_v60 = vunpack.i.l.bf16 %v8017_v49  ;;  %v6038_v39 = vunpack.i.h.bf16 %v8015_v29  ;;  %v6037_v5 = vunpack.i.l.bf16 %v8015_v29 }
 0xa28   : > { %v3677_v33 = vsel %vm407_vm4, %v6032_v60, %v6033_v43  ;;  %v3703_v16 = vsel %vm434_vm5, %v6037_v5, %v6038_v39 }
 0xa29   : > { %v8023_v27 = vpop.permute.xlu1 %6040  ;;  %v8025_v30 = vpop.permute.xlu0 %6045  ;;  %v5270_v31 = vpack.c.bf16 %v3677_v33, %v3651_v22 }
 0xa2a   : > { %v6047_v4 = vunpack.i.l.bf16 %v8025_v30  ;;  %v6043_v23 = vunpack.i.h.bf16 %v8023_v27  ;;  %v6042_v8 = vunpack.i.l.bf16 %v8023_v27 }
 0xa2c   : > { %v3572_v50 = vsel %vm299_vm0, %v6047_v4, %v6012_v58  ;;  %v3729_v38 = vsel %vm461_vm6, %v6042_v8, %v6043_v23 }
 0xa2d   : > { %v5264_v54 = vpack.c.bf16 %v3572_v50, %v7923_v55  ;;  %v8037_v6 = vpop.permute.xlu1 %6055  ;;  %v8039_v1 = vpop.permute.xlu0 %6050  ;;  %v5274_v13 = vpack.c.bf16 %v3729_v38, %v3703_v16  ;;  %v6048_v50 = vunpack.i.h.bf16 %v8025_v30 }
 0xa2e   : > { %v6057_v44 = vunpack.i.l.bf16 %v8037_v6  ;;  %v6052_v57 = vunpack.i.l.bf16 %v8039_v1 }
 0xa2f   : > { %5265 = vmatpush1.bf16.msra.mxu0 %v5264_v54 }
 0xa30   : > { %v3624_v0 = vsel %vm353_vm2, %v6057_v44, %v6022_v20  ;;  %v3598_v15 = vsel %vm326_vm1, %v6052_v57, %v6017_v7  ;;  %5267 = vmatprep.subr.bf16.mxu0 %v5266_v25  ;;  %v3574_v44 = vsel %vm299_vm0, %v6013_v34, %v6048_v50  ;;  %v6058_v57 = vunpack.i.h.bf16 %v8037_v6 }
 0xa31   : > { %v5268_v55 = vpack.c.bf16 %v3624_v0, %v3598_v15  ;;  %v6066_v37 = vpop.permute.xlu1 %6065  ;;  %v6061_v47 = vpop.permute.xlu0 %6060  ;;  %v6053_v25 = vunpack.i.h.bf16 %v8039_v1 }
 0xa32   : > { %v6067_v46 = vunpack.i.l.bf16 %v6066_v37  ;;  %v6062_v32 = vunpack.i.l.bf16 %v6061_v47  ;;  %v6063_v22 = vunpack.i.h.bf16 %v6061_v47  ;;  %v3626_v28 = vsel %vm353_vm2, %v6023_v3, %v6058_v57 }
 0xa33   : > { %5269 = vmatpush1.bf16.msra.mxu0 %v5268_v55  ;;  %v6068_v55 = vunpack.i.h.bf16 %v6066_v37  ;;  %v3600_v34 = vsel %vm326_vm1, %v6018_v41, %v6053_v25 }
 0xa34   : > { %v3676_v45 = vsel %vm407_vm4, %v6067_v46, %v6032_v60  ;;  %v3650_v42 = vsel %vm380_vm3, %v6062_v32, %v6027_v61  ;;  %5271 = vmatprep.subr.bf16.mxu0 %v5270_v31  ;;  %v5284_v32 = vpack.c.bf16 %v3626_v28, %v3600_v34 }
 0xa35   : > { %v5272_v63 = vpack.c.bf16 %v3676_v45, %v3650_v42  ;;  %v8063_v56 = vpop.permute.xlu1 %3670  ;;  %v8065_v12 = vpop.permute.xlu0 %3644  ;;  %v3678_v38 = vsel %vm407_vm4, %v6033_v43, %v6068_v55  ;;  %v3652_v45 = vsel %vm380_vm3, %v6028_v26, %v6063_v22 }
 0xa36   : > { %v3679_v6 = vsel %vm407_vm4, %v6068_v55, %v8063_v56  ;;  %v5288_v26 = vpack.c.bf16 %v3678_v38, %v3652_v45 }
 0xa37   : > { %5273 = vmatpush1.bf16.msra.mxu0 %v5272_v63 }
 0xa38   : > { %5275 = vmatprep.subr.bf16.mxu0 %v5274_v13 }
 0xa39   : > { %v6076_v2 = vpop.permute.xlu1 %6075  ;;  %v6071_v58 = vpop.permute.xlu0 %6070 }
 0xa3a   : > { %v6077_v52 = vunpack.i.l.bf16 %v6076_v2  ;;  %v6072_v14 = vunpack.i.l.bf16 %v6071_v58  ;;  %v6078_v53 = vunpack.i.h.bf16 %v6076_v2  ;;  %v6073_v31 = vunpack.i.h.bf16 %v6071_v58 }
 0xa3c   : > { %v3728_v20 = vsel %vm461_vm6, %v6077_v52, %v6042_v8  ;;  %v3702_v7 = vsel %vm434_vm5, %v6072_v14, %v6037_v5  ;;  %v5280_v5 = vpack.c.bf16 %v3574_v44, %v7911_v24  ;;  %v3730_v52 = vsel %vm461_vm6, %v6043_v23, %v6078_v53 }
 0xa3d   : > { %v5276_v4 = vpack.c.bf16 %v3728_v20, %v3702_v7  ;;  %v8072_v60 = vpop.permute.xlu1 %3722  ;;  %v8074_v48 = vpop.permute.xlu0 %3696  ;;  %v3704_v20 = vsel %vm434_vm5, %v6038_v39, %v6073_v31 }
 0xa3e   : > { %v3731_v63 = vsel %vm461_vm6, %v6078_v53, %v8072_v60  ;;  %v3705_v16 = vsel %vm434_vm5, %v6073_v31, %v8074_v48  ;;  %v5292_v29 = vpack.c.bf16 %v3730_v52, %v3704_v20 }
 0xa3f   : > { %5277 = vmatpush1.bf16.msra.mxu0 %v5276_v4  ;;  %v5290_v7 = vpack.c.bf16 %v3731_v63, %v3705_v16 }
 0xa41   : > { %v6081_v61 = vpop.permute.xlu1 %6080  ;;  %v8077_v54 = vpop.permute.xlu0 %6085 }
 0xa42   : > { %v6082_v21 = vunpack.i.l.bf16 %v6081_v61  ;;  %v6087_v8 = vunpack.i.l.bf16 %v8077_v54  ;;  %v6083_v37 = vunpack.i.h.bf16 %v6081_v61  ;;  %v6088_v4 = vunpack.i.h.bf16 %v8077_v54 }
 0xa44   : > { %v3575_v33 = vsel %vm299_vm0, %v6048_v50, %v6082_v21  ;;  %v3601_v24 = vsel %vm326_vm1, %v6053_v25, %v6087_v8  ;;  %v3576_v49 = vsel %vm299_vm0, %v6082_v21, %v6083_v37 }
 0xa45   : > { %v6091_v0 = vpop.permute.xlu1 %6090  ;;  %v3571_v15 = vpop.permute.xlu0 %3570  ;;  %v5278_v30 = vpack.c.bf16 %v3575_v33, %v7921_v40  ;;  %v3653_v40 = vsel %vm380_vm3, %v6063_v22, %v8065_v12  ;;  %v5296_v61 = vpack.c.bf16 %v3576_v49, %v7936_v35  ;;  %v3602_v35 = vsel %vm326_vm1, %v6087_v8, %v6088_v4 }
 0xa46   : > { %v6092_v46 = vunpack.i.l.bf16 %v6091_v0  ;;  %v5286_v42 = vpack.c.bf16 %v3679_v6, %v3653_v40  ;;  %v3577_v13 = vsel %vm299_vm0, %v6083_v37, %v3571_v15  ;;  %v6093_v2 = vunpack.i.h.bf16 %v6091_v0 }
 0xa47   : > { %5279 = vmatprep.subr.bf16.mxu1 %v5278_v30  ;;  %v5294_v50 = vpack.c.bf16 %v3577_v13, %v7945_v62 }
 0xa48   : > { %5281 = vmatpush1.bf16.msra.mxu1 %v5280_v5  ;;  %v3627_v1 = vsel %vm353_vm2, %v6058_v57, %v6092_v46  ;;  %v3628_v27 = vsel %vm353_vm2, %v6092_v46, %v6093_v2 }
 0xa49   : > { %v3743_v51 = vpop.permute.xlu1 %3742  ;;  %v3745_v47 = vpop.permute.xlu0 %3744  ;;  %v5282_v3 = vpack.c.bf16 %v3627_v1, %v3601_v24  ;;  %v5300_v44 = vpack.c.bf16 %v3628_v27, %v3602_v35 }
 0xa4a   : > { %v3755_v41 = vsel %vm488_vm7, %v3743_v51, %v3745_v47 }
 0xa4b   : > { %3794 = vmatprep.subr.mxu0 %v3755_v41  ;;  %5283 = vmatprep.subr.bf16.mxu1 %v5282_v3 }
 0xa4c   : > { %5285 = vmatpush1.bf16.msra.mxu1 %v5284_v32 }
 0xa4d   : > { %v3741_v43 = vpop.permute.xlu1 %3740  ;;  %v3597_v58 = vpop.permute.xlu0 %3596  ;;  %5287 = vmatprep.subr.bf16.mxu1 %v5286_v42 }
 0xa4e   : > { %v3754_v14 = vsel %vm488_vm7, %v3741_v43, %v3743_v51  ;;  %v3603_v39 = vsel %vm326_vm1, %v6088_v4, %v3597_v58 }
 0xa4f   : > { %3795 = vmatpush1.msra.mxu0 %v3754_v14 }
 0xa50   : > { %4959 = vmatmul.mubr.msk.f32.vlgmr.msra.gmra.mrb[18].mxu0 %vm508_vm8, %v8116_v19  ;;  %5289 = vmatpush1.bf16.msra.mxu1 %v5288_v26 }
 0xa51   : > { %5295 = vmatprep.subr.bf16.mxu0 %v5294_v50  ;;  %v3623_v23 = vpop.permute.xlu1 %3622  ;;  %v3747_v21 = vpop.permute.xlu0 %3746  ;;  %5291 = vmatprep.subr.bf16.mxu1 %v5290_v7 }
 0xa52   : > { %v3629_v54 = vsel %vm353_vm2, %v6093_v2, %v3623_v23  ;;  %5297 = vmatpush1.bf16.msra.mxu0 %v5296_v61  ;;  %3984 = vmatprep.mubr.f32.mxu0 %v6333_v10  ;;  %v3756_v0 = vsel %vm488_vm7, %v3745_v47, %v3747_v21 }
 0xa53   : > { %v5298_v62 = vpack.c.bf16 %v3629_v54, %v3603_v39 }
 0xa54   : > { %5293 = vmatpush1.bf16.msra.mxu1 %v5292_v29 }
 0xa55   : > { %v3749_v57 = vpop.permute.xlu1 %3748  ;;  %v6096_v25 = vpop.permute.xlu0 %6095  ;;  %5299 = vmatprep.subr.bf16.mxu0 %v5298_v62  ;;  %v8164_v62 = vld [vmem:[%s8472_s3 + $0x24] sm:$0x3f] }
 0xa56   : > { %5301 = vmatpush1.bf16.msra.mxu0 %v5300_v44  ;;  %v3757_v33 = vsel %vm488_vm7, %v3747_v21, %v3749_v57  ;;  %v6098_v15 = vunpack.i.h.bf16 %v6096_v25  ;;  %v6097_v30 = vunpack.i.l.bf16 %v6096_v25 }
 0xa57   : > { %3865 = vmatprep.subr.mxu1 %v3757_v33 }
 0xa58   : > { %3866 = vmatpush1.msra.mxu1 %v3756_v0  ;;  %v3654_v46 = vsel %vm380_vm3, %v8065_v12, %v6097_v30  ;;  %v3655_v28 = vsel %vm380_vm3, %v6097_v30, %v6098_v15  ;;  %v4066_v0 = vrot.slane %v8164_v62, %v6576_v59 }
 0xa59   : > { %v6101_v5 = vpop.permute.xlu1 %6100  ;;  %v6106_v55 = vpop.permute.xlu0 %6105  ;;  %4960 = vmatmul.mubr.msk.f32.vlgmr.msra.gmra.mrb[18].mxu1 %vm508_vm8, %v8116_v19 }
 0xa5a   : > { %v6103_v8 = vunpack.i.h.bf16 %v6101_v5  ;;  %v6102_v22 = vunpack.i.l.bf16 %v6101_v5  ;;  %4409 = vmatprep.mubr.f32.mxu1 %v6333_v10  ;;  %v6108_v6 = vunpack.i.h.bf16 %v6106_v55  ;;  %v6107_v40 = vunpack.i.l.bf16 %v6106_v55 }
 0xa5c   : > { %v3680_v34 = vsel %vm407_vm4, %v8063_v56, %v6102_v22  ;;  %v3681_v24 = vsel %vm407_vm4, %v6102_v22, %v6103_v8  ;;  %v3706_v32 = vsel %vm434_vm5, %v8074_v48, %v6107_v40  ;;  %v3707_v53 = vsel %vm434_vm5, %v6107_v40, %v6108_v6 }
 0xa5d   : > { %v5304_v1 = vpack.c.bf16 %v3680_v34, %v3654_v46  ;;  %v6111_v37 = vpop.permute.xlu1 %6110  ;;  %v5302_v51 = vpack.c.bf16 %v3681_v24, %v3655_v28  ;;  %v3751_v45 = vpop.permute.xlu0 %3750  ;;  %v4070_v34 = vrot.slane %v8164_v62, %v6587_v18  ;;  %v4074_v6 = vrot.slane %v8164_v62, %v6589_v9 }
 0xa5e   : > { %v6113_v47 = vunpack.i.h.bf16 %v6111_v37  ;;  %v6112_v3 = vunpack.i.l.bf16 %v6111_v37  ;;  %v3758_v63 = vsel %vm488_vm7, %v3749_v57, %v3751_v45 }
 0xa5f   : > { %5303 = vmatprep.subr.bf16.mxu0 %v5302_v51 }
 0xa60   : > { %v3732_v12 = vsel %vm461_vm6, %v8072_v60, %v6112_v3  ;;  %5305 = vmatpush1.bf16.msra.mxu0 %v5304_v1  ;;  %v3733_v56 = vsel %vm461_vm6, %v6112_v3, %v6113_v47 }
 0xa61   : > { %v5308_v31 = vpack.c.bf16 %v3732_v12, %v3706_v32  ;;  %v3753_v41 = vpop.permute.xlu1 %3752  ;;  %v5306_v38 = vpack.c.bf16 %v3733_v56, %v3707_v53 }
 0xa62   : > { %v3759_v42 = vsel %vm488_vm7, %v3751_v45, %v3753_v41 }
 0xa63   : > { %5307 = vmatprep.subr.bf16.mxu0 %v5306_v38 }
 0xa64   : > { %5309 = vmatpush1.bf16.msra.mxu0 %v5308_v31 }
 0xa65   : > { %3936 = vmatprep.subr.mxu0 %v3759_v42  ;;  %v4001_v13 = vpop.permute.xlu1 %4000 }
 0xa68   : > { %3937 = vmatpush1.msra.mxu0 %v3758_v63 }
 0xa69   : > { %4961 = vmatmul.mubr.msk.f32.vlgmr.msra.gmra.mrb[20].mxu0 %vm508_vm8, %v8116_v19  ;;  %v4005_v4 = vpop.permute.xlu1 %4004 }
 0xa6a   : > { %4480 = vmatprep.mubr.f32.mxu0 %v6333_v10 }
 0xa6d   : > { %v4007_v21 = vpop.permute.xlu1 %4006 }
 0xa6e   : > { %v3773_v60 = vpop.permute.xlu0 %3772  ;;  %v4015_v35 = vsel %vm488_vm7, %v4005_v4, %v4007_v21 }
 0xa71   : > { %v4011_v3 = vpop.permute.xlu1 %4010 }
 0xa72   : > { %v4003_v48 = vpop.permute.xlu0 %4002 }
 0xa73   : > { %v4013_v52 = vsel %vm488_vm7, %v4001_v13, %v4003_v48  ;;  %v4014_v23 = vsel %vm488_vm7, %v4003_v48, %v4005_v4 }
 0xa76   : > { %v3999_v16 = vpop.permute.xlu0 %3998 }
 0xa77   : > { %v4012_v58 = vsel %vm488_vm7, %v3999_v16, %v4001_v13 }
 0xa7a   : > { %v4009_v24 = vpop.permute.xlu0 %4008 }
 0xa7b   : > { %v4016_v53 = vsel %vm488_vm7, %v4007_v21, %v4009_v24  ;;  %v4017_v56 = vsel %vm488_vm7, %v4009_v24, %v4011_v3 }
 0xb23   : > { %v3844_v49 = vpop.f32.mrb[18].mxu0 }
 0xb24   : > { %v3845_v2 = vadd.f32 %v3844_v49, %v3773_v60  ;;  %v3846_v43 = vpop.f32.mrb[19].mxu0 }
 0xb25   : > { %v3847_v26 = vadd.f32 %v3846_v43, %v3773_v60 }
 0xb26   : > { %v4024_v14 = vadd.f32 %v4012_v58, %v3845_v2  ;;  %v4078_v2 = vrot.slane %v8164_v62, %v6591_v11 }
 0xb27   : > { %v4025_v20 = vadd.f32 %v4013_v52, %v3847_v26 }
 0xb28   : > { %v4036_v7 = vmul.f32 0.70710677, %v4024_v14  ;;  %v4030_v25 = vmul.f32 0.5, %v4024_v14 }
 0xb29   : > { %v4037_v50 = vmul.f32 0.70710677, %v4025_v20  ;;  %v4031_v22 = vmul.f32 0.5, %v4025_v20 }
 0xb2a   : > { %6291 = verf.f32 %v4036_v7 }
 0xb2b   : > { %6293 = verf.f32 %v4037_v50  ;;  %v4082_v50 = vrot.slane %v8164_v62, %v6621_v36 }
 0xb2c   : > { %v3915_v19 = vpop.f32.mrb[18].mxu1 }
 0xb2d   : > { %v3916_v61 = vadd.f32 %v3915_v19, %v3773_v60  ;;  %v3917_v27 = vpop.f32.mrb[19].mxu1  ;;  %v4086_v19 = vrot.slane %v8164_v62, %v6623_v17  ;;  %v8248_v62 = vpop.permute.xlu1 %4137 }
 0xb2e   : > { %v3918_v39 = vadd.f32 %v3917_v27, %v3773_v60 }
 0xb2f   : > { %v4026_v29 = vadd.f32 %v4014_v23, %v3916_v61 }
 0xb30   : > { %v4027_v44 = vadd.f32 %v4015_v35, %v3918_v39  ;;  %v4964_v35 = vld [vmem:[%s8471_s2 + $0x38] sm:$0xff] }
 0xb31   : > { %v4038_v54 = vmul.f32 0.70710677, %v4026_v29  ;;  %v4032_v37 = vmul.f32 0.5, %v4026_v29 }
 0xb32   : > { %v4039_v5 = vmul.f32 0.70710677, %v4027_v44  ;;  %v4033_v13 = vmul.f32 0.5, %v4027_v44  ;;  %v8250_v44 = vpop.permute.xlu1 %4163 }
 0xb33   : > { %6295 = verf.f32 %v4038_v54 }
 0xb34   : > { %v6292_v57 = vpop.eup %6291  ;;  %6297 = verf.f32 %v4039_v5 }
 0xb35   : > { %v4048_v33 = vadd.f32 1.0, %v6292_v57  ;;  %v6294_v15 = vpop.eup %6293  ;;  %v8252_v57 = vpop.permute.xlu0 %4189 }
 0xb36   : > { %v4049_v8 = vadd.f32 1.0, %v6294_v15 }
 0xb37   : > { %v4054_v30 = vmul.f32 %v4048_v33, %v4030_v25 }
 0xb38   : > { %v4055_v1 = vmul.f32 %v4049_v8, %v4031_v22 }
 0xb39   : > { %v8168_v55 = vmul.f32 %v4066_v0, %v4054_v30 }
 0xb3a   : > { %v8180_v31 = vmul.f32 %v4070_v34, %v4055_v1 }
 0xb3b   : > { %4307 = vrot.lane.b32.xlu0 %v8168_v55, %s6334_s10  ;;  %4281 = vrot.lane.b32.xlu1 %v8168_v55, %s6332_s9 }
 0xb3c   : > { %v3986_v46 = vpop.f32.mrb[20].mxu0 }
 0xb3d   : > { %v6296_v28 = vpop.eup %6295  ;;  %v3988_v40 = vpop.f32.mrb[21].mxu0  ;;  %v3987_v47 = vadd.f32 %v3986_v46, %v3773_v60 }
 0xb3e   : > { %v4050_v51 = vadd.f32 1.0, %v6296_v28  ;;  %v3989_v32 = vadd.f32 %v3988_v40, %v3773_v60  ;;  %v6298_v63 = vpop.eup %6297 }
 0xb3f   : > { %v4028_v38 = vadd.f32 %v4016_v53, %v3987_v47  ;;  %v4051_v16 = vadd.f32 1.0, %v6298_v63 }
 0xb40   : > { %v4056_v12 = vmul.f32 %v4050_v51, %v4032_v37  ;;  %v4029_v45 = vadd.f32 %v4017_v56, %v3989_v32 }
 0xb41   : > { %v4040_v48 = vmul.f32 0.70710677, %v4028_v38  ;;  %v4057_v49 = vmul.f32 %v4051_v16, %v4033_v13  ;;  %v4034_v7 = vmul.f32 0.5, %v4028_v38 }
 0xb42   : > { %v8182_v41 = vmul.f32 %v4074_v6, %v4056_v12  ;;  %v4041_v60 = vmul.f32 0.70710677, %v4029_v45  ;;  %v4035_v4 = vmul.f32 0.5, %v4029_v45 }
 0xb43   : > { %6299 = verf.f32 %v4040_v48  ;;  %v8194_v43 = vmul.f32 %v4078_v2, %v4057_v49 }
 0xb44   : > { %v6114_v42 = vpack.i.bf16 %v8182_v41, %v8180_v31  ;;  %6301 = verf.f32 %v4041_v60 }
 0xb45   : > { %v6149_v26 = vpack.i.bf16 %v8194_v43, %v8168_v55 }
 0xb46   : > { %6115 = vrot.lane.b32.xlu0 %v6114_v42, %s6326_s27  ;;  %6125 = vrot.lane.b32.xlu1 %v6114_v42, %s6328_s29 }
 0xb4a   : > { %6120 = vrot.lane.b32.xlu0 %v6114_v42, %s6327_s28  ;;  %6135 = vrot.lane.b32.xlu1 %v6114_v42, %s6330_s7 }
 0xb4d   : > { %v6300_v58 = vpop.eup %6299 }
 0xb4e   : > { %6130 = vrot.lane.b32.xlu0 %v6114_v42, %s6329_s30  ;;  %6145 = vrot.lane.b32.xlu1 %v6114_v42, %s6332_s9  ;;  %v6302_v52 = vpop.eup %6301  ;;  %v4052_v14 = vadd.f32 1.0, %v6300_v58 }
 0xb4f   : > { %v4053_v20 = vadd.f32 1.0, %v6302_v52 }
 0xb50   : > { %v4058_v61 = vmul.f32 %v4052_v14, %v4034_v7 }
 0xb51   : > { %v4059_v27 = vmul.f32 %v4053_v20, %v4035_v4 }
 0xb52   : > { %6140 = vrot.lane.b32.xlu0 %v6114_v42, %s6331_s8  ;;  %4311 = vrot.lane.b32.xlu1 %v8182_v41, %s6334_s10  ;;  %v8212_v23 = vmul.f32 %v4082_v50, %v4058_v61 }
 0xb53   : > { %v8214_v21 = vmul.f32 %v4086_v19, %v4059_v27 }
 0xb54   : > { %v6204_v39 = vpack.i.bf16 %v8212_v23, %v8194_v43 }
 0xb55   : > { %v6189_v29 = vpack.i.bf16 %v8214_v21, %v8212_v23  ;;  %v6214_v54 = vpack.i.bf16 %v6333_v10, %v8214_v21 }
 0xb56   : > { %4309 = vrot.lane.b32.xlu0 %v8180_v31, %s6334_s10  ;;  %6150 = vrot.lane.b32.xlu1 %v6149_v26, %s6326_s27 }
 0xb5a   : > { %6155 = vrot.lane.b32.xlu0 %v6149_v26, %s6327_s28  ;;  %6160 = vrot.lane.b32.xlu1 %v6149_v26, %s6328_s29 }
 0xb5e   : > { %6165 = vrot.lane.b32.xlu0 %v6149_v26, %s6329_s30  ;;  %6170 = vrot.lane.b32.xlu1 %v6149_v26, %s6330_s7 }
 0xb62   : > { %4241 = vrot.lane.b32.xlu0 %v6333_v10, %s6330_s7  ;;  %4215 = vrot.lane.b32.xlu1 %v6333_v10, %s6329_s30 }
 0xb66   : > { %6175 = vrot.lane.b32.xlu0 %v6149_v26, %s6331_s8  ;;  %6190 = vrot.lane.b32.xlu1 %v6189_v29, %s6328_s29 }
 0xb6a   : > { %6180 = vrot.lane.b32.xlu0 %v6189_v29, %s6326_s27  ;;  %6195 = vrot.lane.b32.xlu1 %v6189_v29, %s6329_s30 }
 0xb6e   : > { %6185 = vrot.lane.b32.xlu0 %v6189_v29, %s6327_s28  ;;  %6210 = vrot.lane.b32.xlu1 %v6189_v29, %s6331_s8 }
 0xb72   : > { %6200 = vrot.lane.b32.xlu0 %v6189_v29, %s6330_s7  ;;  %4267 = vrot.lane.b32.xlu1 %v6333_v10, %s6331_s8 }
 0xb76   : > { %6205 = vrot.lane.b32.xlu0 %v6204_v39, %s6332_s9  ;;  %4313 = vrot.lane.b32.xlu1 %v8194_v43, %s6334_s10 }
 0xb7a   : > { %6215 = vrot.lane.b32.xlu0 %v6214_v54, %s6332_s9  ;;  %4317 = vrot.lane.b32.xlu1 %v8214_v21, %s6334_s10 }
 0xb7e   : > { %4315 = vrot.lane.b32.xlu0 %v8212_v23, %s6334_s10  ;;  %4339 = vperm.xlu1 %5482, %v4964_v35  }
 0xb82   : > { %4319 = vrot.lane.b32.xlu0 %v6333_v10, %s6334_s10 }
 0xbad   : > { %v8254_v25 = vpop.permute.xlu0 %4307  ;;  %v8256_v33 = vpop.permute.xlu1 %4281 }
 0xbb8   : > { %v8258_v0 = vpop.permute.xlu0 %6115  ;;  %v8260_v15 = vpop.permute.xlu1 %6125 }
 0xbb9   : > { %v6118_v30 = vunpack.i.h.bf16 %v8258_v0  ;;  %v6117_v5 = vunpack.i.l.bf16 %v8258_v0  ;;  %v6128_v51 = vunpack.i.h.bf16 %v8260_v15  ;;  %v6127_v47 = vunpack.i.l.bf16 %v8260_v15 }
 0xbbb   : > { %v4140_v8 = vsel %vm299_vm0, %v6117_v5, %v6118_v30  ;;  %v4192_v16 = vsel %vm353_vm2, %v6127_v47, %v6128_v51 }
 0xbbc   : > { %v8267_v22 = vpop.permute.xlu0 %6120  ;;  %v8269_v46 = vpop.permute.xlu1 %6135  ;;  %v5310_v28 = vpack.c.bf16 %v4140_v8, %v8180_v31 }
 0xbbd   : > { %v6123_v1 = vunpack.i.h.bf16 %v8267_v22  ;;  %v6122_v37 = vunpack.i.l.bf16 %v8267_v22  ;;  %v6138_v45 = vunpack.i.h.bf16 %v8269_v46  ;;  %v6137_v42 = vunpack.i.l.bf16 %v8269_v46 }
 0xbbe   : > { %5311 = vmatprep.subr.bf16.mxu1 %v5310_v28 }
 0xbbf   : > { %v4166_v31 = vsel %vm326_vm1, %v6122_v37, %v6123_v1  ;;  %v4244_v61 = vsel %vm407_vm4, %v6137_v42, %v6138_v45 }
 0xbc0   : > { %v8272_v34 = vpop.permute.xlu0 %6130  ;;  %v8274_v6 = vpop.permute.xlu1 %6145  ;;  %v5314_v2 = vpack.c.bf16 %v4192_v16, %v4166_v31 }
 0xbc1   : > { %v6133_v53 = vunpack.i.h.bf16 %v8272_v34  ;;  %v6132_v56 = vunpack.i.l.bf16 %v8272_v34  ;;  %v6148_v20 = vunpack.i.h.bf16 %v8274_v6  ;;  %v6147_v7 = vunpack.i.l.bf16 %v8274_v6 }
 0xbc3   : > { %v4295_v16 = vsel %vm461_vm6, %v8256_v33, %v6147_v7 }
 0xbc4   : > { %v8276_v40 = vpop.permute.xlu0 %6140  ;;  %v8278_v24 = vpop.permute.xlu1 %4311 }
 0xbc5   : > { %v6143_v58 = vunpack.i.h.bf16 %v8276_v40  ;;  %v6142_v26 = vunpack.i.l.bf16 %v8276_v40 }
 0xbc7   : > { %v4270_v54 = vsel %vm434_vm5, %v6142_v26, %v6143_v58 }
 0xbc8   : > { %v8284_v3 = vpop.permute.xlu0 %4309  ;;  %v8286_v32 = vpop.permute.xlu1 %6150 }
 0xbc9   : > { %v6152_v12 = vunpack.i.l.bf16 %v8286_v32 }
 0xbcb   : > { %v4139_v38 = vsel %vm299_vm0, %v6152_v12, %v6117_v5 }
 0xbcc   : > { %v5312_v63 = vpack.c.bf16 %v4139_v38, %v8168_v55  ;;  %v8298_v48 = vpop.permute.xlu0 %6155  ;;  %v8300_v60 = vpop.permute.xlu1 %6160  ;;  %v4218_v55 = vsel %vm380_vm3, %v6132_v56, %v6133_v53 }
 0xbcd   : > { %v6157_v13 = vunpack.i.l.bf16 %v8298_v48  ;;  %v6162_v49 = vunpack.i.l.bf16 %v8300_v60  ;;  %v5318_v39 = vpack.c.bf16 %v4244_v61, %v4218_v55 }
 0xbce   : > { %5313 = vmatpush1.bf16.msra.mxu1 %v5312_v63  ;;  %v6158_v63 = vunpack.i.h.bf16 %v8298_v48 }
 0xbcf   : > { %v4165_v52 = vsel %vm326_vm1, %v6157_v13, %v6122_v37  ;;  %v4191_v14 = vsel %vm353_vm2, %v6162_v49, %v6127_v47  ;;  %5315 = vmatprep.subr.bf16.mxu1 %v5314_v2  ;;  %v4296_v47 = vsel %vm461_vm6, %v6147_v7, %v6148_v20  ;;  %v6163_v13 = vunpack.i.h.bf16 %v8300_v60 }
 0xbd0   : > { %v5316_v4 = vpack.c.bf16 %v4191_v14, %v4165_v52  ;;  %v8316_v50 = vpop.permute.xlu0 %6165  ;;  %v8318_v19 = vpop.permute.xlu1 %6170  ;;  %v5322_v12 = vpack.c.bf16 %v4296_v47, %v4270_v54  ;;  %v4321_v14 = vsel %vm488_vm7, %v8254_v25, %v8284_v3  ;;  %v4167_v33 = vsel %vm326_vm1, %v6123_v1, %v6158_v63 }
 0xbd1   : > { %v6167_v27 = vunpack.i.l.bf16 %v8316_v50  ;;  %v6172_v29 = vunpack.i.l.bf16 %v8318_v19  ;;  %v6168_v48 = vunpack.i.h.bf16 %v8316_v50  ;;  %v4322_v60 = vsel %vm488_vm7, %v8284_v3, %v8278_v24  ;;  %v8372_v3 = vld [vmem:[%s8470_s1 + $0x38] sm:$0xff] }
 0xbd2   : > { %5317 = vmatpush1.bf16.msra.mxu1 %v5316_v4  ;;  %v4193_v25 = vsel %vm353_vm2, %v6128_v51, %v6163_v13 }
 0xbd3   : > { %v4217_v35 = vsel %vm380_vm3, %v6167_v27, %v6132_v56  ;;  %v4243_v5 = vsel %vm407_vm4, %v6172_v29, %v6137_v42  ;;  %5319 = vmatprep.subr.bf16.mxu1 %v5318_v39  ;;  %v6153_v42 = vunpack.i.h.bf16 %v8286_v32  ;;  %v6173_v27 = vunpack.i.h.bf16 %v8318_v19 }
 0xbd4   : > { %v5320_v8 = vpack.c.bf16 %v4243_v5, %v4217_v35  ;;  %v8330_v28 = vpop.permute.xlu0 %4241  ;;  %v8332_v37 = vpop.permute.xlu1 %4215  ;;  %v4219_v54 = vsel %vm380_vm3, %v6133_v53, %v6168_v48 }
 0xbd5   : > { %v4141_v32 = vsel %vm299_vm0, %v6118_v30, %v6153_v42 }
 0xbd6   : > { %5321 = vmatpush1.bf16.msra.mxu1 %v5320_v8  ;;  %v5328_v51 = vpack.c.bf16 %v4141_v32, %v8182_v41 }
 0xbd7   : > { %5323 = vmatprep.subr.bf16.mxu1 %v5322_v12 }
 0xbd8   : > { %v8337_v31 = vpop.permute.xlu0 %6175  ;;  %v6191_v38 = vpop.permute.xlu1 %6190 }
 0xbd9   : > { %v6177_v56 = vunpack.i.l.bf16 %v8337_v31  ;;  %v6193_v22 = vunpack.i.h.bf16 %v6191_v38 }
 0xbdb   : > { %v4269_v49 = vsel %vm434_vm5, %v6177_v56, %v6142_v26  ;;  %v6192_v26 = vunpack.i.l.bf16 %v6191_v38  ;;  %v4196_v12 = vsel %vm353_vm2, %v6193_v22, %v8252_v57 }
 0xbdc   : > { %v5324_v2 = vpack.c.bf16 %v4295_v16, %v4269_v49  ;;  %v6181_v55 = vpop.permute.xlu0 %6180  ;;  %v8346_v52 = vpop.permute.xlu1 %6195 }
 0xbdd   : > { %v6183_v4 = vunpack.i.h.bf16 %v6181_v55  ;;  %v6182_v61 = vunpack.i.l.bf16 %v6181_v55  ;;  %v6197_v35 = vunpack.i.l.bf16 %v8346_v52  ;;  %v4194_v19 = vsel %vm353_vm2, %v6163_v13, %v6192_v26 }
 0xbde   : > { %5325 = vmatpush1.bf16.msra.mxu1 %v5324_v2  ;;  %v4195_v16 = vsel %vm353_vm2, %v6192_v26, %v6193_v22 }
 0xbdf   : > { %4361 = vmatprep.subr.mxu1 %v4322_v60  ;;  %v4142_v0 = vsel %vm299_vm0, %v6153_v42, %v6182_v61  ;;  %v4144_v30 = vsel %vm299_vm0, %v6183_v4, %v8248_v62  ;;  %v4143_v1 = vsel %vm299_vm0, %v6182_v61, %v6183_v4  ;;  %v5332_v62 = vpack.c.bf16 %v4193_v25, %v4167_v33 }
 0xbe0   : > { %v6186_v7 = vpop.permute.xlu0 %6185  ;;  %v5326_v50 = vpack.c.bf16 %v4142_v0, %v8194_v43  ;;  %v5342_v15 = vpack.c.bf16 %v4144_v30, %v8214_v21  ;;  %v6198_v43 = vunpack.i.h.bf16 %v8346_v52  ;;  %v6211_v5 = vpop.permute.xlu1 %6210  ;;  %v5344_v21 = vpack.c.bf16 %v4143_v1, %v8212_v23 }
 0xbe1   : > { %v6188_v29 = vunpack.i.h.bf16 %v6186_v7  ;;  %v6187_v39 = vunpack.i.l.bf16 %v6186_v7  ;;  %v4245_v23 = vsel %vm407_vm4, %v6138_v45, %v6173_v27  ;;  %v6212_v46 = vunpack.i.l.bf16 %v6211_v5 }
 0xbe2   : > { %4362 = vmatpush1.msra.mxu1 %v4321_v14  ;;  %5327 = vmatprep.subr.bf16.mxu0 %v5326_v50  ;;  %v4222_v57 = vsel %vm380_vm3, %v6198_v43, %v8332_v37  ;;  %v5336_v4 = vpack.c.bf16 %v4245_v23, %v4219_v54  ;;  %v4221_v33 = vsel %vm380_vm3, %v6197_v35, %v6198_v43 }
 0xbe3   : > { %4965 = vmatmul.mubr.msk.f32.vlgmr.msra.gmra.mrb[20].mxu1 %vm508_vm8, %v8372_v3  ;;  %5329 = vmatpush1.bf16.msra.mxu0 %v5328_v51  ;;  %v4168_v41 = vsel %vm326_vm1, %v6158_v63, %v6187_v39  ;;  %v4169_v34 = vsel %vm326_vm1, %v6187_v39, %v6188_v29  ;;  %v4170_v47 = vsel %vm326_vm1, %v6188_v29, %v8250_v44  ;;  %v6178_v63 = vunpack.i.h.bf16 %v8337_v31 }
 0xbe4   : > { %5343 = vmatprep.subr.bf16.mxu1 %v5342_v15  ;;  %v6201_v53 = vpop.permute.xlu0 %6200  ;;  %v5330_v8 = vpack.c.bf16 %v4194_v19, %v4168_v41  ;;  %v5346_v42 = vpack.c.bf16 %v4196_v12, %v4170_v47  ;;  %4551 = vmatprep.mubr.f32.mxu1 %v6333_v10  ;;  %v4220_v44 = vsel %vm380_vm3, %v6168_v48, %v6197_v35  ;;  %v4268_v31 = vpop.permute.xlu1 %4267  ;;  %v6213_v48 = vunpack.i.h.bf16 %v6211_v5 }
 0xbe5   : > { %v6203_v38 = vunpack.i.h.bf16 %v6201_v53  ;;  %v6202_v56 = vunpack.i.l.bf16 %v6201_v53  ;;  %5345 = vmatpush1.bf16.msra.mxu1 %v5344_v21  ;;  %v5348_v13 = vpack.c.bf16 %v4195_v16, %v4169_v34  ;;  %v4271_v37 = vsel %vm434_vm5, %v6143_v58, %v6178_v63 }
 0xbe6   : > { %5331 = vmatprep.subr.bf16.mxu0 %v5330_v8  ;;  %5347 = vmatprep.subr.bf16.mxu1 %v5346_v42  ;;  %v4272_v25 = vsel %vm434_vm5, %v6178_v63, %v6212_v46  ;;  %v4273_v7 = vsel %vm434_vm5, %v6212_v46, %v6213_v48  ;;  %v4274_v50 = vsel %vm434_vm5, %v6213_v48, %v4268_v31  ;;  %v8432_v8 = vld [vmem:[%s8472_s3 + $0x2a] sm:$0x3f]  ;;  %v4627_v46 = vld [vmem:[%s8473_s4] sm:$0x3] }
 0xbe7   : > { %5333 = vmatpush1.bf16.msra.mxu0 %v5332_v62  ;;  %v4246_v45 = vsel %vm407_vm4, %v6173_v27, %v6202_v56  ;;  %v4248_v49 = vsel %vm407_vm4, %v6203_v38, %v8330_v28  ;;  %v4247_v2 = vsel %vm407_vm4, %v6202_v56, %v6203_v38  ;;  %v4598_v63 = vrot.slane %v8432_v8, %v6587_v18 }
 0xbe8   : > { %v6206_v55 = vpop.permute.xlu0 %6205  ;;  %v5334_v52 = vpack.c.bf16 %v4246_v45, %v4220_v44  ;;  %v5350_v14 = vpack.c.bf16 %v4248_v49, %v4222_v57  ;;  %v5352_v28 = vpack.c.bf16 %v4247_v2, %v4221_v33  ;;  %v4314_v1 = vpop.permute.xlu1 %4313  ;;  %v4594_v44 = vrot.slane %v8432_v8, %v6576_v59 }
 0xbe9   : > { %v6208_v61 = vunpack.i.h.bf16 %v6206_v55  ;;  %v6207_v32 = vunpack.i.l.bf16 %v6206_v55  ;;  %5349 = vmatpush1.bf16.msra.mxu1 %v5348_v13  ;;  %v4323_v39 = vsel %vm488_vm7, %v8278_v24, %v4314_v1 }
 0xbea   : > { %5335 = vmatprep.subr.bf16.mxu0 %v5334_v52  ;;  %5351 = vmatprep.subr.bf16.mxu1 %v5350_v14  ;;  %v4628_v14 = vmul.f32 0.0030864198, %v4627_v46 }
 0xbeb   : > { %v4297_v60 = vsel %vm461_vm6, %v6148_v20, %v6207_v32  ;;  %5337 = vmatpush1.bf16.msra.mxu0 %v5336_v4  ;;  %v4298_v26 = vsel %vm461_vm6, %v6207_v32, %v6208_v61 }
 0xbec   : > { %v5340_v0 = vpack.c.bf16 %v4297_v60, %v4271_v37  ;;  %v6216_v30 = vpop.permute.xlu0 %6215  ;;  %v5338_v40 = vpack.c.bf16 %v4298_v26, %v4272_v25  ;;  %v4318_v62 = vpop.permute.xlu1 %4317 }
 0xbed   : > { %v6218_v22 = vunpack.i.h.bf16 %v6216_v30  ;;  %v6217_v58 = vunpack.i.l.bf16 %v6216_v30  ;;  %5353 = vmatpush1.bf16.msra.mxu1 %v5352_v28 }
 0xbee   : > { %5339 = vmatprep.subr.bf16.mxu0 %v5338_v40  ;;  %v4602_v40 = vrot.slane %v8432_v8, %v6589_v9 }
 0xbef   : > { %v4299_v6 = vsel %vm461_vm6, %v6208_v61, %v6217_v58  ;;  %5341 = vmatpush1.bf16.msra.mxu0 %v5340_v0  ;;  %v4300_v20 = vsel %vm461_vm6, %v6217_v58, %v6218_v22  ;;  %v4606_v0 = vrot.slane %v8432_v8, %v6591_v11  ;;  %v4610_v11 = vrot.slane %v8432_v8, %v6621_v36 }
 0xbf0   : > { %v5356_v15 = vpack.c.bf16 %v4299_v6, %v4273_v7  ;;  %v4316_v51 = vpop.permute.xlu0 %4315  ;;  %v5354_v27 = vpack.c.bf16 %v4300_v20, %v4274_v50 }
 0xbf1   : > { %v4324_v29 = vsel %vm488_vm7, %v4314_v1, %v4316_v51  ;;  %v4325_v35 = vsel %vm488_vm7, %v4316_v51, %v4318_v62 }
 0xbf2   : > { %4432 = vmatprep.subr.mxu0 %v4324_v29  ;;  %5355 = vmatprep.subr.bf16.mxu1 %v5354_v27 }
 0xbf3   : > { %4433 = vmatpush1.msra.mxu0 %v4323_v39  ;;  %5357 = vmatpush1.bf16.msra.mxu1 %v5356_v15  ;;  %v4614_v15 = vrot.slane %v8432_v8, %v6623_v17 }
 0xbf4   : > { %v4320_v54 = vpop.permute.xlu0 %4319  ;;  %4966 = vmatmul.mubr.msk.f32.vlgmr.msra.gmra.mrb[22].mxu0 %vm508_vm8, %v8372_v3 }
 0xbf5   : > { %v4326_v43 = vsel %vm488_vm7, %v4318_v62, %v4320_v54  ;;  %4697 = vmatprep.mubr.f32.mxu0 %v6333_v10 }
 0xbf6   : > { %4503 = vmatprep.subr.mxu1 %v4326_v43 }
 0xbf7   : > { %4504 = vmatpush1.msra.mxu1 %v4325_v35 }
 0xbf8   : > { %4967 = vmatmul.mubr.msk.f32.vlgmr.msra.gmra.mrb[22].mxu1 %vm508_vm8, %v8372_v3 }
 0xbf9   : > { %4768 = vmatprep.mubr.f32.mxu1 %v6333_v10 }
 0xbfd   : > { %v4340_v24 = vpop.permute.xlu1 %4339 }
 0xcb6   : > { %v4411_v5 = vpop.f32.mrb[20].mxu1 }
 0xcb7   : > { %v4412_v21 = vadd.f32 %v4411_v5, %v4340_v24  ;;  %v4413_v41 = vpop.f32.mrb[21].mxu1 }
 0xcb8   : > { %v4414_v19 = vadd.f32 %v4413_v41, %v4340_v24 }
 0xcb9   : > { %v4564_v34 = vmul.f32 0.70710677, %v4412_v21  ;;  %v4558_v23 = vmul.f32 0.5, %v4412_v21 }
 0xcba   : > { %v4565_v53 = vmul.f32 0.70710677, %v4414_v19  ;;  %v4559_v38 = vmul.f32 0.5, %v4414_v19 }
 0xcbb   : > { %6303 = verf.f32 %v4564_v34 }
 0xcbc   : > { %6305 = verf.f32 %v4565_v53 }
 0xcc5   : > { %v6304_v47 = vpop.eup %6303 }
 0xcc6   : > { %v6306_v12 = vpop.eup %6305  ;;  %v4576_v3 = vadd.f32 1.0, %v6304_v47 }
 0xcc7   : > { %v4577_v56 = vadd.f32 1.0, %v6306_v12  ;;  %v4482_v42 = vpop.f32.mrb[22].mxu0 }
 0xcc8   : > { %v4582_v16 = vmul.f32 %v4576_v3, %v4558_v23  ;;  %v4483_v57 = vadd.f32 %v4482_v42, %v4340_v24  ;;  %v4484_v13 = vpop.f32.mrb[23].mxu0  ;;  %v4860_v3 = vld [vmem:[%s8474_s5] sm:$0x3] }
 0xcc9   : > { %v4583_v45 = vmul.f32 %v4577_v56, %v4559_v38  ;;  %v4485_v49 = vadd.f32 %v4484_v13, %v4340_v24 }
 0xcca   : > { %v4566_v2 = vmul.f32 0.70710677, %v4483_v57  ;;  %v4621_v4 = vmul.f32 %v4594_v44, %v4582_v16  ;;  %v4560_v28 = vmul.f32 0.5, %v4483_v57 }
 0xccb   : > { %v4567_v31 = vmul.f32 0.70710677, %v4485_v49  ;;  %v4553_v55 = vpop.f32.mrb[22].mxu1  ;;  %v4622_v52 = vmul.f32 %v4598_v63, %v4583_v45  ;;  %v4561_v25 = vmul.f32 0.5, %v4485_v49 }
 0xccc   : > { %6307 = verf.f32 %v4566_v2  ;;  %v4554_v18 = vadd.f32 %v4553_v55, %v4340_v24  ;;  %v4555_v61 = vpop.f32.mrb[23].mxu1 }
 0xccd   : > { %6309 = verf.f32 %v4567_v31  ;;  %v4556_v59 = vadd.f32 %v4555_v61, %v4340_v24  ;;  %4633 = vmatprep.subr.mxu0 %v4622_v52 }
 0xcce   : > { %v4568_v32 = vmul.f32 0.70710677, %v4554_v18  ;;  %4634 = vmatpush1.msra.mxu0 %v4621_v4  ;;  %v4562_v7 = vmul.f32 0.5, %v4554_v18 }
 0xccf   : > { %v4569_v37 = vmul.f32 0.70710677, %v4556_v59  ;;  %4969 = vmatmul.mubr.msk.f32.vlgmr.msra.gmra.mrb[24].mxu0 %vm4629_vm9, %v4628_v14 }
 0xcd0   : > { %6311 = verf.f32 %v4568_v32  ;;  %4839 = vmatprep.mubr.f32.mxu0 %v6333_v10  ;;  %v4563_v10 = vmul.f32 0.5, %v4556_v59 }
 0xcd1   : > { %6313 = verf.f32 %v4569_v37 }
 0xcd6   : > { %v6308_v33 = vpop.eup %6307 }
 0xcd7   : > { %v6310_v48 = vpop.eup %6309  ;;  %v4578_v60 = vadd.f32 1.0, %v6308_v33 }
 0xcd8   : > { %v4579_v26 = vadd.f32 1.0, %v6310_v48 }
 0xcd9   : > { %v4584_v30 = vmul.f32 %v4578_v60, %v4560_v28 }
 0xcda   : > { %v6312_v22 = vpop.eup %6311  ;;  %v4585_v58 = vmul.f32 %v4579_v26, %v4561_v25 }
 0xcdb   : > { %v6314_v1 = vpop.eup %6313  ;;  %v4580_v50 = vadd.f32 1.0, %v6312_v22  ;;  %v4623_v51 = vmul.f32 %v4602_v40, %v4584_v30 }
 0xcdc   : > { %v4581_v6 = vadd.f32 1.0, %v6314_v1  ;;  %v4624_v20 = vmul.f32 %v4606_v0, %v4585_v58 }
 0xcdd   : > { %v4586_v27 = vmul.f32 %v4580_v50, %v4562_v7 }
 0xcde   : > { %v4587_v29 = vmul.f32 %v4581_v6, %v4563_v10  ;;  %4704 = vmatprep.subr.mxu1 %v4624_v20 }
 0xcdf   : > { %4705 = vmatpush1.msra.mxu1 %v4623_v51  ;;  %v4625_v39 = vmul.f32 %v4610_v11, %v4586_v27 }
 0xce0   : > { %4970 = vmatmul.mubr.msk.f32.vlgmr.msra.gmra.mrb[24].mxu1 %vm4629_vm9, %v4628_v14  ;;  %v4626_v9 = vmul.f32 %v4614_v15, %v4587_v29 }
 0xce2   : > { %4775 = vmatprep.subr.mxu0 %v4626_v9 }
 0xce3   : > { %4776 = vmatpush1.msra.mxu0 %v4625_v39 }
 0xce4   : > { %4971 = vmatmul.mubr.msk.f32.vlgmr.msra.gmra.mrb[26].mxu0 %vm4629_vm9, %v4628_v14 }
 0xda2   : > { %v4699_v62 = vpop.f32.mrb[24].mxu0 }
 0xda3   : > { %v4847_v17 = vsel %vm4846_vm10, %v4699_v62, 0.0  ;;  %v4701_v54 = vpop.f32.mrb[25].mxu0 }
 0xda4   : > { %v4848_v43 = vsel %vm4846_vm10, %v4701_v54, 0.0 }
 0xda5   : > { %v4849_v36 = vadd.f32 %v4848_v43, %v4847_v17 }
 0xdb3   : > { %v4770_v35 = vpop.f32.mrb[24].mxu1 }
 0xdb4   : > { %v4850_v24 = vsel %vm4846_vm10, %v4770_v35, 0.0  ;;  %v4772_v5 = vpop.f32.mrb[25].mxu1 }
 0xdb5   : > { %v4851_v21 = vadd.f32 %v4850_v24, %v4849_v36  ;;  %v4852_v41 = vsel %vm4846_vm10, %v4772_v5, 0.0 }
 0xdb7   : > { %v4853_v19 = vadd.f32 %v4852_v41, %v4851_v21  ;;  %v4841_v34 = vpop.f32.mrb[26].mxu0 }
 0xdb8   : > { %v4854_v53 = vsel %vm4846_vm10, %v4841_v34, 0.0  ;;  %v4843_v8 = vpop.f32.mrb[27].mxu0 }
 0xdb9   : > { %v4855_v47 = vadd.f32 %v4854_v53, %v4853_v19  ;;  %v4856_v12 = vsel %vm4846_vm10, %v4843_v8, 0.0 }
 0xdbb   : > { %v4857_v23 = vadd.f32 %v4856_v12, %v4855_v47 }
 0xdbd   : > { %4858 = vadd.xlane.f32.xlu0 %v4857_v23 }
 0xe4a   : > { %v4859_v38 = vpop.xlane.xlu0 %4858 }
 0xe4b   : > { %v4861_v56 = vadd.f32 %v4860_v3, %v4859_v38 }
 0xe4d   : > { %4863 = vst.msk [vmem:[%s249_s18] sm:$0x3] %vm4862_vm11, %v4861_v56 }
 0xe4e PF: > { %s16_s21 = sadd.s32 1, %s6324_s21  }
 0xe4f   : > { %p13_p4 = scmp.ge.s32.totalorder %s16_s21, 4  }
 0xe51   :  { %15 = sbr.rel (!%p13_p4) target bundleno = 1 (0x1), region = 95 }

</bundles_post_ra>
